<compile_context>
chip_gen: v7x
topology: tpu7x:2x2x1
jax: 0.10.0
libtpu: 0.0.40
codegen_flags: <defaults>
</compile_context>

<pallas_src>
import jax
import jax.numpy as jnp
import numpy as np
from jax.experimental import pallas as pl
from jax.experimental.pallas import tpu as pltpu

# ----------------------------------------------------------------------------
# Network geometry (SimpleTestCNN with a 16x16 input)
# ----------------------------------------------------------------------------
NUM_CLASSES = 10
CPAD = 128                       # lane-dense padded channel width everywhere
SLAB_DT = jnp.bfloat16           # inter-layer activation storage dtype

H1, W1 = 16, 16
H2, W2 = 8, 8
H3, W3 = 4, 4
P1, P2, P3 = H1 * W1, H2 * W2, H3 * W3      # 256, 64, 16 flattened pixels
MG2, MG3 = 16, 8                             # conv-input row margins (mult. of 8, >= W+1)
PP2, PP3 = P2 + 2 * MG2, P3 + 2 * MG3        # 96, 32
POOL_ROWS = 280                              # >= P1 + W1 + 1 = 273, multiple of 8
POOL2_PAD = 16                               # >= W2 + 1 = 9, multiple of 8

_TAPS = [(dh, dw) for dh in (-1, 0, 1) for dw in (-1, 0, 1)]   # tap t = (dh+1)*3+(dw+1)


# ----------------------------------------------------------------------------
# In-kernel helpers (traced inside the kernel body)
# ----------------------------------------------------------------------------
def _conv_taps(in_ref, base, ww, p, w_ref, shift_ref, mask_ref):
    """3x3 conv (pad=1) + folded BN + ReLU on a margin-padded (rows, CPAD) bf16
    slab: 9 shifted bf16 matmuls, f32 accumulate.  Masks only for dw != 0 taps
    (vertical out-of-image reads land in zeroed margin rows)."""
    acc = jnp.zeros((p, CPAD), jnp.float32)
    mi = 0
    for t, (dh, dw) in enumerate(_TAPS):
        s = dh * ww + dw
        tap = in_ref[base + s: base + s + p, :]          # (p, CPAD) bf16, static slice
        if dw != 0:
            tap = tap * mask_ref[mi]                     # lane-broadcast bf16 mask
            mi += 1
        acc = acc + jnp.dot(tap, w_ref[t], preferred_element_type=jnp.float32)
    return jnp.maximum(acc + shift_ref[...], 0.0)        # (p, CPAD) f32


def _maxpool(slab_ref, p, ww, sel_ref):
    """2x2/2 max-pool: bf16 max of 4 shifted slab reads, then a bf16 one-hot
    row-selection matmul down to the pooled pixel rows (f32 out)."""
    m = jnp.maximum(jnp.maximum(slab_ref[0:p, :], slab_ref[1:p + 1, :]),
                    jnp.maximum(slab_ref[ww:p + ww, :], slab_ref[ww + 1:p + ww + 1, :]))
    return jnp.dot(sel_ref[...], m, preferred_element_type=jnp.float32)


# ----------------------------------------------------------------------------
# Feature-extractor kernel: one grid step == one image
# ----------------------------------------------------------------------------
def _features_kernel(x_ref, w1_ref, s1_ref, sel1_ref,
                     w2_ref, s2_ref, m2_ref, sel2_ref,
                     w3_ref, s3_ref, m3_ref,
                     feat_ref,
                     poolA, buf2, buf3):
    # Zero only the margin / overhang rows (center regions are fully rewritten
    # every step; done per step so it is safe under megacore grid splitting).
    poolA[P1:POOL_ROWS, :] = jnp.zeros((POOL_ROWS - P1, CPAD), SLAB_DT)
    buf2[0:MG2, :] = jnp.zeros((MG2, CPAD), SLAB_DT)
    buf2[MG2 + P2:PP2, :] = jnp.zeros((PP2 - MG2 - P2, CPAD), SLAB_DT)
    buf3[0:MG3, :] = jnp.zeros((MG3, CPAD), SLAB_DT)
    buf3[MG3 + P3:PP3, :] = jnp.zeros((PP3 - MG3 - P3, CPAD), SLAB_DT)

    # ---- block 1: conv(3->32)+BN+ReLU as ONE im2col matmul -------------------
    y1 = jnp.dot(x_ref[0], w1_ref[...], preferred_element_type=jnp.float32)
    y1 = jnp.maximum(y1 + s1_ref[...], 0.0)                        # (256, 128) f32
    poolA[0:P1, :] = y1.astype(SLAB_DT)

    # ---- maxpool 16x16 -> 8x8, write into block-2 margin buffer --------------
    x2 = _maxpool(poolA, P1, W1, sel1_ref)                         # (64, 128) f32
    buf2[MG2:MG2 + P2, :] = x2.astype(SLAB_DT)

    # ---- block 2: conv(32->64)+BN+ReLU ---------------------------------------
    y2 = _conv_taps(buf2, MG2, W2, P2, w2_ref, s2_ref, m2_ref)     # (64, 128) f32
    poolA[0:P2, :] = y2.astype(SLAB_DT)
    poolA[P2:P2 + POOL2_PAD, :] = jnp.zeros((POOL2_PAD, CPAD), SLAB_DT)

    # ---- maxpool 8x8 -> 4x4 ----------------------------------------------------
    x3 = _maxpool(poolA, P2, W2, sel2_ref)                         # (16, 128) f32
    buf3[MG3:MG3 + P3, :] = x3.astype(SLAB_DT)

    # ---- block 3: conv(64->128)+BN+ReLU, AdaptiveAvgPool(1,1) ------------------
    y3 = _conv_taps(buf3, MG3, W3, P3, w3_ref, s3_ref, m3_ref)     # (16, 128) f32
    feat_ref[0] = jnp.mean(y3, axis=0, keepdims=True)              # (1, 128) f32


# ----------------------------------------------------------------------------
# Classifier kernel: Dropout(identity) -> FC1 -> ReLU -> Dropout -> FC2, M = N
# ----------------------------------------------------------------------------
def _classifier_kernel(feat_ref, w1_ref, b1_ref, w2_ref, b2_ref, o_ref):
    h = jnp.dot(feat_ref[...], w1_ref[...], preferred_element_type=jnp.float32) + b1_ref[...]
    h = jnp.maximum(h, 0.0)
    o_ref[...] = jnp.dot(h, w2_ref[...], preferred_element_type=jnp.float32) + b2_ref[...]


# ----------------------------------------------------------------------------
# Host-side (trace-time) parameter / constant preparation
# ----------------------------------------------------------------------------
def _fold_conv_bn_taps(w, b, gamma, beta, mean, var, eps=1e-5):
    """Conv weight (Cout,Cin,3,3) + eval BN -> (9, CPAD, CPAD) bf16 per-tap
    weights with BN scale folded in, plus a (1, CPAD) f32 shift."""
    cout, cin = w.shape[0], w.shape[1]
    scale = gamma / jnp.sqrt(var + eps)
    shift = beta + (b - mean) * scale
    wt = jnp.transpose(w, (2, 3, 1, 0)).reshape(9, cin, cout) * scale[None, None, :]
    wt = jnp.pad(wt, ((0, 0), (0, CPAD - cin), (0, CPAD - cout)))
    shift = jnp.pad(shift, (0, CPAD - cout)).reshape(1, CPAD)
    return wt.astype(jnp.bfloat16), shift.astype(jnp.float32)


def _fold_conv_bn_im2col(w, b, gamma, beta, mean, var, eps=1e-5):
    """Conv1 weight folded for im2col: K rows = tap*3 + cin, padded to (CPAD, CPAD)."""
    cout, cin = w.shape[0], w.shape[1]
    scale = gamma / jnp.sqrt(var + eps)
    shift = beta + (b - mean) * scale
    wt = jnp.transpose(w, (2, 3, 1, 0)).reshape(9 * cin, cout) * scale[None, :]
    wt = jnp.pad(wt, ((0, CPAD - 9 * cin), (0, CPAD - cout)))
    shift = jnp.pad(shift, (0, CPAD - cout)).reshape(1, CPAD)
    return wt.astype(jnp.bfloat16), shift.astype(jnp.float32)


def _im2col_block1(x_nchw):
    """NCHW input -> (N, 256, 128) bf16 im2col columns (tap-major, zero-padded K)."""
    n, cin = x_nchw.shape[0], x_nchw.shape[1]
    x = jnp.transpose(x_nchw, (0, 2, 3, 1))                        # (N, H, W, C)
    xp = jnp.pad(x, ((0, 0), (1, 1), (1, 1), (0, 0)))
    taps = [xp[:, 1 + dh:1 + dh + H1, 1 + dw:1 + dw + W1, :] for dh, dw in _TAPS]
    cols = jnp.stack(taps, axis=3).reshape(n, P1, 9 * cin)         # (N, 256, 27)
    cols = jnp.pad(cols, ((0, 0), (0, 0), (0, CPAD - 9 * cin)))
    return cols.astype(jnp.bfloat16)


def _tap_masks_dw(hh, ww):
    """(6, H*W, CPAD) bf16 validity masks for the 6 dw != 0 conv taps."""
    p = np.arange(hh * ww)
    h, w = p // ww, p % ww
    ms = []
    for dh, dw in _TAPS:
        if dw == 0:
            continue
        ms.append((h + dh >= 0) & (h + dh < hh) & (w + dw >= 0) & (w + dw < ww))
    m = np.stack(ms).astype(np.float32)[:, :, None]
    m = np.broadcast_to(m, (6, hh * ww, CPAD))
    return jnp.asarray(m).astype(jnp.bfloat16)


def _pool_select(hh, ww):
    """(H/2*W/2, H*W) bf16 one-hot matrix selecting each 2x2 window's top-left row."""
    h2, w2 = hh // 2, ww // 2
    q = np.arange(h2 * w2)
    src = 2 * (q // w2) * ww + 2 * (q % w2)
    sel = (src[:, None] == np.arange(hh * ww)[None, :]).astype(np.float32)
    return jnp.asarray(sel).astype(jnp.bfloat16)


# ----------------------------------------------------------------------------
# Full forward pass (mirrors SimpleTestCNN.forward, inference mode)
# ----------------------------------------------------------------------------
@jax.jit
def simple_test_cnn_forward(params, x_nchw):
    n = x_nchw.shape[0]

    w1, s1 = _fold_conv_bn_im2col(*params["block1"])
    w2, s2 = _fold_conv_bn_taps(*params["block2"])
    w3, s3 = _fold_conv_bn_taps(*params["block3"])
    x_cols = _im2col_block1(x_nchw)

    m2, m3 = _tap_masks_dw(H2, W2), _tap_masks_dw(H3, W3)
    sel1, sel2 = _pool_select(H1, W1), _pool_select(H2, W2)

    feat = pl.pallas_call(
        _features_kernel,
        out_shape=jax.ShapeDtypeStruct((n, 1, CPAD), jnp.float32),
        grid=(n,),
        in_specs=[
            pl.BlockSpec((1, P1, CPAD), lambda i: (i, 0, 0)),      # per-image im2col
            pl.BlockSpec((CPAD, CPAD), lambda i: (0, 0)),          # w1
            pl.BlockSpec((1, CPAD), lambda i: (0, 0)),             # s1
            pl.BlockSpec((P2, P1), lambda i: (0, 0)),              # sel1
            pl.BlockSpec((9, CPAD, CPAD), lambda i: (0, 0, 0)),    # w2 taps
            pl.BlockSpec((1, CPAD), lambda i: (0, 0)),             # s2
            pl.BlockSpec((6, P2, CPAD), lambda i: (0, 0, 0)),      # m2 masks
            pl.BlockSpec((P3, P2), lambda i: (0, 0)),              # sel2
            pl.BlockSpec((9, CPAD, CPAD), lambda i: (0, 0, 0)),    # w3 taps
            pl.BlockSpec((1, CPAD), lambda i: (0, 0)),             # s3
            pl.BlockSpec((6, P3, CPAD), lambda i: (0, 0, 0)),      # m3 masks
        ],
        out_specs=pl.BlockSpec((1, 1, CPAD), lambda i: (i, 0, 0)),
        scratch_shapes=[
            pltpu.VMEM((POOL_ROWS, CPAD), SLAB_DT),   # pool shift slab (reused by both pools)
            pltpu.VMEM((PP2, CPAD), SLAB_DT),         # block-2 conv input (with margins)
            pltpu.VMEM((PP3, CPAD), SLAB_DT),         # block-3 conv input (with margins)
        ],
        compiler_params=pltpu.CompilerParams(dimension_semantics=("parallel",)),
    )(x_cols, w1, s1, sel1, w2, s2, m2, sel2, w3, s3, m3)

    feat = feat.reshape(n, CPAD)

    vmem = pl.BlockSpec(memory_space=pltpu.MemorySpace.VMEM)
    logits = pl.pallas_call(
        _classifier_kernel,
        out_shape=jax.ShapeDtypeStruct((n, NUM_CLASSES), jnp.float32),
        in_specs=[vmem] * 5,
        out_specs=vmem,
    )(feat, params["fc1_w"], params["fc1_b"], params["fc2_w"], params["fc2_b"])
    return logits


# ----------------------------------------------------------------------------
# Deterministic synthetic parameters (shapes from SimpleTestCNN.__init__)
# ----------------------------------------------------------------------------
def init_params(key, num_classes=10):
    keys = jax.random.split(key, 16)
    ki = iter(keys)

    def conv_block(cin, cout):
        w = 0.1 * jax.random.normal(next(ki), (cout, cin, 3, 3), jnp.float32)
        b = 0.05 * jax.random.normal(next(ki), (cout,), jnp.float32)
        gamma = 1.0 + 0.1 * jax.random.normal(next(ki), (cout,), jnp.float32)
        beta = 0.1 * jax.random.normal(next(ki), (cout,), jnp.float32)
        mean = 0.1 * jax.random.normal(next(ki), (cout,), jnp.float32)
        var = 1.0 + 0.1 * jnp.abs(jax.random.normal(jax.random.fold_in(key, cout),
                                                    (cout,), jnp.float32))
        return (w, b, gamma, beta, mean, var)

    params = {
        "block1": conv_block(3, 32),
        "block2": conv_block(32, 64),
        "block3": conv_block(64, 128),
        # nn.Linear(128, 64): stored as (in, out) so y = x @ W + b
        "fc1_w": 0.1 * jax.random.normal(jax.random.fold_in(key, 101), (128, 64), jnp.float32),
        "fc1_b": 0.05 * jax.random.normal(jax.random.fold_in(key, 102), (1, 64), jnp.float32),
        # nn.Linear(64, num_classes)
        "fc2_w": 0.1 * jax.random.normal(jax.random.fold_in(key, 103), (64, num_classes), jnp.float32),
        "fc2_b": 0.05 * jax.random.normal(jax.random.fold_in(key, 104), (1, num_classes), jnp.float32),
    }
    return params


if __name__ == "__main__":
    key = jax.random.PRNGKey(0)
    k_params, k_x = jax.random.split(key)

    params = init_params(k_params, num_classes=NUM_CLASSES)
    # PyTorch-convention NCHW input: batch=2, channels=3, spatial=16x16
    x = jax.random.normal(k_x, (2, 3, 16, 16), jnp.float32)

    logits = simple_test_cnn_forward(params, x)
    logits = jax.block_until_ready(logits)

    assert logits.shape == (2, NUM_CLASSES), logits.shape
    assert bool(jnp.all(jnp.isfinite(logits)))
    print("KERNEL_OK")
</pallas_src>

<mosaic_0001>
module attributes {stable_mosaic.version = 11 : i64} {
  func.func @_classifier_kernel(%arg0: memref<2x128xf32, #tpu.memory_space<vmem>>, %arg1: memref<128x64xf32, #tpu.memory_space<vmem>>, %arg2: memref<1x64xf32, #tpu.memory_space<vmem>>, %arg3: memref<64x10xf32, #tpu.memory_space<vmem>>, %arg4: memref<1x10xf32, #tpu.memory_space<vmem>>, %arg5: memref<2x10xf32, #tpu.memory_space<vmem>>) attributes {dimension_semantics = [], scalar_prefetch = 0 : i64, scratch_operands = 0 : i64, tpu.core_type = #tpu.core_type<tc>} {
    %c0 = arith.constant 0 : index
    %c0_0 = arith.constant 0 : index
    %0 = vector.load %arg0[%c0, %c0_0] : memref<2x128xf32, #tpu.memory_space<vmem>>, vector<2x128xf32>
    %c0_1 = arith.constant 0 : index
    %c0_2 = arith.constant 0 : index
    %1 = vector.load %arg1[%c0_1, %c0_2] : memref<128x64xf32, #tpu.memory_space<vmem>>, vector<128x64xf32>
    %cst = arith.constant dense<0.000000e+00> : vector<2x64xf32>
    %2 = tpu.matmul %0, %1, %cst {dimension_numbers = #tpu.dot_dimension_numbers<[1], [0], [0], [1], [0, 0, 1, 1], [], []>} : vector<2x128xf32>, vector<128x64xf32>, vector<2x64xf32> -> vector<2x64xf32>
    %c0_3 = arith.constant 0 : index
    %c0_4 = arith.constant 0 : index
    %3 = vector.load %arg2[%c0_3, %c0_4] : memref<1x64xf32, #tpu.memory_space<vmem>>, vector<1x64xf32>
    %4 = vector.broadcast %3 : vector<1x64xf32> to vector<2x64xf32>
    %5 = arith.addf %2, %4 : vector<2x64xf32>
    %cst_5 = arith.constant 0.000000e+00 : f32
    %6 = vector.broadcast %cst_5 : f32 to vector<2x64xf32>
    %7 = arith.maximumf %5, %6 : vector<2x64xf32>
    %c0_6 = arith.constant 0 : index
    %c0_7 = arith.constant 0 : index
    %8 = vector.load %arg3[%c0_6, %c0_7] : memref<64x10xf32, #tpu.memory_space<vmem>>, vector<64x10xf32>
    %cst_8 = arith.constant dense<0.000000e+00> : vector<2x10xf32>
    %9 = tpu.matmul %7, %8, %cst_8 {dimension_numbers = #tpu.dot_dimension_numbers<[1], [0], [0], [1], [0, 0, 1, 1], [], []>} : vector<2x64xf32>, vector<64x10xf32>, vector<2x10xf32> -> vector<2x10xf32>
    %c0_9 = arith.constant 0 : index
    %c0_10 = arith.constant 0 : index
    %10 = vector.load %arg4[%c0_9, %c0_10] : memref<1x10xf32, #tpu.memory_space<vmem>>, vector<1x10xf32>
    %11 = vector.broadcast %10 : vector<1x10xf32> to vector<2x10xf32>
    %12 = arith.addf %9, %11 : vector<2x10xf32>
    %c0_11 = arith.constant 0 : index
    %c0_12 = arith.constant 0 : index
    %13 = vector.load %arg5[%c0_11, %c0_12] : memref<2x10xf32, #tpu.memory_space<vmem>>, vector<2x10xf32>
    tpu.vector_store %arg5[%c0_11, %c0_12], %12 {strides = array<i32>} : memref<2x10xf32, #tpu.memory_space<vmem>>, vector<2x10xf32>,
    return
  }
}

module attributes {stable_mosaic.version = 11 : i64} {
  func.func @_features_kernel(%arg0: i32, %arg1: memref<1x256x128xbf16, #tpu.memory_space<vmem>>, %arg2: memref<128x128xbf16, #tpu.memory_space<vmem>>, %arg3: memref<1x128xf32, #tpu.memory_space<vmem>>, %arg4: memref<64x256xbf16, #tpu.memory_space<vmem>>, %arg5: memref<9x128x128xbf16, #tpu.memory_space<vmem>>, %arg6: memref<1x128xf32, #tpu.memory_space<vmem>>, %arg7: memref<6x64x128xbf16, #tpu.memory_space<vmem>>, %arg8: memref<16x64xbf16, #tpu.memory_space<vmem>>, %arg9: memref<9x128x128xbf16, #tpu.memory_space<vmem>>, %arg10: memref<1x128xf32, #tpu.memory_space<vmem>>, %arg11: memref<6x16x128xbf16, #tpu.memory_space<vmem>>, %arg12: memref<1x1x128xf32, #tpu.memory_space<vmem>>, %arg13: memref<280x128xbf16, #tpu.memory_space<vmem>>, %arg14: memref<96x128xbf16, #tpu.memory_space<vmem>>, %arg15: memref<32x128xbf16, #tpu.memory_space<vmem>>) attributes {dimension_semantics = [#tpu.dimension_semantics<parallel>], iteration_bounds = array<i64: 2>, scalar_prefetch = 0 : i64, scratch_operands = 3 : i64, tpu.core_type = #tpu.core_type<tc>, window_params = [{transform_indices = @transform_0, window_bounds = array<i64: 1, 256, 128>}, {pipeline_mode = #tpu.pipeline_mode<synchronous>, transform_indices = @transform_1, window_bounds = array<i64: 128, 128>}, {pipeline_mode = #tpu.pipeline_mode<synchronous>, transform_indices = @transform_2, window_bounds = array<i64: 1, 128>}, {pipeline_mode = #tpu.pipeline_mode<synchronous>, transform_indices = @transform_3, window_bounds = array<i64: 64, 256>}, {pipeline_mode = #tpu.pipeline_mode<synchronous>, transform_indices = @transform_4, window_bounds = array<i64: 9, 128, 128>}, {pipeline_mode = #tpu.pipeline_mode<synchronous>, transform_indices = @transform_5, window_bounds = array<i64: 1, 128>}, {pipeline_mode = #tpu.pipeline_mode<synchronous>, transform_indices = @transform_6, window_bounds = array<i64: 6, 64, 128>}, {pipeline_mode = #tpu.pipeline_mode<synchronous>, transform_indices = @transform_7, window_bounds = array<i64: 16, 64>}, {pipeline_mode = #tpu.pipeline_mode<synchronous>, transform_indices = @transform_8, window_bounds = array<i64: 9, 128, 128>}, {pipeline_mode = #tpu.pipeline_mode<synchronous>, transform_indices = @transform_9, window_bounds = array<i64: 1, 128>}, {pipeline_mode = #tpu.pipeline_mode<synchronous>, transform_indices = @transform_10, window_bounds = array<i64: 6, 16, 128>}, {transform_indices = @transform_11, window_bounds = array<i64: 1, 1, 128>}]} {
    %cst = arith.constant 0.000000e+00 : bf16
    %0 = vector.broadcast %cst : bf16 to vector<24x128xbf16>
    %c256 = arith.constant 256 : index
    %c0 = arith.constant 0 : index
    %1 = vector.load %arg13[%c256, %c0] : memref<280x128xbf16, #tpu.memory_space<vmem>>, vector<24x128xbf16>
    tpu.vector_store %arg13[%c256, %c0], %0 {strides = array<i32>} : memref<280x128xbf16, #tpu.memory_space<vmem>>, vector<24x128xbf16>,
    %cst_0 = arith.constant 0.000000e+00 : bf16
    %2 = vector.broadcast %cst_0 : bf16 to vector<16x128xbf16>
    %c0_1 = arith.constant 0 : index
    %c0_2 = arith.constant 0 : index
    %3 = vector.load %arg14[%c0_1, %c0_2] : memref<96x128xbf16, #tpu.memory_space<vmem>>, vector<16x128xbf16>
    tpu.vector_store %arg14[%c0_1, %c0_2], %2 {strides = array<i32>} : memref<96x128xbf16, #tpu.memory_space<vmem>>, vector<16x128xbf16>,
    %cst_3 = arith.constant 0.000000e+00 : bf16
    %4 = vector.broadcast %cst_3 : bf16 to vector<16x128xbf16>
    %c80 = arith.constant 80 : index
    %c0_4 = arith.constant 0 : index
    %5 = vector.load %arg14[%c80, %c0_4] : memref<96x128xbf16, #tpu.memory_space<vmem>>, vector<16x128xbf16>
    tpu.vector_store %arg14[%c80, %c0_4], %4 {strides = array<i32>} : memref<96x128xbf16, #tpu.memory_space<vmem>>, vector<16x128xbf16>,
    %cst_5 = arith.constant 0.000000e+00 : bf16
    %6 = vector.broadcast %cst_5 : bf16 to vector<8x128xbf16>
    %c0_6 = arith.constant 0 : index
    %c0_7 = arith.constant 0 : index
    %7 = vector.load %arg15[%c0_6, %c0_7] : memref<32x128xbf16, #tpu.memory_space<vmem>>, vector<8x128xbf16>
    tpu.vector_store %arg15[%c0_6, %c0_7], %6 {strides = array<i32>} : memref<32x128xbf16, #tpu.memory_space<vmem>>, vector<8x128xbf16>,
    %cst_8 = arith.constant 0.000000e+00 : bf16
    %8 = vector.broadcast %cst_8 : bf16 to vector<8x128xbf16>
    %c24 = arith.constant 24 : index
    %c0_9 = arith.constant 0 : index
    %9 = vector.load %arg15[%c24, %c0_9] : memref<32x128xbf16, #tpu.memory_space<vmem>>, vector<8x128xbf16>
    tpu.vector_store %arg15[%c24, %c0_9], %8 {strides = array<i32>} : memref<32x128xbf16, #tpu.memory_space<vmem>>, vector<8x128xbf16>,
    %c0_10 = arith.constant 0 : index
    %c0_11 = arith.constant 0 : index
    %c0_12 = arith.constant 0 : index
    %10 = vector.load %arg1[%c0_10, %c0_11, %c0_12] : memref<1x256x128xbf16, #tpu.memory_space<vmem>>, vector<1x256x128xbf16>
    %11 = vector.shape_cast %10 : vector<1x256x128xbf16> to vector<256x128xbf16>
    %c0_13 = arith.constant 0 : index
    %c0_14 = arith.constant 0 : index
    %12 = vector.load %arg2[%c0_13, %c0_14] : memref<128x128xbf16, #tpu.memory_space<vmem>>, vector<128x128xbf16>
    %cst_15 = arith.constant dense<0.000000e+00> : vector<256x128xf32>
    %13 = tpu.matmul %11, %12, %cst_15 {dimension_numbers = #tpu.dot_dimension_numbers<[1], [0], [0], [1], [0, 0, 1, 1], [], []>} : vector<256x128xbf16>, vector<128x128xbf16>, vector<256x128xf32> -> vector<256x128xf32>
    %c0_16 = arith.constant 0 : index
    %c0_17 = arith.constant 0 : index
    %14 = vector.load %arg3[%c0_16, %c0_17] : memref<1x128xf32, #tpu.memory_space<vmem>>, vector<1x128xf32>
    %15 = vector.broadcast %14 : vector<1x128xf32> to vector<256x128xf32>
    %16 = arith.addf %13, %15 : vector<256x128xf32>
    %cst_18 = arith.constant 0.000000e+00 : f32
    %17 = vector.broadcast %cst_18 : f32 to vector<256x128xf32>
    %18 = arith.maximumf %16, %17 : vector<256x128xf32>
    %19 = arith.truncf %18 : vector<256x128xf32> to vector<256x128xbf16>
    %c0_19 = arith.constant 0 : index
    %c0_20 = arith.constant 0 : index
    %20 = vector.load %arg13[%c0_19, %c0_20] : memref<280x128xbf16, #tpu.memory_space<vmem>>, vector<256x128xbf16>
    tpu.vector_store %arg13[%c0_19, %c0_20], %19 {strides = array<i32>} : memref<280x128xbf16, #tpu.memory_space<vmem>>, vector<256x128xbf16>,
    %c0_21 = arith.constant 0 : index
    %c0_22 = arith.constant 0 : index
    %21 = vector.load %arg13[%c0_21, %c0_22] : memref<280x128xbf16, #tpu.memory_space<vmem>>, vector<256x128xbf16>
    %c1 = arith.constant 1 : index
    %c0_23 = arith.constant 0 : index
    %22 = vector.load %arg13[%c1, %c0_23] : memref<280x128xbf16, #tpu.memory_space<vmem>>, vector<256x128xbf16>
    %23 = arith.maximumf %21, %22 : vector<256x128xbf16>
    %c16 = arith.constant 16 : index
    %c0_24 = arith.constant 0 : index
    %24 = vector.load %arg13[%c16, %c0_24] : memref<280x128xbf16, #tpu.memory_space<vmem>>, vector<256x128xbf16>
    %c17 = arith.constant 17 : index
    %c0_25 = arith.constant 0 : index
    %25 = vector.load %arg13[%c17, %c0_25] : memref<280x128xbf16, #tpu.memory_space<vmem>>, vector<256x128xbf16>
    %26 = arith.maximumf %24, %25 : vector<256x128xbf16>
    %27 = arith.maximumf %23, %26 : vector<256x128xbf16>
    %c0_26 = arith.constant 0 : index
    %c0_27 = arith.constant 0 : index
    %28 = vector.load %arg4[%c0_26, %c0_27] : memref<64x256xbf16, #tpu.memory_space<vmem>>, vector<64x256xbf16>
    %cst_28 = arith.constant dense<0.000000e+00> : vector<64x128xf32>
    %29 = tpu.matmul %28, %27, %cst_28 {dimension_numbers = #tpu.dot_dimension_numbers<[1], [0], [0], [1], [0, 0, 1, 1], [], []>} : vector<64x256xbf16>, vector<256x128xbf16>, vector<64x128xf32> -> vector<64x128xf32>
    %30 = arith.truncf %29 : vector<64x128xf32> to vector<64x128xbf16>
    %c16_29 = arith.constant 16 : index
    %c0_30 = arith.constant 0 : index
    %31 = vector.load %arg14[%c16_29, %c0_30] : memref<96x128xbf16, #tpu.memory_space<vmem>>, vector<64x128xbf16>
    tpu.vector_store %arg14[%c16_29, %c0_30], %30 {strides = array<i32>} : memref<96x128xbf16, #tpu.memory_space<vmem>>, vector<64x128xbf16>,
    %cst_31 = arith.constant 0.000000e+00 : f32
    %32 = vector.broadcast %cst_31 : f32 to vector<64x128xf32>
    %c7 = arith.constant 7 : index
    %c0_32 = arith.constant 0 : index
    %33 = vector.load %arg14[%c7, %c0_32] : memref<96x128xbf16, #tpu.memory_space<vmem>>, vector<64x128xbf16>
    %c0_33 = arith.constant 0 : index
    %c0_34 = arith.constant 0 : index
    %c0_35 = arith.constant 0 : index
    %34 = vector.load %arg7[%c0_33, %c0_34, %c0_35] : memref<6x64x128xbf16, #tpu.memory_space<vmem>>, vector<1x64x128xbf16>
    %35 = vector.shape_cast %34 : vector<1x64x128xbf16> to vector<64x128xbf16>
    %36 = arith.mulf %33, %35 : vector<64x128xbf16>
    %c0_36 = arith.constant 0 : index
    %c0_37 = arith.constant 0 : index
    %c0_38 = arith.constant 0 : index
    %37 = vector.load %arg5[%c0_36, %c0_37, %c0_38] : memref<9x128x128xbf16, #tpu.memory_space<vmem>>, vector<1x128x128xbf16>
    %38 = vector.shape_cast %37 : vector<1x128x128xbf16> to vector<128x128xbf16>
    %cst_39 = arith.constant dense<0.000000e+00> : vector<64x128xf32>
    %39 = tpu.matmul %36, %38, %cst_39 {dimension_numbers = #tpu.dot_dimension_numbers<[1], [0], [0], [1], [0, 0, 1, 1], [], []>} : vector<64x128xbf16>, vector<128x128xbf16>, vector<64x128xf32> -> vector<64x128xf32>
    %40 = arith.addf %32, %39 : vector<64x128xf32>
    %c8 = arith.constant 8 : index
    %c0_40 = arith.constant 0 : index
    %41 = vector.load %arg14[%c8, %c0_40] : memref<96x128xbf16, #tpu.memory_space<vmem>>, vector<64x128xbf16>
    %c1_41 = arith.constant 1 : index
    %c0_42 = arith.constant 0 : index
    %c0_43 = arith.constant 0 : index
    %42 = vector.load %arg5[%c1_41, %c0_42, %c0_43] : memref<9x128x128xbf16, #tpu.memory_space<vmem>>, vector<1x128x128xbf16>
    %43 = vector.shape_cast %42 : vector<1x128x128xbf16> to vector<128x128xbf16>
    %cst_44 = arith.constant dense<0.000000e+00> : vector<64x128xf32>
    %44 = tpu.matmul %41, %43, %cst_44 {dimension_numbers = #tpu.dot_dimension_numbers<[1], [0], [0], [1], [0, 0, 1, 1], [], []>} : vector<64x128xbf16>, vector<128x128xbf16>, vector<64x128xf32> -> vector<64x128xf32>
    %45 = arith.addf %40, %44 : vector<64x128xf32>
    %c9 = arith.constant 9 : index
    %c0_45 = arith.constant 0 : index
    %46 = vector.load %arg14[%c9, %c0_45] : memref<96x128xbf16, #tpu.memory_space<vmem>>, vector<64x128xbf16>
    %c1_46 = arith.constant 1 : index
    %c0_47 = arith.constant 0 : index
    %c0_48 = arith.constant 0 : index
    %47 = vector.load %arg7[%c1_46, %c0_47, %c0_48] : memref<6x64x128xbf16, #tpu.memory_space<vmem>>, vector<1x64x128xbf16>
    %48 = vector.shape_cast %47 : vector<1x64x128xbf16> to vector<64x128xbf16>
    %49 = arith.mulf %46, %48 : vector<64x128xbf16>
    %c2 = arith.constant 2 : index
    %c0_49 = arith.constant 0 : index
    %c0_50 = arith.constant 0 : index
    %50 = vector.load %arg5[%c2, %c0_49, %c0_50] : memref<9x128x128xbf16, #tpu.memory_space<vmem>>, vector<1x128x128xbf16>
    %51 = vector.shape_cast %50 : vector<1x128x128xbf16> to vector<128x128xbf16>
    %cst_51 = arith.constant dense<0.000000e+00> : vector<64x128xf32>
    %52 = tpu.matmul %49, %51, %cst_51 {dimension_numbers = #tpu.dot_dimension_numbers<[1], [0], [0], [1], [0, 0, 1, 1], [], []>} : vector<64x128xbf16>, vector<128x128xbf16>, vector<64x128xf32> -> vector<64x128xf32>
    %53 = arith.addf %45, %52 : vector<64x128xf32>
    %c15 = arith.constant 15 : index
    %c0_52 = arith.constant 0 : index
    %54 = vector.load %arg14[%c15, %c0_52] : memref<96x128xbf16, #tpu.memory_space<vmem>>, vector<64x128xbf16>
    %c2_53 = arith.constant 2 : index
    %c0_54 = arith.constant 0 : index
    %c0_55 = arith.constant 0 : index
    %55 = vector.load %arg7[%c2_53, %c0_54, %c0_55] : memref<6x64x128xbf16, #tpu.memory_space<vmem>>, vector<1x64x128xbf16>
    %56 = vector.shape_cast %55 : vector<1x64x128xbf16> to vector<64x128xbf16>
    %57 = arith.mulf %54, %56 : vector<64x128xbf16>
    %c3 = arith.constant 3 : index
    %c0_56 = arith.constant 0 : index
    %c0_57 = arith.constant 0 : index
    %58 = vector.load %arg5[%c3, %c0_56, %c0_57] : memref<9x128x128xbf16, #tpu.memory_space<vmem>>, vector<1x128x128xbf16>
    %59 = vector.shape_cast %58 : vector<1x128x128xbf16> to vector<128x128xbf16>
    %cst_58 = arith.constant dense<0.000000e+00> : vector<64x128xf32>
    %60 = tpu.matmul %57, %59, %cst_58 {dimension_numbers = #tpu.dot_dimension_numbers<[1], [0], [0], [1], [0, 0, 1, 1], [], []>} : vector<64x128xbf16>, vector<128x128xbf16>, vector<64x128xf32> -> vector<64x128xf32>
    %61 = arith.addf %53, %60 : vector<64x128xf32>
    %c16_59 = arith.constant 16 : index
    %c0_60 = arith.constant 0 : index
    %62 = vector.load %arg14[%c16_59, %c0_60] : memref<96x128xbf16, #tpu.memory_space<vmem>>, vector<64x128xbf16>
    %c4 = arith.constant 4 : index
    %c0_61 = arith.constant 0 : index
    %c0_62 = arith.constant 0 : index
    %63 = vector.load %arg5[%c4, %c0_61, %c0_62] : memref<9x128x128xbf16, #tpu.memory_space<vmem>>, vector<1x128x128xbf16>
    %64 = vector.shape_cast %63 : vector<1x128x128xbf16> to vector<128x128xbf16>
    %cst_63 = arith.constant dense<0.000000e+00> : vector<64x128xf32>
    %65 = tpu.matmul %62, %64, %cst_63 {dimension_numbers = #tpu.dot_dimension_numbers<[1], [0], [0], [1], [0, 0, 1, 1], [], []>} : vector<64x128xbf16>, vector<128x128xbf16>, vector<64x128xf32> -> vector<64x128xf32>
    %66 = arith.addf %61, %65 : vector<64x128xf32>
    %c17_64 = arith.constant 17 : index
    %c0_65 = arith.constant 0 : index
    %67 = vector.load %arg14[%c17_64, %c0_65] : memref<96x128xbf16, #tpu.memory_space<vmem>>, vector<64x128xbf16>
    %c3_66 = arith.constant 3 : index
    %c0_67 = arith.constant 0 : index
    %c0_68 = arith.constant 0 : index
    %68 = vector.load %arg7[%c3_66, %c0_67, %c0_68] : memref<6x64x128xbf16, #tpu.memory_space<vmem>>, vector<1x64x128xbf16>
    %69 = vector.shape_cast %68 : vector<1x64x128xbf16> to vector<64x128xbf16>
    %70 = arith.mulf %67, %69 : vector<64x128xbf16>
    %c5 = arith.constant 5 : index
    %c0_69 = arith.constant 0 : index
    %c0_70 = arith.constant 0 : index
    %71 = vector.load %arg5[%c5, %c0_69, %c0_70] : memref<9x128x128xbf16, #tpu.memory_space<vmem>>, vector<1x128x128xbf16>
    %72 = vector.shape_cast %71 : vector<1x128x128xbf16> to vector<128x128xbf16>
    %cst_71 = arith.constant dense<0.000000e+00> : vector<64x128xf32>
    %73 = tpu.matmul %70, %72, %cst_71 {dimension_numbers = #tpu.dot_dimension_numbers<[1], [0], [0], [1], [0, 0, 1, 1], [], []>} : vector<64x128xbf16>, vector<128x128xbf16>, vector<64x128xf32> -> vector<64x128xf32>
    %74 = arith.addf %66, %73 : vector<64x128xf32>
    %c23 = arith.constant 23 : index
    %c0_72 = arith.constant 0 : index
    %75 = vector.load %arg14[%c23, %c0_72] : memref<96x128xbf16, #tpu.memory_space<vmem>>, vector<64x128xbf16>
    %c4_73 = arith.constant 4 : index
    %c0_74 = arith.constant 0 : index
    %c0_75 = arith.constant 0 : index
    %76 = vector.load %arg7[%c4_73, %c0_74, %c0_75] : memref<6x64x128xbf16, #tpu.memory_space<vmem>>, vector<1x64x128xbf16>
    %77 = vector.shape_cast %76 : vector<1x64x128xbf16> to vector<64x128xbf16>
    %78 = arith.mulf %75, %77 : vector<64x128xbf16>
    %c6 = arith.constant 6 : index
    %c0_76 = arith.constant 0 : index
    %c0_77 = arith.constant 0 : index
    %79 = vector.load %arg5[%c6, %c0_76, %c0_77] : memref<9x128x128xbf16, #tpu.memory_space<vmem>>, vector<1x128x128xbf16>
    %80 = vector.shape_cast %79 : vector<1x128x128xbf16> to vector<128x128xbf16>
    %cst_78 = arith.constant dense<0.000000e+00> : vector<64x128xf32>
    %81 = tpu.matmul %78, %80, %cst_78 {dimension_numbers = #tpu.dot_dimension_numbers<[1], [0], [0], [1], [0, 0, 1, 1], [], []>} : vector<64x128xbf16>, vector<128x128xbf16>, vector<64x128xf32> -> vector<64x128xf32>
    %82 = arith.addf %74, %81 : vector<64x128xf32>
    %c24_79 = arith.constant 24 : index
    %c0_80 = arith.constant 0 : index
    %83 = vector.load %arg14[%c24_79, %c0_80] : memref<96x128xbf16, #tpu.memory_space<vmem>>, vector<64x128xbf16>
    %c7_81 = arith.constant 7 : index
    %c0_82 = arith.constant 0 : index
    %c0_83 = arith.constant 0 : index
    %84 = vector.load %arg5[%c7_81, %c0_82, %c0_83] : memref<9x128x128xbf16, #tpu.memory_space<vmem>>, vector<1x128x128xbf16>
    %85 = vector.shape_cast %84 : vector<1x128x128xbf16> to vector<128x128xbf16>
    %cst_84 = arith.constant dense<0.000000e+00> : vector<64x128xf32>
    %86 = tpu.matmul %83, %85, %cst_84 {dimension_numbers = #tpu.dot_dimension_numbers<[1], [0], [0], [1], [0, 0, 1, 1], [], []>} : vector<64x128xbf16>, vector<128x128xbf16>, vector<64x128xf32> -> vector<64x128xf32>
    %87 = arith.addf %82, %86 : vector<64x128xf32>
    %c25 = arith.constant 25 : index
    %c0_85 = arith.constant 0 : index
    %88 = vector.load %arg14[%c25, %c0_85] : memref<96x128xbf16, #tpu.memory_space<vmem>>, vector<64x128xbf16>
    %c5_86 = arith.constant 5 : index
    %c0_87 = arith.constant 0 : index
    %c0_88 = arith.constant 0 : index
    %89 = vector.load %arg7[%c5_86, %c0_87, %c0_88] : memref<6x64x128xbf16, #tpu.memory_space<vmem>>, vector<1x64x128xbf16>
    %90 = vector.shape_cast %89 : vector<1x64x128xbf16> to vector<64x128xbf16>
    %91 = arith.mulf %88, %90 : vector<64x128xbf16>
    %c8_89 = arith.constant 8 : index
    %c0_90 = arith.constant 0 : index
    %c0_91 = arith.constant 0 : index
    %92 = vector.load %arg5[%c8_89, %c0_90, %c0_91] : memref<9x128x128xbf16, #tpu.memory_space<vmem>>, vector<1x128x128xbf16>
    %93 = vector.shape_cast %92 : vector<1x128x128xbf16> to vector<128x128xbf16>
    %cst_92 = arith.constant dense<0.000000e+00> : vector<64x128xf32>
    %94 = tpu.matmul %91, %93, %cst_92 {dimension_numbers = #tpu.dot_dimension_numbers<[1], [0], [0], [1], [0, 0, 1, 1], [], []>} : vector<64x128xbf16>, vector<128x128xbf16>, vector<64x128xf32> -> vector<64x128xf32>
    %95 = arith.addf %87, %94 : vector<64x128xf32>
    %c0_93 = arith.constant 0 : index
    %c0_94 = arith.constant 0 : index
    %96 = vector.load %arg6[%c0_93, %c0_94] : memref<1x128xf32, #tpu.memory_space<vmem>>, vector<1x128xf32>
    %97 = vector.broadcast %96 : vector<1x128xf32> to vector<64x128xf32>
    %98 = arith.addf %95, %97 : vector<64x128xf32>
    %cst_95 = arith.constant 0.000000e+00 : f32
    %99 = vector.broadcast %cst_95 : f32 to vector<64x128xf32>
    %100 = arith.maximumf %98, %99 : vector<64x128xf32>
    %101 = arith.truncf %100 : vector<64x128xf32> to vector<64x128xbf16>
    %c0_96 = arith.constant 0 : index
    %c0_97 = arith.constant 0 : index
    %102 = vector.load %arg13[%c0_96, %c0_97] : memref<280x128xbf16, #tpu.memory_space<vmem>>, vector<64x128xbf16>
    tpu.vector_store %arg13[%c0_96, %c0_97], %101 {strides = array<i32>} : memref<280x128xbf16, #tpu.memory_space<vmem>>, vector<64x128xbf16>,
    %cst_98 = arith.constant 0.000000e+00 : bf16
    %103 = vector.broadcast %cst_98 : bf16 to vector<16x128xbf16>
    %c64 = arith.constant 64 : index
    %c0_99 = arith.constant 0 : index
    %104 = vector.load %arg13[%c64, %c0_99] : memref<280x128xbf16, #tpu.memory_space<vmem>>, vector<16x128xbf16>
    tpu.vector_store %arg13[%c64, %c0_99], %103 {strides = array<i32>} : memref<280x128xbf16, #tpu.memory_space<vmem>>, vector<16x128xbf16>,
    %c0_100 = arith.constant 0 : index
    %c0_101 = arith.constant 0 : index
    %105 = vector.load %arg13[%c0_100, %c0_101] : memref<280x128xbf16, #tpu.memory_space<vmem>>, vector<64x128xbf16>
    %c1_102 = arith.constant 1 : index
    %c0_103 = arith.constant 0 : index
    %106 = vector.load %arg13[%c1_102, %c0_103] : memref<280x128xbf16, #tpu.memory_space<vmem>>, vector<64x128xbf16>
    %107 = arith.maximumf %105, %106 : vector<64x128xbf16>
    %c8_104 = arith.constant 8 : index
    %c0_105 = arith.constant 0 : index
    %108 = vector.load %arg13[%c8_104, %c0_105] : memref<280x128xbf16, #tpu.memory_space<vmem>>, vector<64x128xbf16>
    %c9_106 = arith.constant 9 : index
    %c0_107 = arith.constant 0 : index
    %109 = vector.load %arg13[%c9_106, %c0_107] : memref<280x128xbf16, #tpu.memory_space<vmem>>, vector<64x128xbf16>
    %110 = arith.maximumf %108, %109 : vector<64x128xbf16>
    %111 = arith.maximumf %107, %110 : vector<64x128xbf16>
    %c0_108 = arith.constant 0 : index
    %c0_109 = arith.constant 0 : index
    %112 = vector.load %arg8[%c0_108, %c0_109] : memref<16x64xbf16, #tpu.memory_space<vmem>>, vector<16x64xbf16>
    %cst_110 = arith.constant dense<0.000000e+00> : vector<16x128xf32>
    %113 = tpu.matmul %112, %111, %cst_110 {dimension_numbers = #tpu.dot_dimension_numbers<[1], [0], [0], [1], [0, 0, 1, 1], [], []>} : vector<16x64xbf16>, vector<64x128xbf16>, vector<16x128xf32> -> vector<16x128xf32>
    %114 = arith.truncf %113 : vector<16x128xf32> to vector<16x128xbf16>
    %c8_111 = arith.constant 8 : index
    %c0_112 = arith.constant 0 : index
    %115 = vector.load %arg15[%c8_111, %c0_112] : memref<32x128xbf16, #tpu.memory_space<vmem>>, vector<16x128xbf16>
    tpu.vector_store %arg15[%c8_111, %c0_112], %114 {strides = array<i32>} : memref<32x128xbf16, #tpu.memory_space<vmem>>, vector<16x128xbf16>,
    %cst_113 = arith.constant 0.000000e+00 : f32
    %116 = vector.broadcast %cst_113 : f32 to vector<16x128xf32>
    %c3_114 = arith.constant 3 : index
    %c0_115 = arith.constant 0 : index
    %117 = vector.load %arg15[%c3_114, %c0_115] : memref<32x128xbf16, #tpu.memory_space<vmem>>, vector<16x128xbf16>
    %c0_116 = arith.constant 0 : index
    %c0_117 = arith.constant 0 : index
    %c0_118 = arith.constant 0 : index
    %118 = vector.load %arg11[%c0_116, %c0_117, %c0_118] : memref<6x16x128xbf16, #tpu.memory_space<vmem>>, vector<1x16x128xbf16>
    %119 = vector.shape_cast %118 : vector<1x16x128xbf16> to vector<16x128xbf16>
    %120 = arith.mulf %117, %119 : vector<16x128xbf16>
    %c0_119 = arith.constant 0 : index
    %c0_120 = arith.constant 0 : index
    %c0_121 = arith.constant 0 : index
    %121 = vector.load %arg9[%c0_119, %c0_120, %c0_121] : memref<9x128x128xbf16, #tpu.memory_space<vmem>>, vector<1x128x128xbf16>
    %122 = vector.shape_cast %121 : vector<1x128x128xbf16> to vector<128x128xbf16>
    %cst_122 = arith.constant dense<0.000000e+00> : vector<16x128xf32>
    %123 = tpu.matmul %120, %122, %cst_122 {dimension_numbers = #tpu.dot_dimension_numbers<[1], [0], [0], [1], [0, 0, 1, 1], [], []>} : vector<16x128xbf16>, vector<128x128xbf16>, vector<16x128xf32> -> vector<16x128xf32>
    %124 = arith.addf %116, %123 : vector<16x128xf32>
    %c4_123 = arith.constant 4 : index
    %c0_124 = arith.constant 0 : index
    %125 = vector.load %arg15[%c4_123, %c0_124] : memref<32x128xbf16, #tpu.memory_space<vmem>>, vector<16x128xbf16>
    %c1_125 = arith.constant 1 : index
    %c0_126 = arith.constant 0 : index
    %c0_127 = arith.constant 0 : index
    %126 = vector.load %arg9[%c1_125, %c0_126, %c0_127] : memref<9x128x128xbf16, #tpu.memory_space<vmem>>, vector<1x128x128xbf16>
    %127 = vector.shape_cast %126 : vector<1x128x128xbf16> to vector<128x128xbf16>
    %cst_128 = arith.constant dense<0.000000e+00> : vector<16x128xf32>
    %128 = tpu.matmul %125, %127, %cst_128 {dimension_numbers = #tpu.dot_dimension_numbers<[1], [0], [0], [1], [0, 0, 1, 1], [], []>} : vector<16x128xbf16>, vector<128x128xbf16>, vector<16x128xf32> -> vector<16x128xf32>
    %129 = arith.addf %124, %128 : vector<16x128xf32>
    %c5_129 = arith.constant 5 : index
    %c0_130 = arith.constant 0 : index
    %130 = vector.load %arg15[%c5_129, %c0_130] : memref<32x128xbf16, #tpu.memory_space<vmem>>, vector<16x128xbf16>
    %c1_131 = arith.constant 1 : index
    %c0_132 = arith.constant 0 : index
    %c0_133 = arith.constant 0 : index
    %131 = vector.load %arg11[%c1_131, %c0_132, %c0_133] : memref<6x16x128xbf16, #tpu.memory_space<vmem>>, vector<1x16x128xbf16>
    %132 = vector.shape_cast %131 : vector<1x16x128xbf16> to vector<16x128xbf16>
    %133 = arith.mulf %130, %132 : vector<16x128xbf16>
    %c2_134 = arith.constant 2 : index
    %c0_135 = arith.constant 0 : index
    %c0_136 = arith.constant 0 : index
    %134 = vector.load %arg9[%c2_134, %c0_135, %c0_136] : memref<9x128x128xbf16, #tpu.memory_space<vmem>>, vector<1x128x128xbf16>
    %135 = vector.shape_cast %134 : vector<1x128x128xbf16> to vector<128x128xbf16>
    %cst_137 = arith.constant dense<0.000000e+00> : vector<16x128xf32>
    %136 = tpu.matmul %133, %135, %cst_137 {dimension_numbers = #tpu.dot_dimension_numbers<[1], [0], [0], [1], [0, 0, 1, 1], [], []>} : vector<16x128xbf16>, vector<128x128xbf16>, vector<16x128xf32> -> vector<16x128xf32>
    %137 = arith.addf %129, %136 : vector<16x128xf32>
    %c7_138 = arith.constant 7 : index
    %c0_139 = arith.constant 0 : index
    %138 = vector.load %arg15[%c7_138, %c0_139] : memref<32x128xbf16, #tpu.memory_space<vmem>>, vector<16x128xbf16>
    %c2_140 = arith.constant 2 : index
    %c0_141 = arith.constant 0 : index
    %c0_142 = arith.constant 0 : index
    %139 = vector.load %arg11[%c2_140, %c0_141, %c0_142] : memref<6x16x128xbf16, #tpu.memory_space<vmem>>, vector<1x16x128xbf16>
    %140 = vector.shape_cast %139 : vector<1x16x128xbf16> to vector<16x128xbf16>
    %141 = arith.mulf %138, %140 : vector<16x128xbf16>
    %c3_143 = arith.constant 3 : index
    %c0_144 = arith.constant 0 : index
    %c0_145 = arith.constant 0 : index
    %142 = vector.load %arg9[%c3_143, %c0_144, %c0_145] : memref<9x128x128xbf16, #tpu.memory_space<vmem>>, vector<1x128x128xbf16>
    %143 = vector.shape_cast %142 : vector<1x128x128xbf16> to vector<128x128xbf16>
    %cst_146 = arith.constant dense<0.000000e+00> : vector<16x128xf32>
    %144 = tpu.matmul %141, %143, %cst_146 {dimension_numbers = #tpu.dot_dimension_numbers<[1], [0], [0], [1], [0, 0, 1, 1], [], []>} : vector<16x128xbf16>, vector<128x128xbf16>, vector<16x128xf32> -> vector<16x128xf32>
    %145 = arith.addf %137, %144 : vector<16x128xf32>
    %c8_147 = arith.constant 8 : index
    %c0_148 = arith.constant 0 : index
    %146 = vector.load %arg15[%c8_147, %c0_148] : memref<32x128xbf16, #tpu.memory_space<vmem>>, vector<16x128xbf16>
    %c4_149 = arith.constant 4 : index
    %c0_150 = arith.constant 0 : index
    %c0_151 = arith.constant 0 : index
    %147 = vector.load %arg9[%c4_149, %c0_150, %c0_151] : memref<9x128x128xbf16, #tpu.memory_space<vmem>>, vector<1x128x128xbf16>
    %148 = vector.shape_cast %147 : vector<1x128x128xbf16> to vector<128x128xbf16>
    %cst_152 = arith.constant dense<0.000000e+00> : vector<16x128xf32>
    %149 = tpu.matmul %146, %148, %cst_152 {dimension_numbers = #tpu.dot_dimension_numbers<[1], [0], [0], [1], [0, 0, 1, 1], [], []>} : vector<16x128xbf16>, vector<128x128xbf16>, vector<16x128xf32> -> vector<16x128xf32>
    %150 = arith.addf %145, %149 : vector<16x128xf32>
    %c9_153 = arith.constant 9 : index
    %c0_154 = arith.constant 0 : index
    %151 = vector.load %arg15[%c9_153, %c0_154] : memref<32x128xbf16, #tpu.memory_space<vmem>>, vector<16x128xbf16>
    %c3_155 = arith.constant 3 : index
    %c0_156 = arith.constant 0 : index
    %c0_157 = arith.constant 0 : index
    %152 = vector.load %arg11[%c3_155, %c0_156, %c0_157] : memref<6x16x128xbf16, #tpu.memory_space<vmem>>, vector<1x16x128xbf16>
    %153 = vector.shape_cast %152 : vector<1x16x128xbf16> to vector<16x128xbf16>
    %154 = arith.mulf %151, %153 : vector<16x128xbf16>
    %c5_158 = arith.constant 5 : index
    %c0_159 = arith.constant 0 : index
    %c0_160 = arith.constant 0 : index
    %155 = vector.load %arg9[%c5_158, %c0_159, %c0_160] : memref<9x128x128xbf16, #tpu.memory_space<vmem>>, vector<1x128x128xbf16>
    %156 = vector.shape_cast %155 : vector<1x128x128xbf16> to vector<128x128xbf16>
    %cst_161 = arith.constant dense<0.000000e+00> : vector<16x128xf32>
    %157 = tpu.matmul %154, %156, %cst_161 {dimension_numbers = #tpu.dot_dimension_numbers<[1], [0], [0], [1], [0, 0, 1, 1], [], []>} : vector<16x128xbf16>, vector<128x128xbf16>, vector<16x128xf32> -> vector<16x128xf32>
    %158 = arith.addf %150, %157 : vector<16x128xf32>
    %c11 = arith.constant 11 : index
    %c0_162 = arith.constant 0 : index
    %159 = vector.load %arg15[%c11, %c0_162] : memref<32x128xbf16, #tpu.memory_space<vmem>>, vector<16x128xbf16>
    %c4_163 = arith.constant 4 : index
    %c0_164 = arith.constant 0 : index
    %c0_165 = arith.constant 0 : index
    %160 = vector.load %arg11[%c4_163, %c0_164, %c0_165] : memref<6x16x128xbf16, #tpu.memory_space<vmem>>, vector<1x16x128xbf16>
    %161 = vector.shape_cast %160 : vector<1x16x128xbf16> to vector<16x128xbf16>
    %162 = arith.mulf %159, %161 : vector<16x128xbf16>
    %c6_166 = arith.constant 6 : index
    %c0_167 = arith.constant 0 : index
    %c0_168 = arith.constant 0 : index
    %163 = vector.load %arg9[%c6_166, %c0_167, %c0_168] : memref<9x128x128xbf16, #tpu.memory_space<vmem>>, vector<1x128x128xbf16>
    %164 = vector.shape_cast %163 : vector<1x128x128xbf16> to vector<128x128xbf16>
    %cst_169 = arith.constant dense<0.000000e+00> : vector<16x128xf32>
    %165 = tpu.matmul %162, %164, %cst_169 {dimension_numbers = #tpu.dot_dimension_numbers<[1], [0], [0], [1], [0, 0, 1, 1], [], []>} : vector<16x128xbf16>, vector<128x128xbf16>, vector<16x128xf32> -> vector<16x128xf32>
    %166 = arith.addf %158, %165 : vector<16x128xf32>
    %c12 = arith.constant 12 : index
    %c0_170 = arith.constant 0 : index
    %167 = vector.load %arg15[%c12, %c0_170] : memref<32x128xbf16, #tpu.memory_space<vmem>>, vector<16x128xbf16>
    %c7_171 = arith.constant 7 : index
    %c0_172 = arith.constant 0 : index
    %c0_173 = arith.constant 0 : index
    %168 = vector.load %arg9[%c7_171, %c0_172, %c0_173] : memref<9x128x128xbf16, #tpu.memory_space<vmem>>, vector<1x128x128xbf16>
    %169 = vector.shape_cast %168 : vector<1x128x128xbf16> to vector<128x128xbf16>
    %cst_174 = arith.constant dense<0.000000e+00> : vector<16x128xf32>
    %170 = tpu.matmul %167, %169, %cst_174 {dimension_numbers = #tpu.dot_dimension_numbers<[1], [0], [0], [1], [0, 0, 1, 1], [], []>} : vector<16x128xbf16>, vector<128x128xbf16>, vector<16x128xf32> -> vector<16x128xf32>
    %171 = arith.addf %166, %170 : vector<16x128xf32>
    %c13 = arith.constant 13 : index
    %c0_175 = arith.constant 0 : index
    %172 = vector.load %arg15[%c13, %c0_175] : memref<32x128xbf16, #tpu.memory_space<vmem>>, vector<16x128xbf16>
    %c5_176 = arith.constant 5 : index
    %c0_177 = arith.constant 0 : index
    %c0_178 = arith.constant 0 : index
    %173 = vector.load %arg11[%c5_176, %c0_177, %c0_178] : memref<6x16x128xbf16, #tpu.memory_space<vmem>>, vector<1x16x128xbf16>
    %174 = vector.shape_cast %173 : vector<1x16x128xbf16> to vector<16x128xbf16>
    %175 = arith.mulf %172, %174 : vector<16x128xbf16>
    %c8_179 = arith.constant 8 : index
    %c0_180 = arith.constant 0 : index
    %c0_181 = arith.constant 0 : index
    %176 = vector.load %arg9[%c8_179, %c0_180, %c0_181] : memref<9x128x128xbf16, #tpu.memory_space<vmem>>, vector<1x128x128xbf16>
    %177 = vector.shape_cast %176 : vector<1x128x128xbf16> to vector<128x128xbf16>
    %cst_182 = arith.constant dense<0.000000e+00> : vector<16x128xf32>
    %178 = tpu.matmul %175, %177, %cst_182 {dimension_numbers = #tpu.dot_dimension_numbers<[1], [0], [0], [1], [0, 0, 1, 1], [], []>} : vector<16x128xbf16>, vector<128x128xbf16>, vector<16x128xf32> -> vector<16x128xf32>
    %179 = arith.addf %171, %178 : vector<16x128xf32>
    %c0_183 = arith.constant 0 : index
    %c0_184 = arith.constant 0 : index
    %180 = vector.load %arg10[%c0_183, %c0_184] : memref<1x128xf32, #tpu.memory_space<vmem>>, vector<1x128xf32>
    %181 = vector.broadcast %180 : vector<1x128xf32> to vector<16x128xf32>
    %182 = arith.addf %179, %181 : vector<16x128xf32>
    %cst_185 = arith.constant 0.000000e+00 : f32
    %183 = vector.broadcast %cst_185 : f32 to vector<16x128xf32>
    %184 = arith.maximumf %182, %183 : vector<16x128xf32>
    %cst_186 = arith.constant dense<0.000000e+00> : vector<128xf32>
    %185 = vector.multi_reduction <add>, %184, %cst_186 [0] : vector<16x128xf32> to vector<128xf32>
    %186 = vector.shape_cast %185 : vector<128xf32> to vector<1x128xf32>
    %cst_187 = arith.constant 1.600000e+01 : f32
    %187 = vector.broadcast %cst_187 : f32 to vector<1x128xf32>
    %188 = arith.divf %186, %187 : vector<1x128xf32>
    %c0_188 = arith.constant 0 : index
    %c0_189 = arith.constant 0 : index
    %c0_190 = arith.constant 0 : index
    %189 = vector.load %arg12[%c0_188, %c0_189, %c0_190] : memref<1x1x128xf32, #tpu.memory_space<vmem>>, vector<1x1x128xf32>
    %190 = vector.shape_cast %189 : vector<1x1x128xf32> to vector<1x128xf32>
    %191 = vector.shape_cast %188 : vector<1x128xf32> to vector<1x1x128xf32>
    tpu.vector_store %arg12[%c0_188, %c0_189, %c0_190], %191 {strides = array<i32>} : memref<1x1x128xf32, #tpu.memory_space<vmem>>, vector<1x1x128xf32>,
    return
  }
  func.func @transform_0(%arg0: i32) -> (i32, i32, i32) {
    %c0_i32 = arith.constant 0 : i32
    %c0_i32_0 = arith.constant 0 : i32
    %c0_i32_1 = arith.constant 0 : i32
    return %arg0, %c0_i32, %c0_i32_0 : i32, i32, i32
  }
  func.func @transform_1(%arg0: i32) -> (i32, i32) {
    %c0_i32 = arith.constant 0 : i32
    %c0_i32_0 = arith.constant 0 : i32
    %c0_i32_1 = arith.constant 0 : i32
    return %c0_i32, %c0_i32_0 : i32, i32
  }
  func.func @transform_2(%arg0: i32) -> (i32, i32) {
    %c0_i32 = arith.constant 0 : i32
    %c0_i32_0 = arith.constant 0 : i32
    %c0_i32_1 = arith.constant 0 : i32
    return %c0_i32, %c0_i32_0 : i32, i32
  }
  func.func @transform_3(%arg0: i32) -> (i32, i32) {
    %c0_i32 = arith.constant 0 : i32
    %c0_i32_0 = arith.constant 0 : i32
    %c0_i32_1 = arith.constant 0 : i32
    return %c0_i32, %c0_i32_0 : i32, i32
  }
  func.func @transform_4(%arg0: i32) -> (i32, i32, i32) {
    %c0_i32 = arith.constant 0 : i32
    %c0_i32_0 = arith.constant 0 : i32
    %c0_i32_1 = arith.constant 0 : i32
    %c0_i32_2 = arith.constant 0 : i32
    return %c0_i32, %c0_i32_0, %c0_i32_1 : i32, i32, i32
  }
  func.func @transform_5(%arg0: i32) -> (i32, i32) {
    %c0_i32 = arith.constant 0 : i32
    %c0_i32_0 = arith.constant 0 : i32
    %c0_i32_1 = arith.constant 0 : i32
    return %c0_i32, %c0_i32_0 : i32, i32
  }
  func.func @transform_6(%arg0: i32) -> (i32, i32, i32) {
    %c0_i32 = arith.constant 0 : i32
    %c0_i32_0 = arith.constant 0 : i32
    %c0_i32_1 = arith.constant 0 : i32
    %c0_i32_2 = arith.constant 0 : i32
    return %c0_i32, %c0_i32_0, %c0_i32_1 : i32, i32, i32
  }
  func.func @transform_7(%arg0: i32) -> (i32, i32) {
    %c0_i32 = arith.constant 0 : i32
    %c0_i32_0 = arith.constant 0 : i32
    %c0_i32_1 = arith.constant 0 : i32
    return %c0_i32, %c0_i32_0 : i32, i32
  }
  func.func @transform_8(%arg0: i32) -> (i32, i32, i32) {
    %c0_i32 = arith.constant 0 : i32
    %c0_i32_0 = arith.constant 0 : i32
    %c0_i32_1 = arith.constant 0 : i32
    %c0_i32_2 = arith.constant 0 : i32
    return %c0_i32, %c0_i32_0, %c0_i32_1 : i32, i32, i32
  }
  func.func @transform_9(%arg0: i32) -> (i32, i32) {
    %c0_i32 = arith.constant 0 : i32
    %c0_i32_0 = arith.constant 0 : i32
    %c0_i32_1 = arith.constant 0 : i32
    return %c0_i32, %c0_i32_0 : i32, i32
  }
  func.func @transform_10(%arg0: i32) -> (i32, i32, i32) {
    %c0_i32 = arith.constant 0 : i32
    %c0_i32_0 = arith.constant 0 : i32
    %c0_i32_1 = arith.constant 0 : i32
    %c0_i32_2 = arith.constant 0 : i32
    return %c0_i32, %c0_i32_0, %c0_i32_1 : i32, i32, i32
  }
  func.func @transform_11(%arg0: i32) -> (i32, i32, i32) {
    %c0_i32 = arith.constant 0 : i32
    %c0_i32_0 = arith.constant 0 : i32
    %c0_i32_1 = arith.constant 0 : i32
    return %arg0, %c0_i32, %c0_i32_0 : i32, i32, i32
  }
}

</mosaic_0001>

<bundles_post_ra>
// kernel: simple_test_cnn_forward.3
= control target key start
LH: loop header
LB: loop body
LE: loop exit
PB: predicated region body
PF: predicated region fallthrough
CT: control target
= control target key end

     0   :  { %v368_v3 = vmov 0.0|0.0   ;;  %vm369_vm0 = vmmov 0   ;;  %v370_v6 = vmov 0.0   ;;  %s495_s0 = inlined_call_operand.vmem [shape: f32[2,128], index: 0, kind: input, shape index: {}]   ;;  %s496_s1 = inlined_call_operand.vmem [shape: f32[128,64], index: 1, kind: input, shape index: {}]   ;;  %s497_s2 = inlined_call_operand.vmem [shape: f32[1,64], index: 2, kind: input, shape index: {}]   ;;  %s498_s3 = inlined_call_operand.vmem [shape: f32[64,10], index: 3, kind: input, shape index: {}]   ;;  %s499_s4 = inlined_call_operand.vmem [shape: f32[1,10], index: 4, kind: input, shape index: {}]   ;;  %s500_s5 = inlined_call_operand.hbm [shape: f32[2,10], index: 5, kind: output, shape index: {}]  }
   0x1   :  { %v22_v0 = vld [vmem:[%s496_s1] sm:$0xff]  ;;  %v23_v1 = vld [vmem:[%s496_s1 + $0x8] sm:$0xff]  ;;  %v24_v2 = vld [vmem:[%s496_s1 + $0x10] sm:$0xff]  ;;  %304 = vmatprep.subr.bf16.mxu0 %v368_v3  ;;  %282 = vmatprep.mubr.msk.f32.mxu0 %vm369_vm0, %v370_v6 }
   0x2   :  { %v305_v4 = vpack.c.bf16 %v23_v1, %v22_v0  ;;  %v25_v5 = vld [vmem:[%s496_s1 + $0x18] sm:$0xff]  ;;  %328 = vmatprep.subr.bf16.mxu1 %v368_v3  ;;  %301 = vmatprep.mubr.msk.f32.mxu1 %vm369_vm0, %v370_v6  ;;  %v26_v8 = vld [vmem:[%s496_s1 + $0x20] sm:$0xff]  ;;  %v27_v9 = vld [vmem:[%s496_s1 + $0x28] sm:$0xff] }
   0x3   :  { %v308_v7 = vpack.c.bf16 %v25_v5, %v24_v2  ;;  %v116_v10 = vld [vmem:[%s498_s3] sm:$0xff]  ;;  %v117_v11 = vld [vmem:[%s498_s3 + $0x8] sm:$0xff]  ;;  %v118_v12 = vld [vmem:[%s498_s3 + $0x10] sm:$0xff]  ;;  %v311_v14 = vpack.c.bf16 %v27_v9, %v26_v8 }
   0x4   :  { %306 = vmatpush3.bf16.msra.mxu0 %v305_v4  ;;  %v119_v13 = vld [vmem:[%s498_s3 + $0x18] sm:$0xff]  ;;  %v329_v15 = vpack.c.bf16 %v117_v11, %v116_v10  ;;  %v28_v16 = vld [vmem:[%s496_s1 + $0x30] sm:$0xff] }
   0x5   :  { %307 = vmatprep.subr.bf16.mxu0 %v368_v3  ;;  %v29_v17 = vld [vmem:[%s496_s1 + $0x38] sm:$0xff] }
   0x8   :  { %309 = vmatpush3.bf16.msra.mxu0 %v308_v7 }
   0x9   :  { %310 = vmatprep.subr.bf16.mxu0 %v368_v3 }
   0xa   :  { %10 = vsyncpa [#allocation3], 0  ;;  %330 = vmatpush3.bf16.msra.mxu1 %v329_v15  ;;  %v332_v18 = vpack.c.bf16 %v119_v13, %v118_v12  ;;  %v120_v19 = vld [vmem:[%s498_s3 + $0x20] sm:$0xff]  ;;  %v121_v20 = vld [vmem:[%s498_s3 + $0x28] sm:$0xff]  ;;  %v314_v21 = vpack.c.bf16 %v29_v17, %v28_v16  ;;  %vm131_vm1 = vcmask 523264   ;;  %s371_s20 = smov [#allocation2]  }
   0xb   :  { %331 = vmatprep.subr.bf16.mxu1 %v368_v3  ;;  %v30_v22 = vld [vmem:[%s496_s1 + $0x40] sm:$0xff]  ;;  %v31_v23 = vld [vmem:[%s496_s1 + $0x48] sm:$0xff]  ;;  %v335_v24 = vpack.c.bf16 %v121_v20, %v120_v19  ;;  %v32_v26 = vld [vmem:[%s496_s1 + $0x50] sm:$0xff]  ;;  %s213_s21 = sshll.u32 %s371_s20, 4  ;;  %vm205_vm2 = vcmask 74752   ;;  %s214_s21 = int_to_ptr.vmem [resolvable:$true] %s213_s21 }
   0xc   :  { %312 = vmatpush3.bf16.msra.mxu0 %v311_v14  ;;  %v317_v25 = vpack.c.bf16 %v31_v23, %v30_v22  ;;  %v33_v27 = vld [vmem:[%s496_s1 + $0x58] sm:$0xff]  ;;  %v34_v29 = vld [vmem:[%s496_s1 + $0x60] sm:$0xff]  ;;  %v35_v30 = vld [vmem:[%s496_s1 + $0x68] sm:$0xff]  ;;  %p349_p1 = scmp.lt.s32.totalorder %s214_s21, %s214_s21 }
   0xd   :  { %313 = vmatprep.subr.bf16.mxu0 %v368_v3  ;;  %v320_v28 = vpack.c.bf16 %v33_v27, %v32_v26  ;;  %v323_v31 = vpack.c.bf16 %v35_v30, %v34_v29  ;;  %v36_v32 = vld [vmem:[%s496_s1 + $0x70] sm:$0xff]  ;;  %v37_v33 = vld [vmem:[%s496_s1 + $0x78] sm:$0xff]  ;;  %v21_v35 = vld [vmem:[%s495_s0] sm:$0x3] }
   0xe   :  { %333 = vmatpush3.bf16.msra.mxu1 %v332_v18  ;;  %v326_v34 = vpack.c.bf16 %v37_v33, %v36_v32  ;;  %v122_v36 = vld [vmem:[%s498_s3 + $0x30] sm:$0xff]  ;;  %v123_v37 = vld [vmem:[%s498_s3 + $0x38] sm:$0xff]  ;;  %v221_v39 = vld [vmem:[%s497_s2] ss:$0 sm:$0xff]  ;;  %s344_s3 = scalar_lea.vmem %s214_s21, 32 }
   0xf   :  { %334 = vmatprep.subr.bf16.mxu1 %v368_v3  ;;  %v338_v38 = vpack.c.bf16 %v123_v37, %v122_v36  ;;  %v222_v44 = vld [vmem:[%s499_s4] ss:$0 sm:$0xff]  ;;  %p345_p0 = scmp.ne.s32.totalorder %s214_s21, %s344_s3  ;;  %p350_p2 = scmp.lt.s32.totalorder %s344_s3, %s344_s3 }
  0x10   :  { %315 = vmatpush3.bf16.msra.mxu0 %v314_v21 }
  0x11   :  { %316 = vmatprep.subr.bf16.mxu0 %v368_v3  ;;  %p351_p3 = por %p350_p2, %p349_p1 }
  0x12   :  { %336 = vmatpush3.bf16.msra.mxu1 %v335_v24 }
  0x13   :  { %337 = vmatprep.subr.bf16.mxu1 %v368_v3  ;;  %p352_p4 = pnand %p351_p3, %p345_p0 }
  0x14   :  { %318 = vmatpush3.bf16.msra.mxu0 %v317_v25 }
  0x15   :  { %319 = vmatprep.subr.bf16.mxu0 %v368_v3 }
  0x16   :  { %339 = vmatpush3.bf16.msra.mxu1 %v338_v38 }
  0x18   :  { %321 = vmatpush3.bf16.msra.mxu0 %v320_v28 }
  0x19   :  { %322 = vmatprep.subr.bf16.mxu0 %v368_v3 }
  0x1c   :  { %324 = vmatpush3.bf16.msra.mxu0 %v323_v31 }
  0x1d   :  { %325 = vmatprep.subr.bf16.mxu0 %v368_v3 }
  0x20   :  { %327 = vmatpush3.bf16.msra.mxu0 %v326_v34 }
  0x23   :  { %283 = vmatmul.mubr.f32.vlgmr.msra.gmra.mrb[0].mxu0 %v21_v35 }
  0xf6   :  { %v111_v40 = vpop.f32.mrb[0].mxu0 }
  0xf7   :  { %v112_v41 = vadd.f32 %v221_v39, %v111_v40  ;;  %v284_v42 = vpop.f32.mrb[1].mxu0 }
  0xf9   :  { %v115_v43 = vmax.f32 %v112_v41, 0.0 }
  0xfb   :  { %302 = vmatmul.mubr.msk.f32.vlgmr.msra.gmra.mrb[0].mxu1 %vm131_vm1, %v115_v43 }
 0x1ce   :  { %v201_v45 = vpop.f32.mrb[0].mxu1 }
 0x1cf   :  { %v202_v46 = vadd.f32 %v222_v44, %v201_v45  ;;  %v303_v47 = vpop.f32.mrb[1].mxu1 }
 0x1d1   :  { %206 = vst.msk [vmem:[#allocation2] sm:$0x3] %vm205_vm2, %v202_v46 }
 0x1d2   :  { %355 = shalt.err (!%p352_p4)
}
 0x1d3   :  { %s356_s23 = scalar_lea.hbm %s500_s5, 32 }
 0x1d4   :  { %p357_p5 = scmp.ne.s32.totalorder %s500_s5, %s356_s23  ;;  %p360_p6 = scmp.lt.u32.totalorder %s356_s23, %s500_s5 }
 0x1d6   :  { %p362_p7 = pnand %p360_p6, %p357_p5 }
 0x1d8   :  { %365 = shalt.err (!%p362_p7)
}
 0x1d9   :  { %216 = dma.vmem_to_hbm [thread:$0]  %s214_s21, 32, %s500_s5, [#allocation3]  }
 0x1da   :  { %366 = dma.done.wait [#allocation3], 32  }
 0x1db   :  { %367 = vsyncadd [#allocation3], 4294967264 }
 0x1dc   :  { %220 = vsyncpa [#allocation3], 1 }

// kernel: simple_test_cnn_forward.2
= control target key start
LH: loop header
LB: loop body
LE: loop exit
PB: predicated region body
PF: predicated region fallthrough
CT: control target
= control target key end

     0   :  { %s7426_s17 = smov 0   ;;  %s8895_s0 = inlined_call_operand.vmem [shape: bf16[2,256,128], index: 0, kind: input, shape index: {}]   ;;  %s8896_s1 = inlined_call_operand.vmem [shape: bf16[128,128], index: 1, kind: input, shape index: {}]   ;;  %s8897_s2 = inlined_call_operand.vmem [shape: f32[1,128], index: 2, kind: input, shape index: {}]   ;;  %s8898_s3 = inlined_call_operand.vmem [shape: bf16[64,256], index: 3, kind: input, shape index: {}]   ;;  %s8899_s4 = inlined_call_operand.vmem [shape: bf16[9,128,128], index: 4, kind: input, shape index: {}]   ;;  %s8900_s5 = inlined_call_operand.vmem [shape: f32[1,128], index: 5, kind: input, shape index: {}]   ;;  %s8901_s6 = inlined_call_operand.vmem [shape: bf16[6,64,128], index: 6, kind: input, shape index: {}]   ;;  %s8902_s7 = inlined_call_operand.vmem [shape: bf16[16,64], index: 7, kind: input, shape index: {}]   ;;  %s8903_s8 = inlined_call_operand.vmem [shape: bf16[9,128,128], index: 8, kind: input, shape index: {}]   ;;  %s8904_s9 = inlined_call_operand.vmem [shape: f32[1,128], index: 9, kind: input, shape index: {}]   ;;  %s8905_s10 = inlined_call_operand.vmem [shape: bf16[6,16,128], index: 10, kind: input, shape index: {}]   ;;  %s8906_s11 = inlined_call_operand.vmem [shape: f32[2,1,128], index: 11, kind: output, shape index: {}]  }
   0x1 LB: > { %s5606_s18 = sadd.s32 4294967295, %s7361_s17   ;;  %p5610_p0 = scmp.ge.s32.totalorder %s7361_s17, 1  ;;  %s7361_s17 = sphi %s7426_s17, %s21_s17  }
   0x2   : > { %p337_p1 = scmp.lt.s32.totalorder %s7361_s17, 3 }
   0x4   : > { %p338_p2 = pnand %p5610_p0, %p337_p1 }
   0x5   : > { %v7140_v0 = vld [vmem:[%s8896_s1] sm:$0xff] (!%p338_p2)   ;;  %p375_p3 = scmp.lt.s32.totalorder (!%p338_p2), %s5606_s18, 1  ;;  %v7141_v1 = vld [vmem:[%s8896_s1 + $0x8] sm:$0xff] (!%p338_p2)   ;;  %v7142_v2 = vld [vmem:[%s8896_s1 + $0x10] sm:$0xff] (!%p338_p2)   ;;  %v7363_v24 = vmov (!%p338_p2), 0   ;;  %vm2156_vm3 = vcmask (!%p338_p2), 1043456  }
   0x6   : > { %341 = sbr.rel (%p338_p2) target bundleno = 1877 (0x755), region = 64  ;;  %6609 = vmatprep.subr.bf16.mxu0 (!%p338_p2), %v7140_v0  ;;  %v7143_v3 = vld [vmem:[%s8896_s1 + $0x18] sm:$0xff] (!%p338_p2)   ;;  %v7144_v5 = vld [vmem:[%s8896_s1 + $0x20] sm:$0xff] (!%p338_p2)   ;;  %v7145_v6 = vld [vmem:[%s8896_s1 + $0x28] sm:$0xff] (!%p338_p2)   ;;  %384 = vst [vmem:[#allocation2 + $0x80] sm:$0xf] (!%p338_p2), %v7363_v24 }
   0x7   : > { %6610 = vmatpush3.bf16.msra.mxu0 (!%p338_p2), %v7140_v0  ;;  %v7146_v7 = vld [vmem:[%s8896_s1 + $0x30] sm:$0xff] (!%p338_p2)   ;;  %v7147_v8 = vld [vmem:[%s8896_s1 + $0x38] sm:$0xff] (!%p338_p2)   ;;  %385 = vst [vmem:[#allocation2 + $0x84] sm:$0xf] (!%p338_p2), %v7363_v24  ;;  %386 = vst [vmem:[#allocation2 + $0x88] sm:$0xf] (!%p338_p2), %v7363_v24 }
   0x8   : > { %6611 = vmatprep.subr.bf16.mxu0 (!%p338_p2), %v7141_v1  ;;  %387 = vst [vmem:[#allocation3] sm:$0xff] (!%p338_p2), %v7363_v24  ;;  %388 = vst [vmem:[#allocation3 + $0x28] sm:$0xff] (!%p338_p2), %v7363_v24  ;;  %v7492_v25 = vld [vmem:[%s8897_s2] ss:$0 sm:$0xff] (!%p338_p2)  ;;  %vm976_vm0 = vsmask.f32 (!%p338_p2), 3328 }
   0x9   : > { %389 = vst [vmem:[#allocation4] sm:$0xf] (!%p338_p2), %v7363_v24  ;;  %390 = vst [vmem:[#allocation4 + $0x8] sm:$0xf0] (!%p338_p2), %v7363_v24  ;;  %vm977_vm1 = vsmask.f32 (!%p338_p2), 7440 }
   0xa   : > { %vm7518_vm2 = vmor (!%p338_p2), %vm976_vm0, %vm977_vm1  ;;  %vm2283_vm4 = vsmask.f32 (!%p338_p2), 4352  ;;  %vm2737_vm5 = vsmask.f32 (!%p338_p2), 7424  ;;  %vm2796_vm6 = vsmask.f32 (!%p338_p2), 256 }
   0xb   : > { %6612 = vmatpush3.bf16.msra.mxu0 (!%p338_p2), %v7141_v1  ;;  %vm7365_vm7 = vmmov (!%p338_p2), 0   ;;  %vm4263_vm8 = vcmask (!%p338_p2), 523264   ;;  %vm4370_vm9 = vcmask (!%p338_p2), 1045504   ;;  %vm5428_vm10 = vsmask.f32 (!%p338_p2), 1280 }
   0xc   : > { %6613 = vmatprep.subr.bf16.mxu0 (!%p338_p2), %v7142_v2  ;;  %vm4464_vm11 = vsmask.f32 (!%p338_p2), 6400  ;;  %vm4609_vm12 = vsmask.f32 (!%p338_p2), 5376  ;;  %vm5165_vm13 = vsmask.f32 (!%p338_p2), 2304 }
   0xd   : > { %s8910_s18 = smov (!%p375_p3, %s5606_s18), 1  ;;  %vm5295_vm14 = vcmask 1041408  }
   0xe   : > { %s6192_s25 = sshll.u32 %s8910_s18, 7  ;;  %s382_s22 = scalar_lea.vmem %s8906_s11, %s8910_s18 }
   0xf   : > { %s7449_s28 = scalar_lea.vmem %s8895_s0, %s6192_s25  ;;  %6614 = vmatpush3.bf16.msra.mxu0 %v7142_v2 }
  0x10   : > { %v7148_v4 = vld [vmem:[%s7449_s28] sm:$0xff]   ;;  %6615 = vmatprep.subr.bf16.mxu0 %v7143_v3  ;;  %v7149_v9 = vld [vmem:[%s7449_s28 + $0x8] sm:$0xff]   ;;  %v7150_v10 = vld [vmem:[%s7449_s28 + $0x10] sm:$0xff]  }
  0x11   : > { %6625 = vmatprep.mubr.bf16.mxu0 %v7148_v4  ;;  %v7151_v11 = vld [vmem:[%s7449_s28 + $0x18] sm:$0xff]   ;;  %v7152_v12 = vld [vmem:[%s7449_s28 + $0x20] sm:$0xff]   ;;  %v7153_v13 = vld [vmem:[%s7449_s28 + $0x28] sm:$0xff]  }
  0x12   : > { %v7154_v14 = vld [vmem:[%s7449_s28 + $0x30] sm:$0xff]   ;;  %v7155_v15 = vld [vmem:[%s7449_s28 + $0x38] sm:$0xff]   ;;  %v7156_v16 = vld [vmem:[%s7449_s28 + $0x40] sm:$0xff]  }
  0x13   : > { %6616 = vmatpush3.bf16.msra.mxu0 %v7143_v3  ;;  %v7157_v17 = vld [vmem:[%s7449_s28 + $0x48] sm:$0xff]   ;;  %v7158_v18 = vld [vmem:[%s7449_s28 + $0x50] sm:$0xff]   ;;  %v7159_v19 = vld [vmem:[%s7449_s28 + $0x58] sm:$0xff]  }
  0x14   : > { %6617 = vmatprep.subr.bf16.mxu0 %v7144_v5  ;;  %v7160_v20 = vld [vmem:[%s7449_s28 + $0x60] sm:$0xff]   ;;  %v7161_v21 = vld [vmem:[%s7449_s28 + $0x68] sm:$0xff]   ;;  %v7162_v22 = vld [vmem:[%s7449_s28 + $0x70] sm:$0xff]  }
  0x15   : > { %v7163_v23 = vld [vmem:[%s7449_s28 + $0x78] sm:$0xff]  }
  0x17   : > { %6618 = vmatpush3.bf16.msra.mxu0 %v7144_v5 }
  0x18   : > { %6619 = vmatprep.subr.bf16.mxu0 %v7145_v6 }
  0x1b   : > { %6620 = vmatpush3.bf16.msra.mxu0 %v7145_v6 }
  0x1c   : > { %6621 = vmatprep.subr.bf16.mxu0 %v7146_v7 }
  0x1f   : > { %6622 = vmatpush3.bf16.msra.mxu0 %v7146_v7 }
  0x20   : > { %6623 = vmatprep.subr.bf16.mxu0 %v7147_v8 }
  0x23   : > { %6624 = vmatpush3.bf16.msra.mxu0 %v7147_v8 }
  0x26   : > { %6626 = vmatmul.mubr.bf16.vlgmr.msra.gmra.mrb[0].mxu0 %v7149_v9 }
  0x27   : > { %6629 = vmatprep.mubr.bf16.mxu0 %v7150_v10 }
  0x2e   : > { %6630 = vmatmul.mubr.bf16.gmra.mrb[4].mxu0 %v7151_v11 }
  0x2f   : > { %6633 = vmatprep.mubr.bf16.mxu0 %v7152_v12 }
  0x36   : > { %6634 = vmatmul.mubr.bf16.gmra.mrb[8].mxu0 %v7153_v13 }
  0x37   : > { %6637 = vmatprep.mubr.bf16.mxu0 %v7154_v14 }
  0x3e   : > { %6638 = vmatmul.mubr.bf16.gmra.mrb[12].mxu0 %v7155_v15 }
  0x3f   : > { %6641 = vmatprep.mubr.bf16.mxu0 %v7156_v16 }
  0x46   : > { %6642 = vmatmul.mubr.bf16.gmra.mrb[16].mxu0 %v7157_v17 }
  0x47   : > { %6645 = vmatprep.mubr.bf16.mxu0 %v7158_v18 }
  0x4e   : > { %6646 = vmatmul.mubr.bf16.gmra.mrb[20].mxu0 %v7159_v19 }
  0x4f   : > { %6649 = vmatprep.mubr.bf16.mxu0 %v7160_v20 }
  0x56   : > { %6650 = vmatmul.mubr.bf16.gmra.mrb[24].mxu0 %v7161_v21 }
  0x57   : > { %6653 = vmatprep.mubr.bf16.mxu0 %v7162_v22  ;;  %v7272_v22 = vld [vmem:[%s8902_s7] sm:$0xff]  }
  0x5e   : > { %6654 = vmatmul.mubr.bf16.gmra.mrb[28].mxu0 %v7163_v23 }
  0xf9   : > { %v6627_v26 = vpop.f32.mrb[0].mxu0 }
  0xfa   : > { %v633_v27 = vadd.f32 %v6627_v26, %v7492_v25  ;;  %v624_v28 = vpop.f32.mrb[1].mxu0 }
  0xfb   : > { %v625_v29 = vadd.f32 %v7492_v25, %v624_v28  ;;  %v6628_v30 = vpop.f32.mrb[2].mxu0 }
  0xfc   : > { %v636_v31 = vadd.f32 %v6628_v30, %v7492_v25  ;;  %v627_v32 = vpop.f32.mrb[3].mxu0  ;;  %v753_v34 = vmax.f32 %v633_v27, 0.0 }
  0xfd   : > { %v628_v33 = vadd.f32 %v7492_v25, %v627_v32  ;;  %v751_v36 = vmax.f32 %v625_v29, 0.0 }
  0xfe   : > { %v754_v35 = vmax.f32 %v636_v31, 0.0 }
  0xff   : > { %v752_v37 = vmax.f32 %v628_v33, 0.0 }
 0x100   : > { %v6241_v38 = vpack.c.bf16 %v754_v35, %v753_v34 }
 0x101   : > { %v6236_v39 = vpack.c.bf16 %v752_v37, %v751_v36  ;;  %v6631_v40 = vpop.f32.mrb[4].mxu0 }
 0x102   : > { %6333 = vst [vmem:[#allocation2 + $0x8] sm:$0xff] %v6241_v38   ;;  %v649_v41 = vadd.f32 %v6631_v40, %v7492_v25  ;;  %v640_v42 = vpop.f32.mrb[5].mxu0 }
 0x103   : > { %6237 = vst [vmem:[#allocation2] sm:$0xff] %v6236_v39   ;;  %v641_v43 = vadd.f32 %v7492_v25, %v640_v42  ;;  %v6632_v44 = vpop.f32.mrb[6].mxu0 }
 0x104   : > { %v652_v45 = vadd.f32 %v6632_v44, %v7492_v25  ;;  %v643_v46 = vpop.f32.mrb[7].mxu0  ;;  %v757_v48 = vmax.f32 %v649_v41, 0.0 }
 0x105   : > { %v644_v47 = vadd.f32 %v7492_v25, %v643_v46  ;;  %v755_v50 = vmax.f32 %v641_v43, 0.0 }
 0x106   : > { %v758_v49 = vmax.f32 %v652_v45, 0.0 }
 0x107   : > { %v756_v51 = vmax.f32 %v644_v47, 0.0 }
 0x108   : > { %v6251_v52 = vpack.c.bf16 %v758_v49, %v757_v48 }
 0x109   : > { %v6246_v53 = vpack.c.bf16 %v756_v51, %v755_v50  ;;  %v6635_v54 = vpop.f32.mrb[8].mxu0  ;;  %v7502_v55 = vld [vmem:[#allocation2 + $0x8] sm:$0xf]  ;;  %v1370_v12 = vld [vmem:[#allocation2 + $0xc] sm:$0xf] }
 0x10a   : > { %6335 = vst [vmem:[#allocation2 + $0x18] sm:$0xff] %v6251_v52   ;;  %v665_v56 = vadd.f32 %v6635_v54, %v7492_v25  ;;  %v656_v57 = vpop.f32.mrb[9].mxu0  ;;  %v943_v58 = vld [vmem:[#allocation2] sm:$0xf]  ;;  %v7505_v59 = vld [vmem:[#allocation2 + $0x4] sm:$0xf] }
 0x10b   : > { %v999_v60 = vshll.u32 %v7502_v55, 16  ;;  %6334 = vst [vmem:[#allocation2 + $0x10] sm:$0xff] %v6246_v53   ;;  %v657_v61 = vadd.f32 %v7492_v25, %v656_v57  ;;  %v6636_v62 = vpop.f32.mrb[10].mxu0  ;;  %v980_v63 = vshrl.u32 %v943_v58, 16  ;;  %v983_v0 = vshll.u32 %v943_v58, 16 }
 0x10c   : > { %v989_v1 = vshll.u32 %v7505_v59, 16  ;;  %v761_v2 = vmax.f32 %v665_v56, 0.0  ;;  %v668_v3 = vadd.f32 %v6636_v62, %v7492_v25  ;;  %v659_v4 = vpop.f32.mrb[11].mxu0  ;;  %v993_v5 = vshrl.u32 %v7505_v59, 16  ;;  %v1369_v7 = vld [vmem:[#allocation2 + $0x8] sm:$0xf] }
 0x10d   : > { %v7512_v6 = vrot.slane %v999_v60, 5  ;;  %v759_v8 = vmax.f32 %v657_v61, 0.0  ;;  %v660_v9 = vadd.f32 %v7492_v25, %v659_v4  ;;  %v982_v10 = vrot.slane %v980_v63, 4  ;;  %v7528_v46 = vld [vmem:[#allocation2 + $0xc] sm:$0xf] }
 0x10e   : > { %v985_v11 = vrot.slane %v983_v0, 5  ;;  %v762_v13 = vmax.f32 %v668_v3, 0.0  ;;  %v991_v14 = vrot.slane %v989_v1, 5  ;;  %v995_v15 = vrot.slane %v993_v5, 4 }
 0x10f   : > { %v1003_v16 = vshrl.u32 %v7502_v55, 16  ;;  %v760_v17 = vmax.f32 %v660_v9, 0.0  ;;  %v1403_v19 = vshrl.u32 %v1369_v7, 16  ;;  %v1406_v20 = vshll.u32 %v1369_v7, 16 }
 0x110   : > { %v986_v18 = vor.u32 %v985_v11, %v982_v10  ;;  %v6261_v21 = vpack.c.bf16 %v762_v13, %v761_v2  ;;  %v996_v23 = vor.u32 %v995_v15, %v991_v14  ;;  %v1412_v27 = vshll.u32 %v1370_v12, 16 }
 0x111   : > { %v1005_v26 = vrot.slane %v1003_v16, 4  ;;  %v6256_v28 = vpack.c.bf16 %v760_v17, %v759_v8  ;;  %v6639_v29 = vpop.f32.mrb[12].mxu0  ;;  %v1405_v31 = vrot.slane %v1403_v19, 4  ;;  %v1408_v32 = vrot.slane %v1406_v20, 5 }
 0x112   : > { %v987_v30 = vrot.slane %v986_v18, 4  ;;  %6337 = vst [vmem:[#allocation2 + $0x28] sm:$0xff] %v6261_v21   ;;  %v681_v33 = vadd.f32 %v6639_v29, %v7492_v25  ;;  %v672_v34 = vpop.f32.mrb[13].mxu0  ;;  %v997_v35 = vrot.slane %v996_v23, 4  ;;  %v1371_v40 = vld [vmem:[#allocation2 + $0x10] sm:$0xf] }
 0x113   : > { %v1006_v36 = vor.u32 %v1005_v26, %v7512_v6  ;;  %6336 = vst [vmem:[#allocation2 + $0x20] sm:$0xff] %v6256_v28   ;;  %v673_v37 = vadd.f32 %v7492_v25, %v672_v34  ;;  %v6640_v38 = vpop.f32.mrb[14].mxu0  ;;  %v1409_v41 = vor.u32 %v1408_v32, %v1405_v31  ;;  %v1416_v42 = vshrl.u32 %v1370_v12, 16  ;;  %v7568_v31 = vld [vmem:[#allocation2 + $0x18] sm:$0xf] }
 0x114   : > { %v992_v39 = vsel %vm7518_vm2, %v987_v30, %v991_v14  ;;  %v765_v43 = vmax.f32 %v681_v33, 0.0  ;;  %v684_v44 = vadd.f32 %v6640_v38, %v7492_v25  ;;  %v675_v45 = vpop.f32.mrb[15].mxu0  ;;  %v1002_v47 = vsel %vm7518_vm2, %v997_v35, %v7512_v6  ;;  %v7542_v6 = vld [vmem:[#allocation2 + $0x10] sm:$0xf] }
 0x115   : > { %v1414_v48 = vrot.slane %v1412_v27, 5  ;;  %v763_v49 = vmax.f32 %v673_v37, 0.0  ;;  %v676_v50 = vadd.f32 %v7492_v25, %v675_v45  ;;  %v7534_v51 = vmax.bf16 %v992_v39, %v943_v58  ;;  %v1372_v27 = vld [vmem:[#allocation2 + $0x14] sm:$0xf] }
 0x116   : > { %v1410_v52 = vrot.slane %v1409_v41, 4  ;;  %v766_v53 = vmax.f32 %v684_v44, 0.0  ;;  %v1418_v54 = vrot.slane %v1416_v42, 4  ;;  %v1422_v56 = vshll.u32 %v1371_v40, 16 }
 0x117   : > { %v1426_v57 = vshrl.u32 %v1371_v40, 16  ;;  %v764_v60 = vmax.f32 %v676_v50, 0.0  ;;  %v1007_v62 = vrot.slane %v1006_v36, 4  ;;  %v1009_v63 = vshll.u32 %v7528_v46, 16 }
 0x118   : > { %v1415_v61 = vsel %vm7518_vm2, %v1410_v52, %v1414_v48  ;;  %v6271_v0 = vpack.c.bf16 %v766_v53, %v765_v43  ;;  %v1419_v1 = vor.u32 %v1418_v54, %v1414_v48  ;;  %v1424_v2 = vrot.slane %v1422_v56, 5  ;;  %v7578_v56 = vld [vmem:[#allocation2 + $0x14] sm:$0xf] }
 0x119   : > { %v1428_v3 = vrot.slane %v1426_v57, 4  ;;  %v6266_v4 = vpack.c.bf16 %v764_v60, %v763_v49  ;;  %v6643_v5 = vpop.f32.mrb[16].mxu0  ;;  %v7540_v58 = vmax.bf16 %v1415_v61, %v7502_v55  ;;  %v1011_v7 = vrot.slane %v1009_v63, 5 }
 0x11a   : > { %v1013_v8 = vshrl.u32 %v7528_v46, 16  ;;  %v7545_v9 = vld [vmem:[#allocation2 + $0x20] sm:$0xf]  ;;  %v7547_v10 = vld [vmem:[#allocation2 + $0x24] sm:$0xf]  ;;  %6339 = vst [vmem:[#allocation2 + $0x38] sm:$0xff] %v6271_v0   ;;  %v697_v12 = vadd.f32 %v6643_v5, %v7492_v25  ;;  %v7556_v16 = vmax.bf16 %v1002_v47, %v7505_v59 }
 0x11b   : > { %v7549_v11 = vld [vmem:[#allocation2 + $0x20] sm:$0xf]  ;;  %v1429_v13 = vor.u32 %v1428_v3, %v1424_v2  ;;  %v7552_v14 = vld [vmem:[#allocation2 + $0x24] sm:$0xf]  ;;  %6338 = vst [vmem:[#allocation2 + $0x30] sm:$0xff] %v6266_v4   ;;  %v688_v15 = vpop.f32.mrb[17].mxu0  ;;  %v1790_v21 = vmax.bf16 %v7540_v58, %v7534_v51  ;;  %v1012_v23 = vsel %vm7518_vm2, %v1007_v62, %v1011_v7 }
 0x11c   : > { %4092 = vst [vmem:[#allocation2 + $0x20] sm:$0xf] %v7363_v24  ;;  %v1420_v17 = vrot.slane %v1419_v1, 4  ;;  %v1015_v18 = vrot.slane %v1013_v8, 4  ;;  %4093 = vst [vmem:[#allocation2 + $0x24] sm:$0xf] %v7363_v24  ;;  %v689_v19 = vadd.f32 %v7492_v25, %v688_v15  ;;  %v7581_v57 = vmax.bf16 %v1012_v23, %v7502_v55 }
 0x11d   : > { %v6644_v20 = vpop.f32.mrb[18].mxu0  ;;  %v1019_v26 = vshll.u32 %v7542_v6, 16  ;;  %v769_v28 = vmax.f32 %v697_v12, 0.0  ;;  %v1430_v35 = vrot.slane %v1429_v13, 4  ;;  %v1432_v38 = vshll.u32 %v1372_v27, 16 }
 0x11e   : > { %v700_v59 = vadd.f32 %v6644_v20, %v7492_v25  ;;  %v691_v29 = vpop.f32.mrb[19].mxu0  ;;  %v1425_v30 = vsel %vm7518_vm2, %v1420_v17, %v1424_v2  ;;  %v1016_v24 = vor.u32 %v1015_v18, %v1011_v7  ;;  %v1436_v39 = vshrl.u32 %v1372_v27, 16  ;;  %v7592_v55 = vld [vmem:[#allocation2 + $0x18] sm:$0xf] }
 0x11f   : > { %v692_v32 = vadd.f32 %v7492_v25, %v691_v29  ;;  %v1759_v33 = vmax.bf16 %v1425_v30, %v7528_v46  ;;  %v1021_v34 = vrot.slane %v1019_v26, 5  ;;  %v767_v40 = vmax.f32 %v689_v19, 0.0  ;;  %v7606_v26 = vld [vmem:[#allocation2 + $0x1c] sm:$0xf] }
 0x120   : > { %v770_v36 = vmax.f32 %v700_v59, 0.0  ;;  %v1017_v37 = vrot.slane %v1016_v24, 4  ;;  %v1442_v42 = vshll.u32 %v7568_v31, 16  ;;  %v1023_v43 = vshrl.u32 %v7542_v6, 16 }
 0x121   : > { %v768_v41 = vmax.f32 %v692_v32, 0.0  ;;  %v6647_v45 = vpop.f32.mrb[20].mxu0  ;;  %v1434_v48 = vrot.slane %v1432_v38, 5  ;;  %v1438_v49 = vrot.slane %v1436_v39, 4  ;;  %v1791_v54 = vmax.bf16 %v1759_v33, %v7556_v16 }
 0x122   : > { %v6281_v44 = vpack.c.bf16 %v770_v36, %v769_v28  ;;  %v1022_v47 = vsel %vm7518_vm2, %v1017_v37, %v1021_v34  ;;  %v713_v52 = vadd.f32 %v6647_v45, %v7492_v25  ;;  %v704_v53 = vpop.f32.mrb[21].mxu0  ;;  %v7590_v4 = vrot.slane %v1442_v42, 5 }
 0x123   : > { %v6276_v50 = vpack.c.bf16 %v768_v41, %v767_v40  ;;  %v705_v60 = vadd.f32 %v7492_v25, %v704_v53  ;;  %v6648_v61 = vpop.f32.mrb[22].mxu0  ;;  %v7585_v62 = vmax.bf16 %v1022_v47, %v7528_v46  ;;  %v1435_v63 = vsel %vm7518_vm2, %v1430_v35, %v1434_v48 }
 0x124   : > { %6341 = vst [vmem:[#allocation2 + $0x48] sm:$0xff] %v6281_v44   ;;  %v1439_v0 = vor.u32 %v1438_v49, %v1434_v48  ;;  %v773_v1 = vmax.f32 %v713_v52, 0.0  ;;  %v716_v2 = vadd.f32 %v6648_v61, %v7492_v25  ;;  %v707_v3 = vpop.f32.mrb[23].mxu0  ;;  %v1025_v5 = vrot.slane %v1023_v43, 4 }
 0x125   : > { %6340 = vst [vmem:[#allocation2 + $0x40] sm:$0xff] %v6276_v50   ;;  %v708_v7 = vadd.f32 %v7492_v25, %v707_v3  ;;  %v7596_v46 = vmax.bf16 %v1435_v63, %v7542_v6  ;;  %v1029_v12 = vshll.u32 %v7578_v56, 16  ;;  %v771_v13 = vmax.f32 %v705_v60, 0.0 }
 0x126   : > { %v1440_v8 = vrot.slane %v1439_v0, 4  ;;  %v774_v15 = vmax.f32 %v716_v2, 0.0  ;;  %v1026_v16 = vor.u32 %v1025_v5, %v1021_v34  ;;  %v1033_v17 = vshrl.u32 %v7578_v56, 16 }
 0x127   : > { %v772_v18 = vmax.f32 %v708_v7, 0.0  ;;  %v7603_v20 = vrot.slane %v1029_v12, 5  ;;  %v1039_v23 = vshll.u32 %v7592_v55, 16  ;;  %v7616_v32 = vcombine.low %v1790_v21, %v1791_v54 }
 0x128   : > { %v1445_v19 = vsel %vm7518_vm2, %v1440_v8, %v7590_v4  ;;  %v6291_v27 = vpack.c.bf16 %v774_v15, %v773_v1  ;;  %v1027_v59 = vrot.slane %v1026_v16, 4  ;;  %v7611_v29 = vrot.slane %v1033_v17, 4 }
 0x129   : > { %v7609_v28 = vmax.bf16 %v1445_v19, %v7578_v56  ;;  %v6286_v30 = vpack.c.bf16 %v772_v18, %v771_v13  ;;  %v6651_v24 = vpop.f32.mrb[24].mxu0  ;;  %v1792_v33 = vmax.bf16 %v7596_v46, %v7581_v57  ;;  %v7620_v34 = vrot.slane %v1039_v23, 5  ;;  %v7166_v18 = vld [vmem:[%s8898_s3 + $0x4] ss:$8 sps:$4 sm:$0xff]  }
 0x12a   : > { %6343 = vst [vmem:[#allocation2 + $0x58] sm:$0xff] %v6291_v27   ;;  %v729_v35 = vadd.f32 %v6651_v24, %v7492_v25  ;;  %v720_v36 = vpop.f32.mrb[25].mxu0  ;;  %v1446_v39 = vshrl.u32 %v7568_v31, 16  ;;  %v1452_v51 = vshll.u32 %v7606_v26, 16  ;;  %v1032_v43 = vsel %vm7518_vm2, %v1027_v59, %v7603_v20  ;;  %1998 = vmatprep.mubr.bf16.mxu1 %v7166_v18 }
 0x12b   : > { %v7623_v37 = vld [vmem:[#allocation2 + $0x48] sm:$0xf]  ;;  %v1793_v38 = vmax.bf16 %v7609_v28, %v7585_v62  ;;  %6342 = vst [vmem:[#allocation2 + $0x50] sm:$0xff] %v6286_v30   ;;  %v721_v58 = vadd.f32 %v7492_v25, %v720_v36  ;;  %v6652_v21 = vpop.f32.mrb[26].mxu0  ;;  %v1036_v44 = vor.u32 %v7611_v29, %v7603_v20  ;;  %v7640_v54 = vld [vmem:[#allocation2 + $0x4c] sm:$0xf] }
 0x12c   : > { %v959_v40 = vld [vmem:[#allocation2 + $0x40] sm:$0xf]  ;;  %v7630_v41 = vld [vmem:[#allocation2 + $0x44] sm:$0xf]  ;;  %v1159_v42 = vshll.u32 %v7623_v37, 16  ;;  %v777_v45 = vmax.f32 %v729_v35, 0.0  ;;  %v732_v47 = vadd.f32 %v6652_v21, %v7492_v25  ;;  %v7655_v21 = vmax.bf16 %v1032_v43, %v7542_v6 }
 0x12d   : > { %v723_v48 = vpop.f32.mrb[27].mxu0  ;;  %v1139_v49 = vshll.u32 %v959_v40, 16  ;;  %v1143_v50 = vshrl.u32 %v959_v40, 16  ;;  %v775_v52 = vmax.f32 %v721_v58, 0.0  ;;  %v1149_v60 = vshll.u32 %v7630_v41, 16 }
 0x12e   : > { %v724_v53 = vadd.f32 %v7492_v25, %v723_v48  ;;  %v1153_v61 = vshrl.u32 %v7630_v41, 16  ;;  %v778_v63 = vmax.f32 %v732_v47, 0.0  ;;  %v1161_v2 = vrot.slane %v1159_v42, 5  ;;  %v1385_v3 = vld [vmem:[#allocation2 + $0x48] sm:$0xf] }
 0x12f   : > { %v7644_v0 = vrot.slane %v1139_v49, 5  ;;  %v1145_v1 = vrot.slane %v1143_v50, 4  ;;  %v1151_v7 = vrot.slane %v1149_v60, 5  ;;  %v1163_v12 = vshrl.u32 %v7623_v37, 16  ;;  %v1386_v50 = vld [vmem:[#allocation2 + $0x4c] sm:$0xf] }
 0x130   : > { %v776_v5 = vmax.f32 %v724_v53, 0.0  ;;  %v1155_v8 = vrot.slane %v1153_v61, 4  ;;  %v6301_v13 = vpack.c.bf16 %v778_v63, %v777_v45  ;;  %v1169_v16 = vshll.u32 %v7640_v54, 16 }
 0x131   : > { %v1146_v15 = vor.u32 %v1145_v1, %v7644_v0  ;;  %v1173_v17 = vshrl.u32 %v7640_v54, 16  ;;  %v6655_v23 = vpop.f32.mrb[28].mxu0  ;;  %v1165_v59 = vrot.slane %v1163_v12, 4  ;;  %v1562_v30 = vshll.u32 %v1385_v3, 16 }
 0x132   : > { %v6296_v19 = vpack.c.bf16 %v776_v5, %v775_v52  ;;  %v1156_v27 = vor.u32 %v1155_v8, %v1151_v7  ;;  %6345 = vst [vmem:[#allocation2 + $0x68] sm:$0xff] %v6301_v13   ;;  %v745_v24 = vadd.f32 %v6655_v23, %v7492_v25  ;;  %v736_v35 = vpop.f32.mrb[29].mxu0  ;;  %v1171_v58 = vrot.slane %v1169_v16, 5  ;;  %v1387_v61 = vld [vmem:[#allocation2 + $0x50] sm:$0xf] }
 0x133   : > { %v1147_v36 = vrot.slane %v1146_v15, 4  ;;  %v737_v42 = vadd.f32 %v7492_v25, %v736_v35  ;;  %v6656_v45 = vpop.f32.mrb[30].mxu0  ;;  %v1166_v48 = vor.u32 %v1165_v59, %v1161_v2  ;;  %v1175_v49 = vrot.slane %v1173_v17, 4  ;;  %v7668_v23 = vld [vmem:[#allocation2 + $0x50] sm:$0xf] }
 0x134   : > { %6344 = vst [vmem:[#allocation2 + $0x60] sm:$0xff] %v6296_v19   ;;  %v1157_v47 = vrot.slane %v1156_v27, 4  ;;  %v748_v52 = vadd.f32 %v6656_v45, %v7492_v25  ;;  %v739_v53 = vpop.f32.mrb[31].mxu0  ;;  %v7661_v63 = vrot.slane %v1562_v30, 5  ;;  %v1566_v6 = vshrl.u32 %v1385_v3, 16 }
 0x135   : > { %v1152_v60 = vsel %vm7518_vm2, %v1147_v36, %v1151_v7  ;;  %v781_v43 = vmax.f32 %v745_v24, 0.0  ;;  %v779_v1 = vmax.f32 %v737_v42, 0.0  ;;  %v740_v5 = vadd.f32 %v7492_v25, %v739_v53  ;;  %v7672_v30 = vld [vmem:[#allocation2 + $0x54] sm:$0xf] }
 0x136   : > { %v1162_v8 = vsel %vm7518_vm2, %v1157_v47, %v1161_v2  ;;  %v782_v12 = vmax.f32 %v748_v52, 0.0  ;;  %v1167_v13 = vrot.slane %v1166_v48, 4  ;;  %v7666_v15 = vmax.bf16 %v1152_v60, %v959_v40  ;;  %v1388_v48 = vld [vmem:[#allocation2 + $0x54] sm:$0xf]  ;;  %v1389_v60 = vld [vmem:[#allocation2 + $0x58] sm:$0xf] }
 0x137   : > { %v1568_v16 = vrot.slane %v1566_v6, 4  ;;  %v780_v17 = vmax.f32 %v740_v5, 0.0  ;;  %v1572_v18 = vshll.u32 %v1386_v50, 16  ;;  %v1576_v19 = vshrl.u32 %v1386_v50, 16 }
 0x138   : > { %v1582_v7 = vshll.u32 %v1387_v61, 16  ;;  %v6311_v27 = vpack.c.bf16 %v782_v12, %v781_v43  ;;  %v1352_v3 = vmax.bf16 %v1162_v8, %v7630_v41  ;;  %v1586_v25 = vshrl.u32 %v1387_v61, 16 }
 0x139   : > { %v1569_v59 = vor.u32 %v1568_v16, %v7661_v63  ;;  %v6306_v2 = vpack.c.bf16 %v780_v17, %v779_v1  ;;  %v1574_v24 = vrot.slane %v1572_v18, 5  ;;  %v1578_v35 = vrot.slane %v1576_v19, 4 }
 0x13a   : > { %v1584_v40 = vrot.slane %v1582_v7, 5  ;;  %6347 = vst [vmem:[#allocation2 + $0x78] sm:$0xff] %v6311_v27   ;;  %v1588_v42 = vrot.slane %v1586_v25, 4  ;;  %v1176_v45 = vor.u32 %v1175_v49, %v1171_v58  ;;  %v1179_v47 = vshll.u32 %v7668_v23, 16 }
 0x13b   : > { %v1570_v36 = vrot.slane %v1569_v59, 4  ;;  %6346 = vst [vmem:[#allocation2 + $0x70] sm:$0xff] %v6306_v2   ;;  %v1579_v50 = vor.u32 %v1578_v35, %v1574_v24  ;;  %v1172_v41 = vsel %vm7518_vm2, %v1167_v13, %v1171_v58  ;;  %v1183_v52 = vshrl.u32 %v7668_v23, 16  ;;  %v7688_v59 = vld [vmem:[#allocation2 + $0x58] sm:$0xf] }
 0x13c   : > { %v1193_v53 = vshrl.u32 %v7672_v30, 16  ;;  %v1589_v6 = vor.u32 %v1588_v42, %v1584_v40  ;;  %v1177_v43 = vrot.slane %v1176_v45, 4  ;;  %v1181_v1 = vrot.slane %v1179_v47, 5 }
 0x13d   : > { %v1575_v61 = vsel %vm7518_vm2, %v1570_v36, %v1574_v24  ;;  %v1580_v49 = vrot.slane %v1579_v50, 4  ;;  %v1592_v8 = vshll.u32 %v1388_v48, 16  ;;  %v1596_v12 = vshrl.u32 %v1388_v48, 16 }
 0x13e   : > { %v1774_v5 = vmax.bf16 %v1575_v61, %v7623_v37  ;;  %v1590_v16 = vrot.slane %v1589_v6, 4  ;;  %v1182_v58 = vsel %vm7518_vm2, %v1177_v43, %v1181_v1  ;;  %v1353_v13 = vmax.bf16 %v1172_v41, %v7623_v37  ;;  %v7694_v37 = vld [vmem:[#allocation2 + $0x5c] sm:$0xf]  ;;  %v7706_v6 = vld [vmem:[#allocation2 + $0x60] sm:$0xf] }
 0x13f   : > { %v1602_v17 = vshll.u32 %v1389_v60, 16  ;;  %v1585_v18 = vsel %vm7518_vm2, %v1580_v49, %v1584_v40  ;;  %v1594_v7 = vrot.slane %v1592_v8, 5  ;;  %v1606_v27 = vshrl.u32 %v1389_v60, 16  ;;  %v1390_v41 = vld [vmem:[#allocation2 + $0x5c] sm:$0xf] }
 0x140   : > { %v1806_v19 = vmax.bf16 %v1774_v5, %v7666_v15  ;;  %v1775_v25 = vmax.bf16 %v1585_v18, %v7640_v54  ;;  %v1354_v2 = vmax.bf16 %v1182_v58, %v7640_v54  ;;  %v1598_v24 = vrot.slane %v1596_v12, 4 }
 0x141   : > { %v1604_v35 = vrot.slane %v1602_v17, 5  ;;  %v1595_v36 = vsel %vm7518_vm2, %v1590_v16, %v1594_v7  ;;  %v1185_v42 = vrot.slane %v1183_v52, 4  ;;  %v1189_v40 = vshll.u32 %v7672_v30, 16 }
 0x142   : > { %v1195_v45 = vrot.slane %v1193_v53, 4  ;;  %v1807_v15 = vmax.bf16 %v1775_v25, %v1352_v3  ;;  %v1599_v47 = vor.u32 %v1598_v24, %v1594_v7  ;;  %v1776_v48 = vmax.bf16 %v1595_v36, %v7668_v23 }
 0x143   : > { %v1199_v50 = vshll.u32 %v7688_v59, 16  ;;  %v5679_v54 = vcombine.low %v1792_v33, %v1793_v38  ;;  %v1186_v60 = vor.u32 %v1185_v42, %v1181_v1  ;;  %v1191_v61 = vrot.slane %v1189_v40, 5 }
 0x144   : > { %v1203_v52 = vshrl.u32 %v7688_v59, 16  ;;  %v5686_v3 = vcombine.low %v1806_v19, %v1807_v15  ;;  %v1600_v53 = vrot.slane %v1599_v47, 4  ;;  %v1808_v43 = vmax.bf16 %v1776_v48, %v1353_v13  ;;  %v7737_v15 = vld [vmem:[#allocation2 + $0x60] sm:$0xf] }
 0x145   : > { %v1213_v49 = vshrl.u32 %v7694_v37, 16  ;;  %v1187_v5 = vrot.slane %v1186_v60, 4  ;;  %v1196_v8 = vor.u32 %v1195_v45, %v1191_v61  ;;  %v1608_v12 = vrot.slane %v1606_v27, 4 }
 0x146   : > { %v1612_v16 = vshll.u32 %v1390_v41, 16  ;;  %6375 = vmatprep.subr.bf16.mxu1 %v5686_v3  ;;  %v1605_v57 = vsel %vm7518_vm2, %v1600_v53, %v1604_v35  ;;  %v1201_v62 = vrot.slane %v1199_v50, 5  ;;  %v1616_v46 = vshrl.u32 %v1390_v41, 16  ;;  %v7748_v53 = vld [vmem:[#allocation2 + $0x64] sm:$0xf] }
 0x147   : > { %v1622_v28 = vshll.u32 %v7706_v6, 16  ;;  %6376 = vmatpush3.bf16.msra.mxu1 %v7616_v32  ;;  %v1777_v33 = vmax.bf16 %v1605_v57, %v7672_v30  ;;  %v1192_v38 = vsel %vm7518_vm2, %v1187_v5, %v1191_v61  ;;  %v1197_v1 = vrot.slane %v1196_v8, 4 }
 0x148   : > { %v1609_v58 = vor.u32 %v1608_v12, %v1604_v35  ;;  %v1355_v13 = vmax.bf16 %v1192_v38, %v7668_v23  ;;  %v1614_v17 = vrot.slane %v1612_v16, 5  ;;  %v1618_v18 = vrot.slane %v1616_v46, 4  ;;  %v7752_v12 = vld [vmem:[#allocation2 + $0x68] sm:$0xf]  ;;  %v1392_v46 = vld [vmem:[#allocation2 + $0x64] sm:$0xf] }
 0x149   : > { %v1626_v19 = vshrl.u32 %v7706_v6, 16  ;;  %v1809_v7 = vmax.bf16 %v1777_v33, %v1354_v2  ;;  %v1202_v27 = vsel %vm7518_vm2, %v1197_v1, %v1201_v62  ;;  %v1037_v32 = vrot.slane %v1036_v44, 4  ;;  %v7757_v38 = vld [vmem:[#allocation2 + $0x1c] sm:$0xf] }
 0x14a   : > { %v1610_v25 = vrot.slane %v1609_v58, 4  ;;  %v1619_v24 = vor.u32 %v1618_v18, %v1614_v17  ;;  %v1624_v36 = vrot.slane %v1622_v28, 5  ;;  %v1448_v35 = vrot.slane %v1446_v39, 4 }
 0x14b   : > { %v1454_v23 = vrot.slane %v1452_v51, 5  ;;  %v5687_v42 = vcombine.low %v1808_v43, %v1809_v7  ;;  %v1042_v40 = vsel %vm7518_vm2, %v1037_v32, %v7620_v34  ;;  %v1456_v45 = vshrl.u32 %v7606_v26, 16 }
 0x14c   : > { %v1615_v2 = vsel %vm7518_vm2, %v1610_v25, %v1614_v17  ;;  %v1356_v20 = vmax.bf16 %v1202_v27, %v7672_v30  ;;  %v1620_v29 = vrot.slane %v1619_v24, 4  ;;  %v1449_v31 = vor.u32 %v1448_v35, %v7590_v4 }
 0x14d   : > { %v1778_v44 = vmax.bf16 %v1615_v2, %v7688_v59  ;;  %6377 = vmatprep.subr.bf16.mxu1 %v5687_v42  ;;  %v1458_v39 = vrot.slane %v1456_v45, 4  ;;  %v1462_v51 = vshll.u32 %v7549_v11, 16  ;;  %v1205_v47 = vrot.slane %v1203_v52, 4 }
 0x14e   : > { %v1209_v48 = vshll.u32 %v7694_v37, 16  ;;  %6378 = vmatpush3.bf16.msra.mxu1 %v5679_v54  ;;  %v1625_v26 = vsel %vm7518_vm2, %v1620_v29, %v1624_v36  ;;  %v1340_v30 = vmax.bf16 %v1042_v40, %v7578_v56  ;;  %v1450_v50 = vrot.slane %v1449_v31, 4 }
 0x14f   : > { %v1215_v41 = vrot.slane %v1213_v49, 4  ;;  %v1779_v60 = vmax.bf16 %v1625_v26, %v7694_v37  ;;  %v1459_v4 = vor.u32 %v1458_v39, %v1454_v23  ;;  %v7744_v61 = vrot.slane %v1462_v51, 5 }
 0x150   : > { %v1206_v6 = vor.u32 %v1205_v47, %v1201_v62  ;;  %v1810_v3 = vmax.bf16 %v1778_v44, %v1355_v13  ;;  %v1455_v52 = vsel %vm7518_vm2, %v1450_v50, %v1454_v23  ;;  %v1211_v54 = vrot.slane %v1209_v48, 5  ;;  %v7784_v50 = vld [vmem:[#allocation2 + $0x28] sm:$0xf] }
 0x151   : > { %v1219_v43 = vshll.u32 %v7737_v15, 16  ;;  %v1811_v5 = vmax.bf16 %v1779_v60, %v1356_v20  ;;  %v1460_v8 = vrot.slane %v1459_v4, 4  ;;  %v1762_v56 = vmax.bf16 %v1455_v52, %v7592_v55 }
 0x152   : > { %v1207_v49 = vrot.slane %v1206_v6, 4  ;;  %v1216_v16 = vor.u32 %v1215_v41, %v1211_v54  ;;  %v1223_v62 = vshrl.u32 %v7737_v15, 16  ;;  %v1628_v28 = vrot.slane %v1626_v19, 4 }
 0x153   : > { %v7754_v57 = vrot.slane %v1219_v43, 5  ;;  %v5688_v33 = vcombine.low %v1810_v3, %v1811_v5  ;;  %v1465_v1 = vsel %vm7518_vm2, %v1460_v8, %v7744_v61  ;;  %v1233_v13 = vshrl.u32 %v7748_v53, 16 }
 0x154   : > { %v1212_v58 = vsel %vm7518_vm2, %v1207_v49, %v1211_v54  ;;  %v1763_v17 = vmax.bf16 %v1465_v1, %v7757_v38  ;;  %v1794_v18 = vmax.bf16 %v1762_v56, %v7655_v21  ;;  %v1217_v7 = vrot.slane %v1216_v16, 4 }
 0x155   : > { %v1629_v27 = vor.u32 %v1628_v28, %v1624_v36  ;;  %6379 = vmatprep.subr.bf16.mxu1 %v5688_v33  ;;  %v1357_v19 = vmax.bf16 %v1212_v58, %v7688_v59  ;;  %v1632_v25 = vshll.u32 %v1392_v46, 16  ;;  %v1636_v32 = vshrl.u32 %v1392_v46, 16 }
 0x156   : > { %v1642_v24 = vshll.u32 %v7752_v12, 16  ;;  %v1795_v35 = vmax.bf16 %v1763_v17, %v1340_v30  ;;  %v1222_v23 = vsel %vm7518_vm2, %v1217_v7, %v7754_v57  ;;  %v1043_v2 = vshrl.u32 %v7592_v55, 16 }
 0x157   : > { %v1630_v42 = vrot.slane %v1629_v27, 4  ;;  %v1358_v40 = vmax.bf16 %v1222_v23, %v7694_v37  ;;  %v1634_v21 = vrot.slane %v1632_v25, 5  ;;  %v1638_v45 = vrot.slane %v1636_v32, 4 }
 0x158   : > { %v7774_v36 = vrot.slane %v1642_v24, 5  ;;  %v5680_v20 = vcombine.low %v1794_v18, %v1795_v35  ;;  %v1045_v59 = vrot.slane %v1043_v2, 4  ;;  %v1049_v29 = vshll.u32 %v7757_v38, 16  ;;  %v7805_v18 = vld [vmem:[#allocation2 + $0x68] sm:$0xf] }
 0x159   : > { %v1053_v44 = vshrl.u32 %v7757_v38, 16  ;;  %v1635_v31 = vsel %vm7518_vm2, %v1630_v42, %v1634_v21  ;;  %v1639_v39 = vor.u32 %v1638_v45, %v1634_v21  ;;  %v1059_v51 = vshll.u32 %v7545_v9, 16  ;;  %v1394_v42 = vld [vmem:[#allocation2 + $0x6c] sm:$0xf]  ;;  %v7818_v45 = vld [vmem:[#allocation2 + $0x70] sm:$0xf] }
 0x15a   : > { %v1466_v47 = vshrl.u32 %v7549_v11, 16  ;;  %6380 = vmatpush3.bf16.msra.mxu1 %v5680_v20  ;;  %v1780_v37 = vmax.bf16 %v1635_v31, %v7737_v15  ;;  %v1046_v48 = vor.u32 %v1045_v59, %v7620_v34  ;;  %v1051_v26 = vrot.slane %v1049_v29, 5 }
 0x15b   : > { %v1055_v30 = vrot.slane %v1053_v44, 4  ;;  %v1640_v41 = vrot.slane %v1639_v39, 4  ;;  %v7786_v60 = vrot.slane %v1059_v51, 5  ;;  %v1472_v6 = vshll.u32 %v7552_v14, 16 }
 0x15c   : > { %v1468_v4 = vrot.slane %v1466_v47, 4  ;;  %v1812_v3 = vmax.bf16 %v1780_v37, %v1357_v19  ;;  %v1047_v52 = vrot.slane %v1046_v48, 4  ;;  %v1476_v11 = vshrl.u32 %v7552_v14, 16 }
 0x15d   : > { %v1056_v54 = vor.u32 %v1055_v30, %v1051_v26  ;;  %v1645_v43 = vsel %vm7518_vm2, %v1640_v41, %v7774_v36  ;;  %v1474_v5 = vrot.slane %v1472_v6, 5  ;;  %v1482_v8 = vshll.u32 %v7784_v50, 16 }
 0x15e   : > { %v1469_v34 = vor.u32 %v1468_v4, %v7744_v61  ;;  %v1781_v56 = vmax.bf16 %v1645_v43, %v7748_v53  ;;  %v1052_v49 = vsel %vm7518_vm2, %v1047_v52, %v1051_v26  ;;  %v1478_v46 = vrot.slane %v1476_v11, 4 }
 0x15f   : > { %v1057_v16 = vrot.slane %v1056_v54, 4  ;;  %v1646_v28 = vshrl.u32 %v7752_v12, 16  ;;  %v1341_v14 = vmax.bf16 %v1052_v49, %v7592_v55  ;;  %v7800_v1 = vrot.slane %v1482_v8, 5  ;;  %v7810_v12 = vld [vmem:[#allocation2 + $0x6c] sm:$0xf] }
 0x160   : > { %v1470_v33 = vrot.slane %v1469_v34, 4  ;;  %v1813_v58 = vmax.bf16 %v1781_v56, %v1358_v40  ;;  %v1479_v17 = vor.u32 %v1478_v46, %v1474_v5  ;;  %v1225_v7 = vrot.slane %v1223_v62, 4  ;;  %v7844_v8 = vld [vmem:[#allocation2 + $0x2c] sm:$0xf] }
 0x161   : > { %v1062_v61 = vsel %vm7518_vm2, %v1057_v16, %v7786_v60  ;;  %v1486_v19 = vshrl.u32 %v7784_v50, 16  ;;  %v1229_v55 = vshll.u32 %v7748_v53, 16  ;;  %v1235_v25 = vrot.slane %v1233_v13, 4 }
 0x162   : > { %v1475_v27 = vsel %vm7518_vm2, %v1470_v33, %v1474_v5  ;;  %v5689_v32 = vcombine.low %v1812_v3, %v1813_v58  ;;  %v1480_v24 = vrot.slane %v1479_v17, 4  ;;  %v1226_v23 = vor.u32 %v1225_v7, %v7754_v57  ;;  %v7851_v7 = vld [vmem:[#allocation2 + $0x30] sm:$0xf] }
 0x163   : > { %v1764_v35 = vmax.bf16 %v1475_v27, %v7545_v9  ;;  %v1342_v2 = vmax.bf16 %v1062_v61, %v7757_v38  ;;  %v1231_v62 = vrot.slane %v1229_v55, 5  ;;  %v1239_v40 = vshll.u32 %v7805_v18, 16 }
 0x164   : > { %v1243_v21 = vshrl.u32 %v7805_v18, 16  ;;  %6381 = vmatprep.subr.bf16.mxu1 %v5689_v32  ;;  %v1485_v13 = vsel %vm7518_vm2, %v1480_v24, %v7800_v1  ;;  %v1227_v20 = vrot.slane %v1226_v23, 4  ;;  %v1253_v59 = vshrl.u32 %v7810_v12, 16 }
 0x165   : > { %v1648_v29 = vrot.slane %v1646_v28, 4  ;;  %v1765_v57 = vmax.bf16 %v1485_v13, %v7547_v10  ;;  %v1796_v44 = vmax.bf16 %v1764_v35, %v1341_v14  ;;  %v1236_v38 = vor.u32 %v1235_v25, %v1231_v62  ;;  %v1378_v14 = vld [vmem:[#allocation2 + $0x2c] sm:$0xf] }
 0x166   : > { %v1652_v31 = vshll.u32 %v1394_v42, 16  ;;  %v1232_v39 = vsel %vm7518_vm2, %v1227_v20, %v1231_v62  ;;  %v1656_v47 = vshrl.u32 %v1394_v42, 16  ;;  %v1662_v37 = vshll.u32 %v7818_v45, 16 }
 0x167   : > { %v1649_v51 = vor.u32 %v1648_v29, %v7774_v36  ;;  %v1797_v48 = vmax.bf16 %v1765_v57, %v1342_v2  ;;  %v1237_v26 = vrot.slane %v1236_v38, 4  ;;  %v7829_v30 = vrot.slane %v1239_v40, 5  ;;  %v7837_v36 = vld [vmem:[#allocation2 + $0x28] sm:$0xf] }
 0x168   : > { %v1654_v50 = vrot.slane %v1652_v31, 5  ;;  %v1359_v41 = vmax.bf16 %v1232_v39, %v7737_v15  ;;  %v1658_v6 = vrot.slane %v1656_v47, 4  ;;  %v7832_v3 = vrot.slane %v1662_v37, 5  ;;  %v7871_v39 = vld [vmem:[#allocation2 + $0x70] sm:$0xf] }
 0x169   : > { %v1650_v4 = vrot.slane %v1649_v51, 4  ;;  %v5681_v52 = vcombine.low %v1796_v44, %v1797_v48  ;;  %v1242_v54 = vsel %vm7518_vm2, %v1237_v26, %v7829_v30  ;;  %v1063_v11 = vshrl.u32 %v7545_v9, 16  ;;  %v7878_v26 = vld [vmem:[#allocation2 + $0x74] sm:$0xf] }
 0x16a   : > { %v1069_v43 = vshll.u32 %v7547_v10, 16  ;;  %v1659_v5 = vor.u32 %v1658_v6, %v1654_v50  ;;  %v1666_v15 = vshrl.u32 %v7818_v45, 16  ;;  %v1073_v56 = vshrl.u32 %v7547_v10, 16 }
 0x16b   : > { %v1655_v34 = vsel %vm7518_vm2, %v1650_v4, %v1654_v50  ;;  %6382 = vmatpush3.bf16.msra.mxu1 %v5681_v52  ;;  %v1360_v49 = vmax.bf16 %v1242_v54, %v7748_v53  ;;  %v1065_v46 = vrot.slane %v1063_v11, 4  ;;  %v1079_v61 = vshll.u32 %v7837_v36, 16  ;;  %v1396_v54 = vld [vmem:[#allocation2 + $0x74] sm:$0xf] }
 0x16c   : > { %v1782_v16 = vmax.bf16 %v1655_v34, %v7805_v18  ;;  %v1071_v28 = vrot.slane %v1069_v43, 5  ;;  %v1660_v33 = vrot.slane %v1659_v5, 4  ;;  %v1075_v58 = vrot.slane %v1073_v56, 4  ;;  %v7888_v34 = vld [vmem:[#allocation2 + $0x78] sm:$0xf] }
 0x16d   : > { %v1083_v17 = vshrl.u32 %v7837_v36, 16  ;;  %v1066_v55 = vor.u32 %v1065_v46, %v7786_v60  ;;  %v1093_v25 = vshrl.u32 %v7844_v8, 16  ;;  %v1488_v32 = vrot.slane %v1486_v19, 4 }
 0x16e   : > { %v1814_v27 = vmax.bf16 %v1782_v16, %v1359_v41  ;;  %v1665_v53 = vsel %vm7518_vm2, %v1660_v33, %v7832_v3  ;;  %v1076_v24 = vor.u32 %v1075_v58, %v1071_v28  ;;  %v1492_v35 = vshll.u32 %v1378_v14, 16 }
 0x16f   : > { %v1496_v23 = vshrl.u32 %v1378_v14, 16  ;;  %v1783_v42 = vmax.bf16 %v1665_v53, %v7810_v12  ;;  %v1067_v2 = vrot.slane %v1066_v55, 4  ;;  %v1489_v62 = vor.u32 %v1488_v32, %v7800_v1 }
 0x170   : > { %v1502_v40 = vshll.u32 %v7851_v7, 16  ;;  %v1077_v45 = vrot.slane %v1076_v24, 4  ;;  %v7861_v13 = vrot.slane %v1079_v61, 5  ;;  %v1494_v60 = vrot.slane %v1492_v35, 5  ;;  %v7904_v35 = vld [vmem:[#allocation2 + $0x30] sm:$0xf] }
 0x171   : > { %v1498_v20 = vrot.slane %v1496_v23, 4  ;;  %v1815_v19 = vmax.bf16 %v1783_v42, %v1360_v49  ;;  %v1072_v29 = vsel %vm7518_vm2, %v1067_v2, %v1071_v28  ;;  %v1490_v57 = vrot.slane %v1489_v62, 4 }
 0x172   : > { %v1506_v44 = vshrl.u32 %v7851_v7, 16  ;;  %v1082_v38 = vsel %vm7518_vm2, %v1077_v45, %v7861_v13  ;;  %v7869_v1 = vrot.slane %v1502_v40, 5  ;;  %v1245_v51 = vrot.slane %v1243_v21, 4 }
 0x173   : > { %v1499_v31 = vor.u32 %v1498_v20, %v1494_v60  ;;  %v5690_v47 = vcombine.low %v1814_v27, %v1815_v19  ;;  %v1343_v37 = vmax.bf16 %v1072_v29, %v7545_v9  ;;  %v1495_v48 = vsel %vm7518_vm2, %v1490_v57, %v1494_v60 }
 0x174   : > { %v1249_v50 = vshll.u32 %v7810_v12, 16  ;;  %v1344_v41 = vmax.bf16 %v1082_v38, %v7547_v10  ;;  %v1246_v6 = vor.u32 %v1245_v51, %v7829_v30  ;;  %v1255_v52 = vrot.slane %v1253_v59, 4  ;;  %v7922_v51 = vld [vmem:[#allocation2 + $0x38] sm:$0xf] }
 0x175   : > { %v1500_v4 = vrot.slane %v1499_v31, 4  ;;  %6383 = vmatprep.subr.bf16.mxu1 %v5690_v47  ;;  %v1766_v21 = vmax.bf16 %v1495_v48, %v7837_v36  ;;  %v1259_v11 = vshll.u32 %v7871_v39, 16  ;;  %v1263_v43 = vshrl.u32 %v7871_v39, 16  ;;  %v7924_v48 = vld [vmem:[#allocation2 + $0x34] sm:$0xf] }
 0x176   : > { %v1251_v9 = vrot.slane %v1249_v50, 5  ;;  %v1247_v5 = vrot.slane %v1246_v6, 4  ;;  %v1273_v30 = vshrl.u32 %v7878_v26, 16  ;;  %v1668_v56 = vrot.slane %v1666_v15, 4 }
 0x177   : > { %v1505_v10 = vsel %vm7518_vm2, %v1500_v4, %v7869_v1  ;;  %v7895_v16 = vrot.slane %v1259_v11, 5  ;;  %v1672_v46 = vshll.u32 %v1396_v54, 16  ;;  %v1676_v33 = vshrl.u32 %v1396_v54, 16 }
 0x178   : > { %v1767_v59 = vmax.bf16 %v1505_v10, %v7844_v8  ;;  %v1256_v49 = vor.u32 %v1255_v52, %v1251_v9  ;;  %v1252_v28 = vsel %vm7518_vm2, %v1247_v5, %v1251_v9  ;;  %v1669_v14 = vor.u32 %v1668_v56, %v7832_v3 }
 0x179   : > { %v1682_v58 = vshll.u32 %v7888_v34, 16  ;;  %v1798_v61 = vmax.bf16 %v1766_v21, %v1343_v37  ;;  %v1674_v55 = vrot.slane %v1672_v46, 5  ;;  %v1361_v15 = vmax.bf16 %v1252_v28, %v7805_v18 }
 0x17a   : > { %v1799_v7 = vmax.bf16 %v1767_v59, %v1344_v41  ;;  %v1257_v27 = vrot.slane %v1256_v49, 4  ;;  %v1670_v32 = vrot.slane %v1669_v14, 4  ;;  %v1678_v53 = vrot.slane %v1676_v33, 4  ;;  %v7943_v49 = vld [vmem:[#allocation2 + $0x78] sm:$0xf] }
 0x17b   : > { %v7902_v24 = vrot.slane %v1682_v58, 5  ;;  %v1085_v42 = vrot.slane %v1083_v17, 4  ;;  %v1089_v2 = vshll.u32 %v7844_v8, 16  ;;  %v1686_v40 = vshrl.u32 %v7888_v34, 16  ;;  %v1380_v17 = vld [vmem:[#allocation2 + $0x34] sm:$0xf] }
 0x17c   : > { %v5682_v23 = vcombine.low %v1798_v61, %v1799_v7  ;;  %v1262_v3 = vsel %vm7518_vm2, %v1257_v27, %v7895_v16  ;;  %v1675_v62 = vsel %vm7518_vm2, %v1670_v32, %v1674_v55  ;;  %v1679_v18 = vor.u32 %v1678_v53, %v1674_v55  ;;  %v7951_v7 = vld [vmem:[#allocation2 + $0x7c] sm:$0xf] }
 0x17d   : > { %v1095_v45 = vrot.slane %v1093_v25, 4  ;;  %v1784_v60 = vmax.bf16 %v1675_v62, %v7871_v39  ;;  %v1086_v20 = vor.u32 %v1085_v42, %v7861_v13  ;;  %v1091_v19 = vrot.slane %v1089_v2, 5  ;;  %v1398_v55 = vld [vmem:[#allocation2 + $0x7c] sm:$0xf]  ;;  %v7960_v2 = vld [vmem:[#allocation2 + $0x80] sm:$0xf] }
 0x17e   : > { %6384 = vmatpush3.bf16.msra.mxu1 %v5682_v23  ;;  %v1099_v29 = vshll.u32 %v7904_v35, 16  ;;  %v1362_v57 = vmax.bf16 %v1262_v3, %v7810_v12  ;;  %v1680_v38 = vrot.slane %v1679_v18, 4  ;;  %v1103_v31 = vshrl.u32 %v7904_v35, 16 }
 0x17f   : > { %v1508_v47 = vrot.slane %v1506_v44, 4  ;;  %v1816_v37 = vmax.bf16 %v1784_v60, %v1361_v15  ;;  %v1087_v25 = vrot.slane %v1086_v20, 4  ;;  %v1096_v50 = vor.u32 %v1095_v45, %v1091_v19 }
 0x180   : > { %v7926_v41 = vrot.slane %v1099_v29, 5  ;;  %v1685_v13 = vsel %vm7518_vm2, %v1680_v38, %v7902_v24  ;;  %v1512_v12 = vshll.u32 %v1380_v17, 16  ;;  %v1516_v6 = vshrl.u32 %v1380_v17, 16 }
 0x181   : > { %v1509_v4 = vor.u32 %v1508_v47, %v7869_v1  ;;  %v1785_v52 = vmax.bf16 %v1685_v13, %v7878_v26  ;;  %v1092_v44 = vsel %vm7518_vm2, %v1087_v25, %v1091_v19  ;;  %v1097_v54 = vrot.slane %v1096_v50, 4  ;;  %v7975_v13 = vld [vmem:[#allocation2 + $0x38] sm:$0xf] }
 0x182   : > { %v1522_v21 = vshll.u32 %v7922_v51, 16  ;;  %v1113_v9 = vshrl.u32 %v7924_v48, 16  ;;  %v1514_v34 = vrot.slane %v1512_v12, 5  ;;  %v1518_v10 = vrot.slane %v1516_v6, 4 }
 0x183   : > { %v1510_v11 = vrot.slane %v1509_v4, 4  ;;  %v1817_v5 = vmax.bf16 %v1785_v52, %v1362_v57  ;;  %v1102_v1 = vsel %vm7518_vm2, %v1097_v54, %v7926_v41  ;;  %v1345_v56 = vmax.bf16 %v1092_v44, %v7837_v36  ;;  %v7985_v44 = vld [vmem:[#allocation2 + $0x3c] sm:$0xf] }
 0x184   : > { %v7941_v59 = vrot.slane %v1522_v21, 5  ;;  %v1519_v28 = vor.u32 %v1518_v10, %v1514_v34  ;;  %v1526_v14 = vshrl.u32 %v7922_v51, 16  ;;  %v1265_v33 = vrot.slane %v1263_v43, 4 }
 0x185   : > { %v1515_v46 = vsel %vm7518_vm2, %v1510_v11, %v1514_v34  ;;  %v5691_v58 = vcombine.low %v1816_v37, %v1817_v5  ;;  %v1269_v36 = vshll.u32 %v7878_v26, 16  ;;  %v1275_v27 = vrot.slane %v1273_v30, 4  ;;  %v1382_v34 = vld [vmem:[#allocation2 + $0x3c] sm:$0xf] }
 0x186   : > { %v1768_v61 = vmax.bf16 %v1515_v46, %v7904_v35  ;;  %v1346_v15 = vmax.bf16 %v1102_v1, %v7844_v8  ;;  %v1520_v32 = vrot.slane %v1519_v28, 4  ;;  %v1266_v53 = vor.u32 %v1265_v33, %v7895_v16  ;;  %v7994_v46 = vld [vmem:[#allocation2 + $0x40] sm:$0xf] }
 0x187   : > { %v1279_v23 = vshll.u32 %v7943_v49, 16  ;;  %6385 = vmatprep.subr.bf16.mxu1 %v5691_v58  ;;  %v1271_v3 = vrot.slane %v1269_v36, 5  ;;  %v1283_v42 = vshrl.u32 %v7943_v49, 16  ;;  %v1688_v62 = vrot.slane %v1686_v40, 4 }
 0x188   : > { %v1800_v43 = vmax.bf16 %v1768_v61, %v1345_v56  ;;  %v1525_v30 = vsel %vm7518_vm2, %v1520_v32, %v7941_v59  ;;  %v1267_v18 = vrot.slane %v1266_v53, 4  ;;  %v1293_v8 = vshrl.u32 %v7951_v7, 16 }
 0x189   : > { %v1692_v45 = vshll.u32 %v1398_v55, 16  ;;  %v1769_v16 = vmax.bf16 %v1525_v30, %v7924_v48  ;;  %v1276_v60 = vor.u32 %v1275_v27, %v1271_v3  ;;  %v1689_v20 = vor.u32 %v1688_v62, %v7902_v24 }
 0x18a   : > { %v1696_v19 = vshrl.u32 %v1398_v55, 16  ;;  %v1272_v29 = vsel %vm7518_vm2, %v1267_v18, %v1271_v3  ;;  %v7970_v17 = vrot.slane %v1279_v23, 5  ;;  %v1702_v57 = vshll.u32 %v7960_v2, 16  ;;  %v975_v18 = vld [vmem:[#allocation2 + $0x80] sm:$0x1] }
 0x18b   : > { %v1694_v40 = vrot.slane %v1692_v45, 5  ;;  %v1801_v38 = vmax.bf16 %v1769_v16, %v1346_v15  ;;  %v1277_v51 = vrot.slane %v1276_v60, 4  ;;  %v1690_v47 = vrot.slane %v1689_v20, 4  ;;  %v1400_v20 = vld [vmem:[#allocation2 + $0x84] sm:$0xf] }
 0x18c   : > { %v1706_v37 = vshrl.u32 %v7960_v2, 16  ;;  %v1363_v25 = vmax.bf16 %v1272_v29, %v7871_v39  ;;  %v1698_v50 = vrot.slane %v1696_v19, 4  ;;  %v1105_v24 = vrot.slane %v1103_v31, 4 }
 0x18d   : > { %v1109_v4 = vshll.u32 %v7924_v48, 16  ;;  %v5683_v12 = vcombine.low %v1800_v43, %v1801_v38  ;;  %v1282_v6 = vsel %vm7518_vm2, %v1277_v51, %v7970_v17  ;;  %v1695_v52 = vsel %vm7518_vm2, %v1690_v47, %v1694_v40 }
 0x18e   : > { %v1115_v54 = vrot.slane %v1113_v9, 4  ;;  %v1699_v39 = vor.u32 %v1698_v50, %v1694_v40  ;;  %v7987_v21 = vrot.slane %v1702_v57, 5  ;;  %v1786_v11 = vmax.bf16 %v1695_v52, %v7943_v49  ;;  %v1401_v52 = vld [vmem:[#allocation2 + $0x88] sm:$0x1] }
 0x18f   : > { %v1106_v31 = vor.u32 %v1105_v24, %v7926_v41  ;;  %6386 = vmatpush3.bf16.msra.mxu1 %v5683_v12  ;;  %v1364_v10 = vmax.bf16 %v1282_v6, %v7878_v26  ;;  %v1111_v5 = vrot.slane %v1109_v4, 5  ;;  %v1119_v1 = vshll.u32 %v7975_v13, 16 }
 0x190   : > { %v1123_v56 = vshrl.u32 %v7975_v13, 16  ;;  %v1700_v28 = vrot.slane %v1699_v39, 4  ;;  %v1133_v33 = vshrl.u32 %v7985_v44, 16  ;;  %v1528_v58 = vrot.slane %v1526_v14, 4 }
 0x191   : > { %v1107_v9 = vrot.slane %v1106_v31, 4  ;;  %v1818_v61 = vmax.bf16 %v1786_v11, %v1363_v25  ;;  %v1116_v36 = vor.u32 %v1115_v54, %v1111_v5  ;;  %v1532_v27 = vshll.u32 %v1382_v34, 16 }
 0x192   : > { %v1536_v41 = vshrl.u32 %v1382_v34, 16  ;;  %v1705_v26 = vsel %vm7518_vm2, %v1700_v28, %v7987_v21  ;;  %v1529_v15 = vor.u32 %v1528_v58, %v7941_v59  ;;  %v1542_v32 = vshll.u32 %v7994_v46, 16 }
 0x193   : > { %v1112_v55 = vsel %vm7518_vm2, %v1107_v9, %v1111_v5  ;;  %v1787_v53 = vmax.bf16 %v1705_v26, %v7951_v7  ;;  %v1117_v23 = vrot.slane %v1116_v36, 4  ;;  %v8005_v43 = vrot.slane %v1119_v1, 5  ;;  %v1367_v5 = vld [vmem:[#allocation2 + $0x80] sm:$0xf]  ;;  %v1384_v36 = vld [vmem:[#allocation2 + $0x44] sm:$0xf] }
 0x194   : > { %v1534_v14 = vrot.slane %v1532_v27, 5  ;;  %v1347_v3 = vmax.bf16 %v1112_v55, %v7904_v35  ;;  %v1530_v2 = vrot.slane %v1529_v15, 4  ;;  %v1538_v62 = vrot.slane %v1536_v41, 4 }
 0x195   : > { %v8008_v30 = vrot.slane %v1542_v32, 5  ;;  %v1819_v45 = vmax.bf16 %v1787_v53, %v1364_v10  ;;  %v1546_v16 = vshrl.u32 %v7994_v46, 16  ;;  %v1285_v60 = vrot.slane %v1283_v42, 4  ;;  %v1368_v32 = vld [vmem:[#allocation2 + $0x84] sm:$0xf] }
 0x196   : > { %v1289_v59 = vshll.u32 %v7951_v7, 16  ;;  %v1122_v19 = vsel %vm7518_vm2, %v1117_v23, %v8005_v43  ;;  %v1535_v29 = vsel %vm7518_vm2, %v1530_v2, %v1534_v14  ;;  %v1539_v35 = vor.u32 %v1538_v62, %v1534_v14 }
 0x197   : > { %v1295_v40 = vrot.slane %v1293_v8, 4  ;;  %v5692_v57 = vcombine.low %v1818_v61, %v1819_v45  ;;  %v1770_v38 = vmax.bf16 %v1535_v29, %v7975_v13  ;;  %v1286_v51 = vor.u32 %v1285_v60, %v7970_v17 }
 0x198   : > { %v1291_v42 = vrot.slane %v1289_v59, 5  ;;  %v1540_v47 = vrot.slane %v1539_v35, 4  ;;  %v1299_v25 = vshll.u32 %v975_v18, 16  ;;  %v1708_v50 = vrot.slane %v1706_v37, 4 }
 0x199   : > { %v1712_v24 = vshll.u32 %v1400_v20, 16  ;;  %6387 = vmatprep.subr.bf16.mxu1 %v5692_v57  ;;  %v1348_v4 = vmax.bf16 %v1122_v19, %v7924_v48  ;;  %v1287_v12 = vrot.slane %v1286_v51, 4  ;;  %v1716_v54 = vshrl.u32 %v1400_v20, 16 }
 0x19a   : > { %v1296_v6 = vor.u32 %v1295_v40, %v1291_v42  ;;  %v1545_v8 = vsel %vm7518_vm2, %v1540_v47, %v8008_v30  ;;  %v1301_v39 = vrot.slane %v1299_v25, 5  ;;  %v1709_v11 = vor.u32 %v1708_v50, %v7987_v21  ;;  %v7351_v47 = vld [vmem:[#allocation2 + $0x40] sm:$0xf] }
 0x19b   : > { %v1714_v17 = vrot.slane %v1712_v24, 5  ;;  %v1771_v31 = vmax.bf16 %v1545_v8, %v7985_v44  ;;  %v1292_v37 = vsel %vm7518_vm2, %v1287_v12, %v1291_v42  ;;  %v1718_v10 = vrot.slane %v1716_v54, 4  ;;  %v7164_v8 = vld [vmem:[%s8898_s3] ss:$8 sps:$4 sm:$0xff]  }
 0x19c   : > { %v1297_v34 = vrot.slane %v1296_v6, 4  ;;  %v1802_v48 = vmax.bf16 %v1770_v38, %v1347_v3  ;;  %v1710_v1 = vrot.slane %v1709_v11, 4  ;;  %v1722_v46 = vshll.u32 %v1401_v52, 16  ;;  %v7172_v11 = vld [vmem:[%s8898_s3 + $0x20] ss:$8 sps:$4 sm:$0xff]  }
 0x19d   : > { %v1125_v28 = vrot.slane %v1123_v56, 4  ;;  %v1803_v9 = vmax.bf16 %v1771_v31, %v1348_v4  ;;  %v1719_v61 = vor.u32 %v1718_v10, %v1714_v17  ;;  %v1129_v21 = vshll.u32 %v7985_v44, 16  ;;  %v7352_v4 = vld [vmem:[#allocation2 + $0x44] sm:$0xf]  ;;  %v7175_v31 = vld [vmem:[%s8898_s3 + $0x30] ss:$8 sps:$4 sm:$0xff]  }
 0x19e   : > { %v1302_v58 = vsel %vm7518_vm2, %v1297_v34, %v1301_v39  ;;  %v1365_v27 = vmax.bf16 %v1292_v37, %v7943_v49  ;;  %v1715_v41 = vsel %vm7518_vm2, %v1710_v1, %v1714_v17  ;;  %v1724_v26 = vrot.slane %v1722_v46, 5  ;;  %v7170_v39 = vld [vmem:[%s8898_s3 + $0x24] ss:$8 sps:$4 sm:$0xff]   ;;  %v7173_v17 = vld [vmem:[%s8898_s3 + $0x34] ss:$8 sps:$4 sm:$0xff]  }
 0x19f   : > { %v1126_v55 = vor.u32 %v1125_v28, %v8005_v43  ;;  %v5684_v15 = vcombine.low %v1802_v48, %v1803_v9  ;;  %v1720_v53 = vrot.slane %v1719_v61, 4  ;;  %v1788_v56 = vmax.bf16 %v1715_v41, %v1367_v5  ;;  %v7178_v37 = vld [vmem:[%s8899_s4 + $0x50] sm:$0xff]   ;;  %v7179_v34 = vld [vmem:[%s8899_s4 + $0x58] sm:$0xff]   ;;  %v7180_v10 = vld [vmem:[%s8899_s4 + $0x60] sm:$0xff]  }
 0x1a0   : > { %v1131_v23 = vrot.slane %v1129_v21, 5  ;;  %v1366_v14 = vmax.bf16 %v1302_v58, %v7951_v7  ;;  %v1135_v3 = vrot.slane %v1133_v33, 4  ;;  %v1548_v2 = vrot.slane %v1546_v16, 4  ;;  %v7181_v48 = vld [vmem:[%s8899_s4 + $0x68] sm:$0xff]   ;;  %v7182_v5 = vld [vmem:[%s8899_s4 + $0x70] sm:$0xff]   ;;  %v7184_v1 = vld [vmem:[%s8899_s4 + $0x78] sm:$0xff]  }
 0x1a1   : > { %v1552_v62 = vshll.u32 %v1384_v36, 16  ;;  %6388 = vmatpush3.bf16.msra.mxu1 %v5684_v15  ;;  %v1725_v49 = vsel %vm7518_vm2, %v1720_v53, %v1724_v26  ;;  %v1127_v18 = vrot.slane %v1126_v55, 4  ;;  %v1556_v45 = vshrl.u32 %v1384_v36, 16  ;;  %v7185_v46 = vld [vmem:[%s8899_s4] sm:$0xff]   ;;  %v8102_v36 = vld [vmem:[#allocation3] sm:$0xf0] }
 0x1a2   : > { %v1789_v60 = vmax.bf16 %v1725_v49, %v1368_v32  ;;  %v1820_v43 = vmax.bf16 %v1788_v56, %v1365_v27  ;;  %v1136_v59 = vor.u32 %v1135_v3, %v1131_v23  ;;  %v1549_v20 = vor.u32 %v1548_v2, %v8008_v30  ;;  %v7191_v55 = vld [vmem:[%s8901_s6] sm:$0xff]   ;;  %v7192_v53 = vld [vmem:[%s8901_s6 + $0x8] sm:$0xff]  }
 0x1a3   : > { %v1554_v19 = vrot.slane %v1552_v62, 5  ;;  %v1558_v29 = vrot.slane %v1556_v45, 4  ;;  %v1132_v33 = vsel %vm7518_vm2, %v1127_v18, %v1131_v23  ;;  %v2157_v26 = vrot.slane %v8102_v36, 4 }
 0x1a4   : > { %v1821_v35 = vmax.bf16 %v1789_v60, %v1366_v14  ;;  %v1550_v7 = vrot.slane %v1549_v20, 4  ;;  %v1137_v16 = vrot.slane %v1136_v59, 4  ;;  %v1349_v25 = vmax.bf16 %v1132_v33, %v7975_v13  ;;  %v7177_v13 = vld [vmem:[%s8899_s4 + $0x48] sm:$0xff]   ;;  %v7190_v59 = vld [vmem:[%s8901_s6 + $0x18] sm:$0xff]  }
 0x1a5   : > { %v1559_v40 = vor.u32 %v1558_v29, %v1554_v19  ;;  %v2073_v62 = vshrl.u32 %v7191_v55, 16  ;;  %v2076_v18 = vshll.u32 %v7191_v55, 16  ;;  %v2081_v45 = vshrl.u32 %v7192_v53, 16 }
 0x1a6   : > { %v5693_v57 = vcombine.low %v1820_v43, %v1821_v35  ;;  %v1555_v38 = vsel %vm7518_vm2, %v1550_v7, %v1554_v19  ;;  %v1142_v51 = vsel %vm7518_vm2, %v1137_v16, %v7644_v0  ;;  %v7176_v0 = vld [vmem:[%s8899_s4 + $0x40] sm:$0xff]   ;;  %v2084_v60 = vshll.u32 %v7192_v53, 16  ;;  %v7196_v19 = vld [vmem:[%s8901_s6 + $0x10] sm:$0xff]  }
 0x1a7   : > { %v1560_v42 = vrot.slane %v1559_v40, 4  ;;  %v1772_v30 = vmax.bf16 %v7351_v47, %v1555_v38  ;;  %v1350_v24 = vmax.bf16 %v1142_v51, %v7985_v44  ;;  %v7169_v44 = vld [vmem:[%s8898_s3 + $0x10] ss:$8 sps:$4 sm:$0xff]   ;;  %v2075_v20 = vrot.slane %v2073_v62, 4 }
 0x1a8   : > { %6389 = vmatprep.subr.bf16.mxu1 %v5693_v57  ;;  %v2078_v7 = vrot.slane %v2076_v18, 5  ;;  %v2083_v33 = vrot.slane %v2081_v45, 4  ;;  %v2086_v16 = vrot.slane %v2084_v60, 5  ;;  %v7186_v57 = vld [vmem:[%s8899_s4 + $0x8] sm:$0xff]  }
 0x1a9   : > { %v1565_v50 = vsel %vm7518_vm2, %v1560_v42, %v7661_v63  ;;  %v1804_v6 = vmax.bf16 %v1772_v30, %v1349_v25  ;;  %v7167_v63 = vld [vmem:[%s8898_s3 + $0x14] ss:$8 sps:$4 sm:$0xff]   ;;  %v2099_v30 = vshrl.u32 %v7190_v59, 16  ;;  %v2090_v25 = vshrl.u32 %v7196_v19, 16 }
 0x1aa   : > { %v1773_v12 = vmax.bf16 %v7352_v4, %v1565_v50  ;;  %v2093_v50 = vshll.u32 %v7196_v19, 16  ;;  %v2102_v4 = vshll.u32 %v7190_v59, 16  ;;  %v7193_v59 = vld [vmem:[%s8899_s4 + $0x28] sm:$0xff]  }
 0x1ac   : > { %v1805_v52 = vmax.bf16 %v1773_v12, %v1350_v24  ;;  %v2079_v12 = vor.u32 %v2078_v7, %v2075_v20 }
 0x1ae   : > { %v5685_v54 = vcombine.low %v1804_v6, %v1805_v52  ;;  %v2087_v6 = vor.u32 %v2086_v16, %v2083_v33  ;;  %v7187_v52 = vld [vmem:[%s8899_s4 + $0x10] sm:$0xff]  }
 0x1b0   : > { %6390 = vmatpush3.bf16.msra.mxu1 %v5685_v54  ;;  %v7183_v54 = vld [vmem:[%s8901_s6 + $0x20] sm:$0xff]  }
 0x1b1   : > { %6657 = vmatprep.subr.bf16.mxu1 %v7176_v0 }
 0x1b3   : > { %1999 = vmatmul.mubr.bf16.vlgmr.msra.gmra.mrb[0].mxu1 %v7164_v8  ;;  %v2039_v8 = vld [vmem:[#allocation3] sm:$0xf8] }
 0x1b4   : > { %2006 = vmatprep.mubr.bf16.mxu1 %v7167_v63  ;;  %6658 = vmatpush3.bf16.msra.mxu1 %v7176_v0  ;;  %v2092_v63 = vrot.slane %v2090_v25, 4 }
 0x1b5   : > { %6659 = vmatprep.subr.bf16.mxu1 %v7177_v13 }
 0x1b8   : > { %6660 = vmatpush3.bf16.msra.mxu1 %v7177_v13  ;;  %v2095_v13 = vrot.slane %v2093_v50, 5 }
 0x1b9   : > { %6661 = vmatprep.subr.bf16.mxu1 %v7178_v37 }
 0x1bb   : > { %2007 = vmatmul.mubr.bf16.gmra.mrb[4].mxu1 %v7169_v44 }
 0x1bc   : > { %2014 = vmatprep.mubr.bf16.mxu1 %v7170_v39  ;;  %6662 = vmatpush3.bf16.msra.mxu1 %v7178_v37  ;;  %v7200_v37 = vld [vmem:[%s8901_s6 + $0x28] sm:$0xff]  }
 0x1bd   : > { %6663 = vmatprep.subr.bf16.mxu1 %v7179_v34  ;;  %v2484_v55 = vshrl.u32 %v7200_v37, 16 }
 0x1bf   : > { %v2486_v45 = vrot.slane %v2484_v55, 3 }
 0x1c0   : > { %6664 = vmatpush3.bf16.msra.mxu1 %v7179_v34 }
 0x1c1   : > { %6665 = vmatprep.subr.bf16.mxu1 %v7180_v10 }
 0x1c3   : > { %2015 = vmatmul.mubr.bf16.gmra.mrb[8].mxu1 %v7172_v11  ;;  %v2101_v11 = vrot.slane %v2099_v30, 4 }
 0x1c4   : > { %2022 = vmatprep.mubr.bf16.mxu1 %v7173_v17  ;;  %6666 = vmatpush3.bf16.msra.mxu1 %v7180_v10  ;;  %v2104_v17 = vrot.slane %v2102_v4, 5  ;;  %v7188_v10 = vld [vmem:[%s8899_s4 + $0x18] sm:$0xff]  }
 0x1c5   : > { %6667 = vmatprep.subr.bf16.mxu1 %v7181_v48 }
 0x1c8   : > { %6668 = vmatpush3.bf16.msra.mxu1 %v7181_v48  ;;  %v2476_v48 = vshrl.u32 %v7183_v54, 16 }
 0x1c9   : > { %6669 = vmatprep.subr.bf16.mxu1 %v7182_v5 }
 0x1ca   : > { %v2478_v53 = vrot.slane %v2476_v48, 3 }
 0x1cb   : > { %2023 = vmatmul.mubr.bf16.gmra.mrb[12].mxu1 %v7175_v31  ;;  %v2088_v31 = vsel %vm976_vm0, %v2079_v12, %v2087_v6 }
 0x1cc   : > { %6670 = vmatpush3.bf16.msra.mxu1 %v7182_v5 }
 0x1cd   : > { %6671 = vmatprep.subr.bf16.mxu1 %v7184_v1 }
 0x1d0   : > { %6672 = vmatpush3.bf16.msra.mxu1 %v7184_v1 }
 0x1d1   : > { %6681 = vmatprep.subr.bf16.mxu1 %v7185_v46 }
 0x286   : > { %v6391_v28 = vpop.f32.mrb[0].mxu1 }
 0x287   : > { %v6392_v9 = vpop.f32.mrb[1].mxu1 }
 0x288   : > { %v6393_v58 = vadd.f32 %v6392_v9, %v6391_v28  ;;  %v6394_v61 = vpop.f32.mrb[2].mxu1  ;;  %v2112_v28 = vmul.bf16 %v2079_v12, %v2039_v8  ;;  %v2479_v9 = vshll.u32 %v7183_v54, 16 }
 0x289   : > { %v6395_v21 = vpop.f32.mrb[3].mxu1 }
 0x28a   : > { %v6396_v27 = vadd.f32 %v6395_v21, %v6394_v61  ;;  %v2096_v21 = vor.u32 %v2095_v13, %v2092_v63 }
 0x28c   : > { %v8104_v41 = vpack.c.bf16 %v6396_v27, %v6393_v58  ;;  %v2097_v62 = vsel %vm976_vm0, %v2087_v6, %v2096_v21 }
 0x28e   : > { %2035 = vst [vmem:[#allocation3 + $0x8] sm:$0xff] %v8104_v41  ;;  %v6397_v15 = vpop.f32.mrb[4].mxu1  ;;  %v2158_v32 = vrot.slane %v8104_v41, 4  ;;  %v2113_v61 = vmul.bf16 %v2088_v31, %v8104_v41 }
 0x28f   : > { %v6398_v56 = vpop.f32.mrb[5].mxu1 }
 0x290   : > { %v6399_v23 = vadd.f32 %v6398_v56, %v6397_v15  ;;  %v6400_v14 = vpop.f32.mrb[6].mxu1  ;;  %v2159_v3 = vsel %vm2156_vm3, %v2157_v26, %v2158_v32  ;;  %v2105_v26 = vor.u32 %v2104_v17, %v2101_v11  ;;  %v2487_v15 = vshll.u32 %v7200_v37, 16 }
 0x291   : > { %v6401_v2 = vpop.f32.mrb[7].mxu1  ;;  %6673 = vmatprep.mubr.bf16.mxu1 %v2159_v3  ;;  %v2293_v3 = vshrl.u32 %v2113_v61, 16 }
 0x292   : > { %v6402_v49 = vadd.f32 %v6401_v2, %v6400_v14  ;;  %v2288_v14 = vshll.u32 %v2112_v28, 16  ;;  %v2296_v2 = vshll.u32 %v2113_v61, 16  ;;  %v2106_v18 = vsel %vm976_vm0, %v2096_v21, %v2105_v26  ;;  %v7208_v61 = vld [vmem:[%s8901_s6 + $0x38] sm:$0xff]   ;;  %v7198_v21 = vld [vmem:[%s8899_s4 + $0x88] sm:$0xff]  }
 0x293   : > { %v2489_v60 = vrot.slane %v2487_v15, 4  ;;  %v2295_v7 = vrot.slane %v2293_v3, 3 }
 0x294   : > { %v8116_v43 = vpack.c.bf16 %v6402_v49, %v6399_v23  ;;  %v2285_v23 = vshrl.u32 %v2112_v28, 16  ;;  %v2481_v49 = vrot.slane %v2479_v9, 4  ;;  %v2298_v33 = vrot.slane %v2296_v2, 4 }
 0x296   : > { %2036 = vst [vmem:[#allocation3 + $0x10] sm:$0xff] %v8116_v43  ;;  %v6403_v29 = vpop.f32.mrb[8].mxu1  ;;  %v8126_v35 = vrot.slane %v8116_v43, 4  ;;  %v2287_v20 = vrot.slane %v2285_v23, 3  ;;  %v2114_v19 = vmul.bf16 %v2097_v62, %v8116_v43  ;;  %v2299_v25 = vor.u32 %v2298_v33, %v2295_v7  ;;  %v7211_v33 = vld [vmem:[%s8901_s6 + $0x40] sm:$0xff]  }
 0x297   : > { %v6404_v40 = vpop.f32.mrb[9].mxu1  ;;  %v2502_v62 = vshrl.u32 %v7208_v61, 16 }
 0x298   : > { %v6405_v38 = vadd.f32 %v6404_v40, %v6403_v29  ;;  %v6406_v51 = vpop.f32.mrb[10].mxu1  ;;  %v2161_v42 = vsel %vm2156_vm3, %v2158_v32, %v8126_v35  ;;  %v7189_v32 = vld [vmem:[%s8899_s4 + $0x20] sm:$0xff]   ;;  %v2290_v29 = vrot.slane %v2288_v14, 4  ;;  %v2482_v40 = vor.u32 %v2481_v49, %v2478_v53 }
 0x299   : > { %v6407_v47 = vpop.f32.mrb[11].mxu1  ;;  %6674 = vmatmul.mubr.bf16.vlgmr.msra.gmra.mrb[16].mxu1 %v2161_v42  ;;  %v2305_v42 = vshll.u32 %v2114_v19, 16  ;;  %v2505_v49 = vshll.u32 %v7208_v61, 16  ;;  %v7207_v61 = vld [vmem:[%s8899_s4 + $0xc0] sm:$0xff]  }
 0x29a   : > { %v6408_v24 = vadd.f32 %v6407_v47, %v6406_v51  ;;  %6682 = vmatpush3.bf16.msra.mxu1 %v7185_v46  ;;  %v2302_v51 = vshrl.u32 %v2114_v19, 16  ;;  %v2291_v30 = vor.u32 %v2290_v29, %v2287_v20  ;;  %v2515_v6 = vmul.bf16 %v2482_v40, %v8102_v36  ;;  %v7197_v36 = vld [vmem:[%s8899_s4 + $0x80] sm:$0xff]  }
 0x29b   : > { %6683 = vmatprep.subr.bf16.mxu1 %v7186_v57  ;;  %v2307_v13 = vrot.slane %v2305_v42, 4  ;;  %v2504_v29 = vrot.slane %v2502_v62, 3  ;;  %v2507_v7 = vrot.slane %v2505_v49, 4 }
 0x29c   : > { %v8136_v0 = vpack.c.bf16 %v6408_v24, %v6405_v38  ;;  %v7194_v38 = vld [vmem:[%s8899_s4 + $0x30] sm:$0xff]   ;;  %v2304_v63 = vrot.slane %v2302_v51, 3  ;;  %v2538_v37 = vshrl.u32 %v2515_v6, 16 }
 0x29d   : > { %v2508_v42 = vor.u32 %v2507_v7, %v2504_v29 }
 0x29e   : > { %2037 = vst [vmem:[#allocation3 + $0x18] sm:$0xff] %v8136_v0  ;;  %v6409_v44 = vpop.f32.mrb[12].mxu1  ;;  %6684 = vmatpush3.bf16.msra.mxu1 %v7186_v57  ;;  %v8143_v39 = vrot.slane %v8136_v0, 4  ;;  %v2115_v16 = vmul.bf16 %v2106_v18, %v8136_v0  ;;  %v8172_v57 = vor.u32 %v2489_v60, %v2486_v45  ;;  %v7199_v18 = vld [vmem:[%s8899_s4 + $0x90] sm:$0xff]  }
 0x29f   : > { %v6410_v34 = vpop.f32.mrb[13].mxu1  ;;  %6685 = vmatprep.subr.bf16.mxu1 %v7187_v52 }
 0x2a0   : > { %v6411_v5 = vadd.f32 %v6410_v34, %v6409_v44  ;;  %v6412_v1 = vpop.f32.mrb[14].mxu1  ;;  %v8155_v46 = vsel %vm2156_vm3, %v8126_v35, %v8143_v39  ;;  %v2311_v50 = vshrl.u32 %v2115_v16, 16  ;;  %v2314_v24 = vshll.u32 %v2115_v16, 16  ;;  %v7206_v34 = vld [vmem:[%s8901_s6 + $0x30] sm:$0xff]   ;;  %v7201_v16 = vld [vmem:[%s8899_s4 + $0x98] sm:$0xff]  }
 0x2a1   : > { %v6413_v58 = vpop.f32.mrb[15].mxu1  ;;  %6677 = vmatprep.mubr.bf16.mxu1 %v8155_v46  ;;  %v2491_v12 = vsel %vm2283_vm4, %v2482_v40, %v8172_v57  ;;  %v2300_v44 = vsel %vm2283_vm4, %v2291_v30, %v2299_v25  ;;  %v2496_v2 = vshll.u32 %v7206_v34, 16  ;;  %v2739_v30 = vshll.u32 %v7211_v33, 16 }
 0x2a2   : > { %v6414_v27 = vadd.f32 %v6413_v58, %v6412_v1  ;;  %6686 = vmatpush3.bf16.msra.mxu1 %v7187_v52  ;;  %v7195_v52 = vld [vmem:[%s8899_s4 + $0x38] sm:$0xff]   ;;  %v2313_v11 = vrot.slane %v2311_v50, 3  ;;  %v2316_v17 = vrot.slane %v2314_v24, 4  ;;  %v2516_v31 = vmul.bf16 %v2491_v12, %v8104_v41 }
 0x2a3   : > { %6687 = vmatprep.subr.bf16.mxu1 %v7188_v10  ;;  %v2541_v1 = vshll.u32 %v2515_v6, 16  ;;  %v2498_v19 = vrot.slane %v2496_v2, 4  ;;  %v2742_v12 = vshrl.u32 %v7211_v33, 16  ;;  %v7218_v2 = vld [vmem:[%s8901_s6 + $0x50] sm:$0xff]  }
 0x2a4   : > { %v8162_v56 = vpack.c.bf16 %v6414_v27, %v6411_v5  ;;  %v2317_v28 = vor.u32 %v2316_v17, %v2313_v11  ;;  %v2546_v9 = vshrl.u32 %v2516_v31, 16  ;;  %v2549_v58 = vshll.u32 %v2516_v31, 16 }
 0x2a5   : > { %v2540_v27 = vrot.slane %v2538_v37, 4  ;;  %v2543_v53 = vrot.slane %v2541_v1, 5 }
 0x2a6   : > { %2038 = vst [vmem:[#allocation3 + $0x20] sm:$0xff] %v8162_v56  ;;  %6688 = vmatpush3.bf16.msra.mxu1 %v7188_v10  ;;  %v2308_v10 = vor.u32 %v2307_v13, %v2304_v63  ;;  %v2548_v14 = vrot.slane %v2546_v9, 4  ;;  %v2551_v3 = vrot.slane %v2549_v58, 5  ;;  %v2706_v58 = vld [vmem:[#allocation3] sm:$0x80] }
 0x2a7   : > { %6689 = vmatprep.subr.bf16.mxu1 %v7189_v32  ;;  %v2544_v60 = vor.u32 %v2543_v53, %v2540_v27  ;;  %v7209_v53 = vld [vmem:[%s8899_s4 + $0xc8] sm:$0xff]  }
 0x2a8   : > { %v2309_v55 = vsel %vm2283_vm4, %v2299_v25, %v2308_v10  ;;  %v2318_v23 = vsel %vm2283_vm4, %v2308_v10, %v2317_v28  ;;  %v7202_v25 = vld [vmem:[%s8899_s4 + $0xa0] sm:$0xff]  }
 0x2aa   : > { %6690 = vmatpush3.bf16.msra.mxu1 %v7189_v32 }
 0x2ab   : > { %6691 = vmatprep.subr.bf16.mxu1 %v7193_v59 }
 0x2ad   : > { %v2043_v47 = vld [vmem:[#allocation3 + $0x20] sm:$0xf] }
 0x2ae   : > { %v2164_v4 = vrot.slane %v2043_v47, 4  ;;  %6692 = vmatpush3.bf16.msra.mxu1 %v7193_v59  ;;  %v2116_v54 = vmul.bf16 %v2105_v26, %v2043_v47  ;;  %v2493_v26 = vshrl.u32 %v7206_v34, 16  ;;  %v8204_v59 = vor.u32 %v2551_v3, %v2548_v14  ;;  %v8218_v47 = vld [vmem:[%s8901_s6 + $0x48] sm:$0xff]   ;;  %v7205_v34 = vld [vmem:[%s8899_s4 + $0xb8] sm:$0xff]  }
 0x2af   : > { %6693 = vmatprep.subr.bf16.mxu1 %v7194_v38  ;;  %v2746_v6 = vshll.u32 %v8218_v47, 16  ;;  %v2750_v29 = vshrl.u32 %v8218_v47, 16 }
 0x2b0   : > { %v2165_v8 = vsel %vm2156_vm3, %v8143_v39, %v2164_v4  ;;  %v2320_v48 = vshrl.u32 %v2116_v54, 16  ;;  %v2323_v5 = vshll.u32 %v2116_v54, 16  ;;  %v2495_v20 = vrot.slane %v2493_v26, 3 }
 0x2b1   : > { %6678 = vmatmul.mubr.bf16.gmra.mrb[20].mxu1 %v2165_v8  ;;  %v2741_v4 = vrot.slane %v2739_v30, 1  ;;  %v2748_v13 = vrot.slane %v2746_v6, 1  ;;  %v7215_v6 = vld [vmem:[%s8899_s4 + $0xe8] sm:$0xff]  }
 0x2b2   : > { %6697 = vmatprep.mubr.bf16.mxu1 %v2300_v44  ;;  %6694 = vmatpush3.bf16.msra.mxu1 %v7194_v38  ;;  %v2322_v15 = vrot.slane %v2320_v48, 3  ;;  %v2325_v32 = vrot.slane %v2323_v5, 4  ;;  %v2553_v38 = vsel %vm976_vm0, %v2544_v60, %v8204_v59  ;;  %v2499_v51 = vor.u32 %v2498_v19, %v2495_v20  ;;  %v7210_v60 = vld [vmem:[%s8899_s4 + $0xd0] sm:$0xff]  }
 0x2b3   : > { %6695 = vmatprep.subr.bf16.mxu1 %v7195_v52  ;;  %v2744_v63 = vor.u32 %v2742_v12, %v2741_v4  ;;  %v2754_v19 = vshll.u32 %v7218_v2, 16  ;;  %v2752_v30 = vor.u32 %v2750_v29, %v2748_v13 }
 0x2b4   : > { %v2326_v45 = vor.u32 %v2325_v32, %v2322_v15  ;;  %v2500_v50 = vsel %vm2283_vm4, %v8172_v57, %v2499_v51  ;;  %v2509_v24 = vsel %vm2283_vm4, %v2499_v51, %v2508_v42  ;;  %v7204_v57 = vld [vmem:[%s8899_s4 + $0xb0] sm:$0xff]   ;;  %v2774_v15 = vmul.bf16 %v2741_v4, %v2706_v58 }
 0x2b5   : > { %v2517_v54 = vmul.bf16 %v2500_v50, %v8116_v43  ;;  %v2518_v8 = vmul.bf16 %v2509_v24, %v8136_v0  ;;  %v2749_v37 = vsel %vm2737_vm5, %v2744_v63, %v2748_v13  ;;  %v7214_v24 = vld [vmem:[%s8899_s4 + $0xe0] sm:$0xff]   ;;  %v7216_v63 = vld [vmem:[%s8899_s4 + $0xf0] sm:$0xff]  }
 0x2b6   : > { %6696 = vmatpush3.bf16.msra.mxu1 %v7195_v52  ;;  %v2327_v40 = vsel %vm2283_vm4, %v2317_v28, %v2326_v45  ;;  %v7203_v52 = vld [vmem:[%s8899_s4 + $0xa8] sm:$0xff]   ;;  %v2775_v9 = vmul.bf16 %v2749_v37, %v8104_v41  ;;  %v2798_v49 = vshrl.u32 %v2774_v15, 16  ;;  %v7220_v45 = vld [vmem:[%s8901_s6 + $0x58] sm:$0xff]  }
 0x2b7   : > { %6705 = vmatprep.subr.bf16.mxu1 %v7197_v36  ;;  %v2555_v44 = vshrl.u32 %v2517_v54, 16  ;;  %v2558_v11 = vshll.u32 %v2517_v54, 16  ;;  %v2564_v17 = vshrl.u32 %v2518_v8, 16  ;;  %v2567_v31 = vshll.u32 %v2518_v8, 16 }
 0x2b8   : > { %v2802_v32 = vshrl.u32 %v2775_v9, 16  ;;  %v2800_v7 = vrot.slane %v2798_v49, 7  ;;  %v2766_v54 = vshrl.u32 %v7220_v45, 16 }
 0x2b9   : > { %6698 = vmatmul.mubr.bf16.vlgmr.msra.gmra.mrb[16].mxu1 %v2309_v55  ;;  %v2557_v10 = vrot.slane %v2555_v44, 4  ;;  %v2560_v48 = vrot.slane %v2558_v11, 5  ;;  %v2566_v1 = vrot.slane %v2564_v17, 4  ;;  %v2569_v28 = vrot.slane %v2567_v31, 5  ;;  %v7217_v11 = vld [vmem:[%s8899_s4 + $0xf8] sm:$0xff]  }
 0x2ba   : > { %6701 = vmatprep.mubr.bf16.mxu1 %v2318_v23  ;;  %6706 = vmatpush3.bf16.msra.mxu1 %v7197_v36  ;;  %v2445_v36 = vld [vmem:[#allocation3 + $0x20] sm:$0x1f] }
 0x2bb   : > { %6707 = vmatprep.subr.bf16.mxu1 %v7198_v21  ;;  %v2519_v5 = vmul.bf16 %v2508_v42, %v2445_v36  ;;  %v2570_v55 = vor.u32 %v2569_v28, %v2566_v1  ;;  %v2756_v42 = vrot.slane %v2754_v19, 1  ;;  %v7221_v28 = vld [vmem:[%s8899_s4 + $0x108] sm:$0xff]  }
 0x2bd   : > { %v2573_v27 = vshrl.u32 %v2519_v5, 16  ;;  %v2576_v26 = vshll.u32 %v2519_v5, 16  ;;  %v2757_v4 = vsel %vm2737_vm5, %v2752_v30, %v2756_v42  ;;  %v7230_v30 = vld [vmem:[%s8899_s4 + $0x150] sm:$0xff]  }
 0x2be   : > { %6708 = vmatpush3.bf16.msra.mxu1 %v7198_v21  ;;  %v2561_v21 = vor.u32 %v2560_v48, %v2557_v10 }
 0x2bf   : > { %6709 = vmatprep.subr.bf16.mxu1 %v7199_v18  ;;  %v2575_v14 = vrot.slane %v2573_v27, 4  ;;  %v2578_v3 = vrot.slane %v2576_v26, 5  ;;  %v7222_v27 = vld [vmem:[%s8899_s4 + $0x110] sm:$0xff]  }
 0x2c0   : > { %v2562_v23 = vsel %vm976_vm0, %v8204_v59, %v2561_v21  ;;  %v2571_v62 = vsel %vm976_vm0, %v2561_v21, %v2570_v55  ;;  %v2805_v59 = vshll.u32 %v2775_v9, 16 }
 0x2c1   : > { %6702 = vmatmul.mubr.bf16.gmra.mrb[20].mxu1 %v2327_v40  ;;  %v2579_v20 = vor.u32 %v2578_v3, %v2575_v14  ;;  %v2762_v40 = vshll.u32 %v7220_v45, 16  ;;  %v7225_v3 = vld [vmem:[%s8899_s4 + $0x128] sm:$0xff]  }
 0x2c2   : > { %6710 = vmatpush3.bf16.msra.mxu1 %v7199_v18  ;;  %6721 = vmatprep.mubr.bf16.mxu1 %v2553_v38  ;;  %v2804_v18 = vrot.slane %v2802_v32, 7  ;;  %v7213_v38 = vld [vmem:[%s8899_s4 + $0xd8] sm:$0xff]   ;;  %v7232_v32 = vld [vmem:[%s8901_s6 + $0x68] sm:$0xff]  }
 0x2c3   : > { %6711 = vmatprep.subr.bf16.mxu1 %v7201_v16  ;;  %v2580_v51 = vsel %vm976_vm0, %v2570_v55, %v2579_v20  ;;  %v2764_v50 = vrot.slane %v2762_v40, 1  ;;  %v7223_v55 = vld [vmem:[%s8899_s4 + $0x118] sm:$0xff]   ;;  %v3138_v14 = vshrl.u32 %v7232_v32, 16  ;;  %v3141_v49 = vshll.u32 %v7232_v32, 16  ;;  %v7229_v40 = vld [vmem:[%s8899_s4 + $0x148] sm:$0xff]  }
 0x2c4   : > { %v2807_v33 = vor.u32 %v2805_v59, %v2804_v18  ;;  %v7227_v20 = vld [vmem:[%s8899_s4 + $0x138] sm:$0xff]  }
 0x2c5   : > { %v3349_v32 = vld [vmem:[#allocation3 + $0x8] sm:$0xf8] }
 0x2c6   : > { %6712 = vmatpush3.bf16.msra.mxu1 %v7201_v16  ;;  %v2758_v16 = vshrl.u32 %v7218_v2, 16 }
 0x2c7   : > { %6713 = vmatprep.subr.bf16.mxu1 %v7202_v25 }
 0x2c8   : > { %v2760_v47 = vor.u32 %v2758_v16, %v2756_v42 }
 0x2ca   : > { %6714 = vmatpush3.bf16.msra.mxu1 %v7202_v25  ;;  %v2808_v25 = vsel %vm2796_vm6, %v2800_v7, %v2807_v33  ;;  %v2765_v12 = vsel %vm2737_vm5, %v2760_v47, %v2764_v50  ;;  %v7228_v7 = vld [vmem:[%s8899_s4 + $0x140] sm:$0xff]  }
 0x2cb   : > { %6715 = vmatprep.subr.bf16.mxu1 %v7203_v52  ;;  %v2777_v8 = vmul.bf16 %v2765_v12, %v8136_v0 }
 0x2cd   : > { %v2818_v44 = vshrl.u32 %v2777_v8, 16  ;;  %v2821_v10 = vshll.u32 %v2777_v8, 16 }
 0x2ce   : > { %6716 = vmatpush3.bf16.msra.mxu1 %v7203_v52  ;;  %v2776_v52 = vmul.bf16 %v2757_v4, %v8116_v43  ;;  %v7243_v4 = vld [vmem:[%s8901_s6 + $0x80] sm:$0xff]  }
 0x2cf   : > { %6717 = vmatprep.subr.bf16.mxu1 %v7204_v57  ;;  %v2820_v36 = vrot.slane %v2818_v44, 7  ;;  %v3384_v44 = vshll.u32 %v7243_v4, 16 }
 0x2d0   : > { %v2810_v13 = vshrl.u32 %v2776_v52, 16  ;;  %v2813_v37 = vshll.u32 %v2776_v52, 16 }
 0x2d1   : > { %v2823_v1 = vor.u32 %v2821_v10, %v2820_v36 }
 0x2d2   : > { %6718 = vmatpush3.bf16.msra.mxu1 %v7204_v57  ;;  %v2768_v57 = vor.u32 %v2766_v54, %v2764_v50  ;;  %v2812_v17 = vrot.slane %v2810_v13, 7  ;;  %v7233_v54 = vld [vmem:[%s8899_s4 + $0x158] sm:$0xff]  }
 0x2d3   : > { %6719 = vmatprep.subr.bf16.mxu1 %v7205_v34 }
 0x2d4   : > { %v2778_v31 = vmul.bf16 %v2768_v57, %v8162_v56  ;;  %v2815_v48 = vor.u32 %v2813_v37, %v2812_v17  ;;  %v3381_v57 = vshrl.u32 %v7243_v4, 16  ;;  %v7234_v37 = vld [vmem:[%s8899_s4 + $0x160] sm:$0xff]  }
 0x2d6   : > { %6720 = vmatpush3.bf16.msra.mxu1 %v7205_v34  ;;  %v7219_v34 = vld [vmem:[%s8899_s4 + $0x100] sm:$0xff]   ;;  %v2826_v5 = vshrl.u32 %v2778_v31, 16  ;;  %v2816_v9 = vsel %vm2796_vm6, %v2804_v18, %v2815_v48  ;;  %v2829_v21 = vshll.u32 %v2778_v31, 16  ;;  %v7226_v18 = vld [vmem:[%s8899_s4 + $0x130] sm:$0xff]   ;;  %v3383_v10 = vrot.slane %v3381_v57, 4 }
 0x2d7   : > { %6729 = vmatprep.subr.bf16.mxu1 %v7207_v61 }
 0x2d8   : > { %v2828_v58 = vrot.slane %v2826_v5, 7  ;;  %v3386_v5 = vrot.slane %v3384_v44, 5 }
 0x2d9   : > { %6722 = vmatmul.mubr.bf16.vlgmr.msra.gmra.mrb[16].mxu1 %v2562_v23  ;;  %v7231_v23 = vld [vmem:[%s8901_s6 + $0x60] sm:$0xff]  }
 0x2da   : > { %6725 = vmatprep.mubr.bf16.mxu1 %v2571_v62  ;;  %6730 = vmatpush3.bf16.msra.mxu1 %v7207_v61  ;;  %v2824_v61 = vsel %vm2796_vm6, %v2812_v17, %v2823_v1  ;;  %v2831_v26 = vor.u32 %v2829_v21, %v2828_v58  ;;  %v3131_v2 = vshrl.u32 %v7231_v23, 16  ;;  %v8309_v62 = vrot.slane %v3138_v14, 7 }
 0x2db   : > { %6731 = vmatprep.subr.bf16.mxu1 %v7209_v53  ;;  %v3387_v21 = vor.u32 %v3386_v5, %v3383_v10 }
 0x2dc   : > { %v2832_v15 = vsel %vm2796_vm6, %v2820_v36, %v2831_v26  ;;  %v3133_v45 = vrot.slane %v3131_v2, 7  ;;  %v3143_v59 = vor.u32 %v3141_v49, %v8309_v62  ;;  %v7236_v26 = vld [vmem:[%s8899_s4 + $0x170] sm:$0xff]  }
 0x2de   : > { %6732 = vmatpush3.bf16.msra.mxu1 %v7209_v53  ;;  %v7224_v53 = vld [vmem:[%s8899_s4 + $0x120] sm:$0xff]   ;;  %v3144_v29 = vsel %vm2796_vm6, %v3133_v45, %v3143_v59 }
 0x2df   : > { %6733 = vmatprep.subr.bf16.mxu1 %v7210_v60  ;;  %v8324_v16 = vmul.bf16 %v3144_v29, %v8116_v43 }
 0x2e1   : > { %6726 = vmatmul.mubr.bf16.gmra.mrb[20].mxu1 %v2580_v51  ;;  %v7238_v51 = vld [vmem:[%s8901_s6 + $0x70] sm:$0xff]   ;;  %v3196_v42 = vshll.u32 %v8324_v16, 16  ;;  %v3200_v59 = vshrl.u32 %v8324_v16, 16  ;;  %v7241_v16 = vld [vmem:[%s8899_s4 + $0x188] sm:$0xff]  }
 0x2e2   : > { %6734 = vmatpush3.bf16.msra.mxu1 %v7210_v60  ;;  %6745 = vmatprep.mubr.bf16.mxu1 %v2808_v25  ;;  %v3134_v60 = vshll.u32 %v7231_v23, 16  ;;  %v3146_v47 = vshrl.u32 %v7238_v51, 16  ;;  %v7237_v23 = vld [vmem:[%s8899_s4 + $0x178] sm:$0xff]  }
 0x2e3   : > { %6735 = vmatprep.subr.bf16.mxu1 %v7213_v38 }
 0x2e4   : > { %v3136_v19 = vor.u32 %v3134_v60, %v3133_v45  ;;  %v3148_v8 = vrot.slane %v3146_v47, 7  ;;  %v7239_v45 = vld [vmem:[%s8899_s4 + $0x180] sm:$0xff]   ;;  %v7250_v60 = vld [vmem:[%s8901_s6 + $0x90] sm:$0xff]  }
 0x2e6   : > { %6736 = vmatpush3.bf16.msra.mxu1 %v7213_v38  ;;  %v3166_v33 = vmul.bf16 %v3136_v19, %v8104_v41 }
 0x2e7   : > { %6737 = vmatprep.subr.bf16.mxu1 %v7214_v24 }
 0x2e8   : > { %v3191_v38 = vshll.u32 %v3166_v33, 16  ;;  %v3189_v50 = vshrl.u32 %v3166_v33, 16 }
 0x2ea   : > { %6738 = vmatpush3.bf16.msra.mxu1 %v7214_v24  ;;  %v3193_v25 = vrot.slane %v3191_v38, 1  ;;  %v8341_v24 = vrot.slane %v3196_v42, 1 }
 0x2eb   : > { %6739 = vmatprep.subr.bf16.mxu1 %v7215_v6 }
 0x2ec   : > { %v3194_v52 = vor.u32 %v3193_v25, %v3189_v50  ;;  %v3202_v38 = vor.u32 %v3200_v59, %v8341_v24  ;;  %v3401_v50 = vshll.u32 %v7250_v60, 16 }
 0x2ee   : > { %6740 = vmatpush3.bf16.msra.mxu1 %v7215_v6  ;;  %v7244_v6 = vld [vmem:[%s8901_s6 + $0x88] sm:$0xff]   ;;  %v3199_v13 = vsel %vm2737_vm5, %v3194_v52, %v8341_v24 }
 0x2ef   : > { %6741 = vmatprep.subr.bf16.mxu1 %v7216_v63  ;;  %v3389_v31 = vshrl.u32 %v7244_v6, 16  ;;  %v3392_v36 = vshll.u32 %v7244_v6, 16 }
 0x2f1   : > { %v3391_v1 = vrot.slane %v3389_v31, 4  ;;  %v3403_v31 = vrot.slane %v3401_v50, 5 }
 0x2f2   : > { %6742 = vmatpush3.bf16.msra.mxu1 %v7216_v63  ;;  %v3149_v63 = vshll.u32 %v7238_v51, 16  ;;  %v7252_v51 = vld [vmem:[%s8901_s6 + $0x98] sm:$0xff]  }
 0x2f3   : > { %6743 = vmatprep.subr.bf16.mxu1 %v7217_v11 }
 0x2f6   : > { %6744 = vmatpush3.bf16.msra.mxu1 %v7217_v11 }
 0x2f7   : > { %6753 = vmatprep.subr.bf16.mxu1 %v7219_v34 }
 0x2f9   : > { %6746 = vmatmul.mubr.bf16.vlgmr.msra.gmra.mrb[16].mxu1 %v2816_v9  ;;  %v7235_v9 = vld [vmem:[%s8899_s4 + $0x168] sm:$0xff]  }
 0x2fa   : > { %6749 = vmatprep.mubr.bf16.mxu1 %v2824_v61  ;;  %6754 = vmatpush3.bf16.msra.mxu1 %v7219_v34  ;;  %v3151_v34 = vor.u32 %v3149_v63, %v3148_v8  ;;  %v7242_v63 = vld [vmem:[%s8899_s4 + $0x190] sm:$0xff]  }
 0x2fb   : > { %6755 = vmatprep.subr.bf16.mxu1 %v7221_v28 }
 0x2fc   : > { %v3152_v58 = vsel %vm2796_vm6, %v8309_v62, %v3151_v34  ;;  %v3100_v62 = vld [vmem:[#allocation3 + $0x28] sm:$0x1]  ;;  %v7245_v34 = vld [vmem:[%s8899_s4 + $0x198] sm:$0xff]  }
 0x2fe   : > { %6756 = vmatpush3.bf16.msra.mxu1 %v7221_v28  ;;  %v3394_v28 = vrot.slane %v3392_v36, 5 }
 0x2ff   : > { %6757 = vmatprep.subr.bf16.mxu1 %v7222_v27 }
 0x301   : > { %6750 = vmatmul.mubr.bf16.gmra.mrb[20].mxu1 %v2832_v15 }
 0x302   : > { %6758 = vmatpush3.bf16.msra.mxu1 %v7222_v27  ;;  %6769 = vmatprep.mubr.bf16.mxu1 %v8104_v41  ;;  %v7240_v41 = vld [vmem:[%s8901_s6 + $0x78] sm:$0xff]   ;;  %v8364_v27 = vor.u32 %v3394_v28, %v3391_v1  ;;  %v7246_v28 = vld [vmem:[%s8899_s4 + $0x1a0] sm:$0xff]  }
 0x303   : > { %6759 = vmatprep.subr.bf16.mxu1 %v7223_v55  ;;  %v3154_v12 = vshrl.u32 %v7240_v41, 16  ;;  %v3157_v17 = vshll.u32 %v7240_v41, 16  ;;  %v3398_v41 = vshrl.u32 %v7250_v60, 16 }
 0x305   : > { %v3156_v11 = vrot.slane %v3154_v12, 7 }
 0x306   : > { %6760 = vmatpush3.bf16.msra.mxu1 %v7223_v55  ;;  %v3168_v55 = vmul.bf16 %v3152_v58, %v8136_v0 }
 0x307   : > { %6761 = vmatprep.subr.bf16.mxu1 %v7224_v53  ;;  %v3159_v48 = vor.u32 %v3157_v17, %v3156_v11  ;;  %v3400_v17 = vrot.slane %v3398_v41, 4  ;;  %v7264_v41 = vld [vmem:[%s8901_s6 + $0xa8] sm:$0xff]  }
 0x308   : > { %v3204_v14 = vshll.u32 %v3168_v55, 16 }
 0x309   : > { %v3160_v61 = vsel %vm2796_vm6, %v3148_v8, %v3159_v48  ;;  %v3410_v8 = vshll.u32 %v7252_v51, 16  ;;  %v3404_v5 = vor.u32 %v3403_v31, %v3400_v17  ;;  %v7260_v17 = vld [vmem:[%s8899_s4 + $0x1f8] sm:$0xff]  }
 0x30a   : > { %6762 = vmatpush3.bf16.msra.mxu1 %v7224_v53  ;;  %v3169_v15 = vmul.bf16 %v3160_v61, %v8162_v56  ;;  %v3396_v53 = vsel %vm976_vm0, %v3387_v21, %v8364_v27  ;;  %v7247_v61 = vld [vmem:[%s8899_s4 + $0x1a8] sm:$0xff]  }
 0x30b   : > { %6763 = vmatprep.subr.bf16.mxu1 %v7225_v3  ;;  %v3421_v49 = vmul.bf16 %v3396_v53, %v8116_v43 }
 0x30c   : > { %v3212_v2 = vshll.u32 %v3169_v15, 16  ;;  %v3216_v52 = vshrl.u32 %v3169_v15, 16 }
 0x30e   : > { %6764 = vmatpush3.bf16.msra.mxu1 %v7225_v3  ;;  %v3420_v3 = vmul.bf16 %v3387_v21, %v3349_v32  ;;  %v3214_v33 = vrot.slane %v3212_v2, 1 }
 0x30f   : > { %6765 = vmatprep.subr.bf16.mxu1 %v7226_v18 }
 0x310   : > { %v3443_v19 = vshrl.u32 %v3420_v3, 16  ;;  %v3446_v29 = vshll.u32 %v3420_v3, 16 }
 0x312   : > { %6766 = vmatpush3.bf16.msra.mxu1 %v7226_v18  ;;  %v3206_v18 = vrot.slane %v3204_v14, 1  ;;  %v3445_v47 = vrot.slane %v3443_v19, 3  ;;  %v3448_v4 = vrot.slane %v3446_v29, 4  ;;  %v7253_v19 = vld [vmem:[%s8899_s4 + $0x1c8] sm:$0xff]  }
 0x313   : > { %6767 = vmatprep.subr.bf16.mxu1 %v7227_v20 }
 0x314   : > { %v3449_v44 = vor.u32 %v3448_v4, %v3445_v47  ;;  %v3807_v4 = vshrl.u32 %v7264_v41, 16 }
 0x316   : > { %6768 = vmatpush3.bf16.msra.mxu1 %v7227_v20  ;;  %v3170_v20 = vmul.bf16 %v3156_v11, %v3100_v62 }
 0x317   : > { %6777 = vmatprep.subr.bf16.mxu1 %v7228_v7 }
 0x318   : > { %v3220_v25 = vshll.u32 %v3170_v20, 16 }
 0x319   : > { %6770 = vmatmul.mubr.bf16.vlgmr.msra.gmra.mrb[16].mxu1 %v8116_v43  ;;  %v3454_v43 = vshll.u32 %v3421_v49, 16 }
 0x31a   : > { %6773 = vmatprep.mubr.bf16.mxu1 %v8136_v0  ;;  %6778 = vmatpush3.bf16.msra.mxu1 %v7228_v7  ;;  %v3208_v7 = vshrl.u32 %v3168_v55, 16  ;;  %v3222_v57 = vrot.slane %v3220_v25, 1  ;;  %v7248_v55 = vld [vmem:[%s8899_s4 + $0x1b0] sm:$0xff]  }
 0x31b   : > { %6779 = vmatprep.subr.bf16.mxu1 %v7229_v40  ;;  %v3456_v6 = vrot.slane %v3454_v43, 4  ;;  %v3611_v43 = vld [vmem:[#allocation3 + $0x8] sm:$0xf0] }
 0x31c   : > { %v3210_v42 = vor.u32 %v3208_v7, %v3206_v18 }
 0x31e   : > { %6780 = vmatpush3.bf16.msra.mxu1 %v7229_v40  ;;  %v3451_v40 = vshrl.u32 %v3421_v49, 16  ;;  %v3215_v24 = vsel %vm2737_vm5, %v3210_v42, %v3214_v33  ;;  %v3634_v42 = vrot.slane %v3611_v43, 4 }
 0x31f   : > { %6781 = vmatprep.subr.bf16.mxu1 %v7230_v30 }
 0x320   : > { %v3453_v12 = vrot.slane %v3451_v40, 3  ;;  %v3636_v47 = vsel %vm2156_vm3, %v3634_v42, %v8126_v35  ;;  %v7258_v35 = vld [vmem:[%s8899_s4 + $0x1e8] sm:$0xff]   ;;  %v7268_v42 = vld [vmem:[%s8899_s4 + $0x230] sm:$0xff]  }
 0x321   : > { %6774 = vmatmul.mubr.bf16.gmra.mrb[20].mxu1 %v8162_v56 }
 0x322   : > { %6782 = vmatpush3.bf16.msra.mxu1 %v7230_v30  ;;  %6793 = vmatprep.mubr.bf16.mxu1 %v3199_v13  ;;  %v3207_v30 = vsel %vm2737_vm5, %v3202_v38, %v3206_v18  ;;  %v3218_v13 = vor.u32 %v3216_v52, %v3214_v33  ;;  %v3457_v11 = vor.u32 %v3456_v6, %v3453_v12  ;;  %v7251_v18 = vld [vmem:[%s8899_s4 + $0x1c0] sm:$0xff]   ;;  %v7254_v38 = vld [vmem:[%s8899_s4 + $0x1d0] sm:$0xff]   ;;  %v3810_v12 = vshll.u32 %v7264_v41, 16 }
 0x323   : > { %6783 = vmatprep.subr.bf16.mxu1 %v7233_v54  ;;  %v7257_v6 = vld [vmem:[%s8899_s4 + $0x1e0] sm:$0xff]  }
 0x324   : > { %v3223_v10 = vsel %vm2737_vm5, %v3218_v13, %v3222_v57  ;;  %v3458_v48 = vsel %vm2283_vm4, %v3449_v44, %v3457_v11  ;;  %v7259_v44 = vld [vmem:[%s8899_s4 + $0x1f0] sm:$0xff]  }
 0x326   : > { %6784 = vmatpush3.bf16.msra.mxu1 %v7233_v54  ;;  %v3407_v54 = vshrl.u32 %v7252_v51, 16 }
 0x327   : > { %6785 = vmatprep.subr.bf16.mxu1 %v7234_v37 }
 0x328   : > { %v3409_v36 = vrot.slane %v3407_v54, 4 }
 0x32a   : > { %6786 = vmatpush3.bf16.msra.mxu1 %v7234_v37  ;;  %v3412_v37 = vrot.slane %v3410_v8, 5  ;;  %v3809_v8 = vrot.slane %v3807_v4, 3 }
 0x32b   : > { %6787 = vmatprep.subr.bf16.mxu1 %v7235_v9 }
 0x32c   : > { %v3413_v1 = vor.u32 %v3412_v37, %v3409_v36  ;;  %v7353_v36 = vld [vmem:[#allocation3 + $0x10] sm:$0xff] }
 0x32e   : > { %6788 = vmatpush3.bf16.msra.mxu1 %v7235_v9  ;;  %v3405_v9 = vsel %vm976_vm0, %v8364_v27, %v3404_v5  ;;  %v3414_v58 = vsel %vm976_vm0, %v3404_v5, %v3413_v1 }
 0x32f   : > { %6789 = vmatprep.subr.bf16.mxu1 %v7236_v26  ;;  %v3422_v21 = vmul.bf16 %v3405_v9, %v8136_v0  ;;  %v7249_v0 = vld [vmem:[%s8899_s4 + $0x1b8] sm:$0xff]  }
 0x331   : > { %v3460_v15 = vshrl.u32 %v3422_v21, 16  ;;  %v3463_v27 = vshll.u32 %v3422_v21, 16 }
 0x332   : > { %6790 = vmatpush3.bf16.msra.mxu1 %v7236_v26  ;;  %v3423_v26 = vmul.bf16 %v3414_v58, %v8162_v56  ;;  %v7271_v58 = vld [vmem:[%s8901_s6 + $0xb8] sm:$0xff]  }
 0x333   : > { %6791 = vmatprep.subr.bf16.mxu1 %v7237_v23  ;;  %v3462_v14 = vrot.slane %v3460_v15, 3  ;;  %v3465_v3 = vrot.slane %v3463_v27, 4 }
 0x334   : > { %v3469_v32 = vshrl.u32 %v3423_v26, 16  ;;  %v3472_v53 = vshll.u32 %v3423_v26, 16 }
 0x336   : > { %6792 = vmatpush3.bf16.msra.mxu1 %v7237_v23  ;;  %v8415_v23 = vld [vmem:[#allocation3 + $0x28] sm:$0xf]  ;;  %v3471_v62 = vrot.slane %v3469_v32, 3  ;;  %v3474_v49 = vrot.slane %v3472_v53, 4 }
 0x337   : > { %6801 = vmatprep.subr.bf16.mxu1 %v7239_v45  ;;  %v3424_v2 = vmul.bf16 %v3413_v1, %v8415_v23 }
 0x338   : > { %v3475_v20 = vor.u32 %v3474_v49, %v3471_v62 }
 0x339   : > { %6794 = vmatmul.mubr.bf16.vlgmr.msra.gmra.mrb[16].mxu1 %v3207_v30  ;;  %v3478_v60 = vshrl.u32 %v3424_v2, 16  ;;  %v3481_v59 = vshll.u32 %v3424_v2, 16  ;;  %v7256_v30 = vld [vmem:[%s8899_s4 + $0x1d8] sm:$0xff]   ;;  %v3641_v2 = vrot.slane %v8415_v23, 4 }
 0x33a   : > { %6797 = vmatprep.mubr.bf16.mxu1 %v3215_v24  ;;  %6802 = vmatpush3.bf16.msra.mxu1 %v7239_v45  ;;  %v3466_v45 = vor.u32 %v3465_v3, %v3462_v14  ;;  %v3828_v14 = vshll.u32 %v7271_v58, 16  ;;  %v7263_v3 = vld [vmem:[%s8899_s4 + $0x210] sm:$0xff]  }
 0x33b   : > { %6803 = vmatprep.subr.bf16.mxu1 %v7241_v16  ;;  %v3480_v7 = vrot.slane %v3478_v60, 3  ;;  %v3483_v33 = vrot.slane %v3481_v59, 4  ;;  %v7265_v60 = vld [vmem:[%s8899_s4 + $0x218] sm:$0xff]  }
 0x33c   : > { %v3467_v29 = vsel %vm2283_vm4, %v3457_v11, %v3466_v45  ;;  %v3476_v40 = vsel %vm2283_vm4, %v3466_v45, %v3475_v20  ;;  %v3830_v45 = vrot.slane %v3828_v14, 4 }
 0x33d   : > { %v3484_v51 = vor.u32 %v3483_v33, %v3480_v7 }
 0x33e   : > { %6804 = vmatpush3.bf16.msra.mxu1 %v7241_v16  ;;  %v7255_v16 = vld [vmem:[%s8901_s6 + $0xa0] sm:$0xff]  }
 0x33f   : > { %6805 = vmatprep.subr.bf16.mxu1 %v7242_v63  ;;  %v3485_v25 = vsel %vm2283_vm4, %v3475_v20, %v3484_v51  ;;  %v3799_v50 = vshrl.u32 %v7255_v16, 16  ;;  %v3802_v24 = vshll.u32 %v7255_v16, 16 }
 0x341   : > { %6798 = vmatmul.mubr.bf16.gmra.mrb[20].mxu1 %v3223_v10  ;;  %v3801_v52 = vrot.slane %v3799_v50, 3  ;;  %v3804_v54 = vrot.slane %v3802_v24, 4  ;;  %v3639_v10 = vrot.slane %v8162_v56, 4  ;;  %v7269_v50 = vld [vmem:[%s8899_s4 + $0x238] sm:$0xff]  }
 0x342   : > { %6806 = vmatpush3.bf16.msra.mxu1 %v7242_v63  ;;  %6817 = vmatprep.mubr.bf16.mxu1 %v3458_v48  ;;  %v3812_v63 = vrot.slane %v3810_v12, 4  ;;  %v7270_v48 = vld [vmem:[%s8901_s6 + $0xb0] sm:$0xff]  }
 0x343   : > { %6807 = vmatprep.subr.bf16.mxu1 %v7245_v34  ;;  %v3805_v13 = vor.u32 %v3804_v54, %v3801_v52  ;;  %v3640_v21 = vsel %vm2156_vm3, %v8143_v39, %v3639_v10  ;;  %v3816_v26 = vshrl.u32 %v7270_v48, 16  ;;  %v3642_v59 = vsel %vm2156_vm3, %v3639_v10, %v3641_v2 }
 0x344   : > { %v3813_v57 = vor.u32 %v3812_v63, %v3809_v8 }
 0x345   : > { %v3838_v31 = vmul.bf16 %v3805_v13, %v3611_v43  ;;  %v3818_v49 = vrot.slane %v3816_v26, 3  ;;  %v7354_v43 = vld [vmem:[#allocation3 + $0x18] sm:$0xff] }
 0x346   : > { %6808 = vmatpush3.bf16.msra.mxu1 %v7245_v34  ;;  %v3814_v11 = vsel %vm2283_vm4, %v3805_v13, %v3813_v57  ;;  %v7261_v34 = vld [vmem:[%s8899_s4 + $0x200] sm:$0xff]  }
 0x347   : > { %6809 = vmatprep.subr.bf16.mxu1 %v7246_v28  ;;  %v3839_v37 = vmul.bf16 %v7353_v36, %v3814_v11  ;;  %v3861_v5 = vshrl.u32 %v3838_v31, 16  ;;  %v3864_v1 = vshll.u32 %v3838_v31, 16  ;;  %v7364_v31 = vmov 0.0   ;;  %v5958_v36 = vld [vmem:[%s8900_s5] ss:$0 sm:$0xff] }
 0x348   : > { %6873 = vmatprep.subr.bf16.mxu0 %v7364_v31  ;;  %6881 = vmatprep.mubr.msk.bf16.mxu0 %vm7365_vm7, %v7364_v31 }
 0x349   : > { %v3872_v9 = vshll.u32 %v3839_v37, 16  ;;  %v3863_v15 = vrot.slane %v3861_v5, 4  ;;  %v3866_v27 = vrot.slane %v3864_v1, 5 }
 0x34a   : > { %6810 = vmatpush3.bf16.msra.mxu1 %v7246_v28  ;;  %v3869_v28 = vshrl.u32 %v3839_v37, 16 }
 0x34b   : > { %6811 = vmatprep.subr.bf16.mxu1 %v7247_v61  ;;  %v3874_v53 = vrot.slane %v3872_v9, 5  ;;  %v3867_v39 = vor.u32 %v3866_v27, %v3863_v15 }
 0x34c   : > { %v3871_v32 = vrot.slane %v3869_v28, 4 }
 0x34e   : > { %6812 = vmatpush3.bf16.msra.mxu1 %v7247_v61  ;;  %v7262_v61 = vld [vmem:[%s8899_s4 + $0x208] sm:$0xff]   ;;  %v3875_v62 = vor.u32 %v3874_v53, %v3871_v32 }
 0x34f   : > { %6813 = vmatprep.subr.bf16.mxu1 %v7248_v55 }
 0x350   : > { %v3876_v20 = vsel %vm976_vm0, %v3867_v39, %v3875_v62 }
 0x352   : > { %6814 = vmatpush3.bf16.msra.mxu1 %v7248_v55  ;;  %v3819_v55 = vshll.u32 %v7270_v48, 16 }
 0x353   : > { %6815 = vmatprep.subr.bf16.mxu1 %v7249_v0 }
 0x356   : > { %6816 = vmatpush3.bf16.msra.mxu1 %v7249_v0  ;;  %v3825_v0 = vshrl.u32 %v7271_v58, 16 }
 0x357   : > { %6825 = vmatprep.subr.bf16.mxu1 %v7251_v18 }
 0x359   : > { %6818 = vmatmul.mubr.bf16.vlgmr.msra.gmra.mrb[16].mxu1 %v3467_v29  ;;  %v7266_v29 = vld [vmem:[%s8899_s4 + $0x220] sm:$0xff]  }
 0x35a   : > { %6821 = vmatprep.mubr.bf16.mxu1 %v3476_v40  ;;  %6826 = vmatpush3.bf16.msra.mxu1 %v7251_v18  ;;  %v3821_v18 = vrot.slane %v3819_v55, 4  ;;  %v7267_v40 = vld [vmem:[%s8899_s4 + $0x228] sm:$0xff]  }
 0x35b   : > { %6827 = vmatprep.subr.bf16.mxu1 %v7253_v19 }
 0x35e   : > { %6828 = vmatpush3.bf16.msra.mxu1 %v7253_v19  ;;  %v3822_v19 = vor.u32 %v3821_v18, %v3818_v49 }
 0x35f   : > { %6829 = vmatprep.subr.bf16.mxu1 %v7254_v38 }
 0x360   : > { %v3823_v7 = vsel %vm2283_vm4, %v3813_v57, %v3822_v19 }
 0x361   : > { %6822 = vmatmul.mubr.bf16.gmra.mrb[20].mxu1 %v3485_v25 }
 0x362   : > { %6830 = vmatpush3.bf16.msra.mxu1 %v7254_v38  ;;  %6841 = vmatprep.mubr.bf16.mxu1 %v3636_v47  ;;  %v3840_v38 = vmul.bf16 %v7354_v43, %v3823_v7  ;;  %v3768_v47 = vld [vmem:[#allocation3 + $0x28] sm:$0x1f] }
 0x363   : > { %6831 = vmatprep.subr.bf16.mxu1 %v7256_v30 }
 0x364   : > { %v3878_v16 = vshrl.u32 %v3840_v38, 16  ;;  %v3881_v41 = vshll.u32 %v3840_v38, 16 }
 0x366   : > { %6832 = vmatpush3.bf16.msra.mxu1 %v7256_v30  ;;  %v3880_v24 = vrot.slane %v3878_v16, 4  ;;  %v3883_v4 = vrot.slane %v3881_v41, 5 }
 0x367   : > { %6833 = vmatprep.subr.bf16.mxu1 %v7257_v6 }
 0x368   : > { %v3884_v52 = vor.u32 %v3883_v4, %v3880_v24 }
 0x36a   : > { %6834 = vmatpush3.bf16.msra.mxu1 %v7257_v6 }
 0x36b   : > { %6835 = vmatprep.subr.bf16.mxu1 %v7258_v35 }
 0x36e   : > { %6836 = vmatpush3.bf16.msra.mxu1 %v7258_v35  ;;  %v3885_v35 = vsel %vm976_vm0, %v3875_v62, %v3884_v52 }
 0x36f   : > { %6837 = vmatprep.subr.bf16.mxu1 %v7259_v44 }
 0x372   : > { %6838 = vmatpush3.bf16.msra.mxu1 %v7259_v44 }
 0x373   : > { %6839 = vmatprep.subr.bf16.mxu1 %v7260_v17 }
 0x376   : > { %6840 = vmatpush3.bf16.msra.mxu1 %v7260_v17 }
 0x377   : > { %6849 = vmatprep.subr.bf16.mxu1 %v7261_v34 }
 0x379   : > { %6842 = vmatmul.mubr.bf16.vlgmr.msra.gmra.mrb[16].mxu1 %v8155_v46  ;;  %v3827_v46 = vrot.slane %v3825_v0, 3  ;;  %v8509_v0 = vld [vmem:[#allocation2 + $0x20] sm:$0xf] }
 0x37a   : > { %6845 = vmatprep.mubr.bf16.mxu1 %v3640_v21  ;;  %6850 = vmatpush3.bf16.msra.mxu1 %v7261_v34  ;;  %v4206_v49 = vshll.u32 %v8509_v0, 16  ;;  %v4210_v7 = vshrl.u32 %v8509_v0, 16 }
 0x37b   : > { %6851 = vmatprep.subr.bf16.mxu1 %v7262_v61  ;;  %v3831_v23 = vor.u32 %v3830_v45, %v3827_v46 }
 0x37d   : > { %v3832_v33 = vsel %vm2283_vm4, %v3822_v19, %v3831_v23 }
 0x37e   : > { %6852 = vmatpush3.bf16.msra.mxu1 %v7262_v61  ;;  %v3841_v51 = vmul.bf16 %v3832_v33, %v8162_v56  ;;  %v3842_v56 = vmul.bf16 %v3831_v23, %v3768_v47 }
 0x37f   : > { %6853 = vmatprep.subr.bf16.mxu1 %v7263_v3 }
 0x380   : > { %v3887_v30 = vshrl.u32 %v3841_v51, 16  ;;  %v3890_v25 = vshll.u32 %v3841_v51, 16  ;;  %v3896_v54 = vshrl.u32 %v3842_v56, 16  ;;  %v3899_v8 = vshll.u32 %v3842_v56, 16 }
 0x381   : > { %6846 = vmatmul.mubr.bf16.gmra.mrb[20].mxu1 %v3642_v59 }
 0x382   : > { %6854 = vmatpush3.bf16.msra.mxu1 %v7263_v3  ;;  %6865 = vmatprep.mubr.bf16.mxu1 %v3876_v20  ;;  %v3889_v12 = vrot.slane %v3887_v30, 4  ;;  %v3892_v6 = vrot.slane %v3890_v25, 5  ;;  %v3898_v13 = vrot.slane %v3896_v54, 4  ;;  %v3901_v57 = vrot.slane %v3899_v8, 5 }
 0x383   : > { %6855 = vmatprep.subr.bf16.mxu1 %v7265_v60 }
 0x384   : > { %v3893_v63 = vor.u32 %v3892_v6, %v3889_v12  ;;  %v3902_v11 = vor.u32 %v3901_v57, %v3898_v13  ;;  %v4102_v6 = vld [vmem:[#allocation2 + $0x20] sm:$0x1] }
 0x386   : > { %6856 = vmatpush3.bf16.msra.mxu1 %v7265_v60  ;;  %v3894_v44 = vsel %vm976_vm0, %v3884_v52, %v3893_v63  ;;  %v3903_v17 = vsel %vm976_vm0, %v3893_v63, %v3902_v11  ;;  %v4204_v63 = vld [vmem:[#allocation2 + $0x24] sm:$0x1] }
 0x387   : > { %6857 = vmatprep.subr.bf16.mxu1 %v7266_v29 }
 0x38a   : > { %6858 = vmatpush3.bf16.msra.mxu1 %v7266_v29  ;;  %v8514_v29 = vrot.slane %v4206_v49, 5 }
 0x38b   : > { %6859 = vmatprep.subr.bf16.mxu1 %v7267_v40 }
 0x38e   : > { %6860 = vmatpush3.bf16.msra.mxu1 %v7267_v40 }
 0x38f   : > { %6861 = vmatprep.subr.bf16.mxu1 %v7268_v42 }
 0x392   : > { %6862 = vmatpush3.bf16.msra.mxu1 %v7268_v42 }
 0x393   : > { %6863 = vmatprep.subr.bf16.mxu1 %v7269_v50 }
 0x396   : > { %6864 = vmatpush3.bf16.msra.mxu1 %v7269_v50 }
 0x397   : > { %7045 = vmatprep.subr.bf16.mxu1 %v7364_v31 }
 0x399   : > { %6866 = vmatmul.mubr.bf16.vlgmr.msra.gmra.mrb[16].mxu1 %v3885_v35  ;;  %v4212_v35 = vrot.slane %v4210_v7, 4 }
 0x39a   : > { %6869 = vmatprep.mubr.bf16.mxu1 %v3894_v44 }
 0x3a1   : > { %6870 = vmatmul.mubr.bf16.gmra.mrb[20].mxu1 %v3903_v17 }
 0x3a2   : > { %7061 = vmatprep.mubr.msk.bf16.mxu1 %vm7365_vm7, %v7364_v31 }
 0x46c   : > { %v6867_v37 = vpop.f32.mrb[16].mxu1 }
 0x46d   : > { %v4038_v34 = vadd.f32 %v6867_v37, %v5958_v36  ;;  %v3990_v10 = vpop.f32.mrb[17].mxu1 }
 0x46e   : > { %v4036_v48 = vadd.f32 %v5958_v36, %v3990_v10  ;;  %v6868_v5 = vpop.f32.mrb[18].mxu1  ;;  %v4216_v10 = vshll.u32 %v4204_v63, 16 }
 0x46f   : > { %v4039_v1 = vadd.f32 %v6868_v5, %v5958_v36  ;;  %v3993_v28 = vpop.f32.mrb[19].mxu1  ;;  %v4046_v58 = vmax.f32 %v4038_v34, 0.0  ;;  %v4183_v34 = vshll.u32 %v4102_v6, 16 }
 0x470   : > { %v4037_v9 = vadd.f32 %v5958_v36, %v3993_v28  ;;  %v4044_v21 = vmax.f32 %v4036_v48, 0.0  ;;  %v4218_v7 = vrot.slane %v4216_v10, 5 }
 0x471   : > { %v4047_v61 = vmax.f32 %v4039_v1, 0.0 }
 0x472   : > { %v4045_v26 = vmax.f32 %v4037_v9, 0.0 }
 0x473   : > { %v6321_v55 = vpack.c.bf16 %v4047_v61, %v4046_v58  ;;  %v4213_v58 = vor.u32 %v4212_v35, %v8514_v29 }
 0x474   : > { %v6316_v15 = vpack.c.bf16 %v4045_v26, %v4044_v21  ;;  %v6871_v27 = vpop.f32.mrb[20].mxu1 }
 0x475   : > { %6348 = vst [vmem:[#allocation2 + $0x8] sm:$0xff] %v6321_v55   ;;  %v4042_v32 = vadd.f32 %v6871_v27, %v5958_v36  ;;  %v4006_v53 = vpop.f32.mrb[21].mxu1 }
 0x476   : > { %6317 = vst [vmem:[#allocation2] sm:$0xff] %v6316_v15   ;;  %v4040_v14 = vadd.f32 %v5958_v36, %v4006_v53  ;;  %v6872_v3 = vpop.f32.mrb[22].mxu1 }
 0x477   : > { %v4043_v2 = vadd.f32 %v6872_v3, %v5958_v36  ;;  %v4009_v39 = vpop.f32.mrb[23].mxu1  ;;  %v4050_v18 = vmax.f32 %v4042_v32, 0.0 }
 0x478   : > { %v4041_v62 = vadd.f32 %v5958_v36, %v4009_v39  ;;  %v4048_v45 = vmax.f32 %v4040_v14, 0.0 }
 0x479   : > { %v4051_v46 = vmax.f32 %v4043_v2, 0.0 }
 0x47a   : > { %v4049_v60 = vmax.f32 %v4041_v62, 0.0 }
 0x47b   : > { %v6331_v59 = vpack.c.bf16 %v4051_v46, %v4050_v18 }
 0x47c   : > { %v6326_v20 = vpack.c.bf16 %v4049_v60, %v4048_v45  ;;  %v4096_v19 = vld [vmem:[#allocation2 + $0x8] sm:$0xf]  ;;  %v8512_v23 = vld [vmem:[#allocation2 + $0xc] sm:$0xf] }
 0x47d   : > { %6350 = vst [vmem:[#allocation2 + $0x18] sm:$0xff] %v6331_v59   ;;  %v4094_v33 = vld [vmem:[#allocation2] sm:$0xf]  ;;  %v4095_v40 = vld [vmem:[#allocation2 + $0x4] sm:$0xf]  ;;  %v4123_v43 = vshll.u32 %v4096_v19, 16 }
 0x47e   : > { %v4127_v38 = vshrl.u32 %v4096_v19, 16  ;;  %6349 = vst [vmem:[#allocation2 + $0x10] sm:$0xff] %v6326_v20   ;;  %v4104_v51 = vshrl.u32 %v4094_v33, 16  ;;  %v4107_v42 = vshll.u32 %v4094_v33, 16  ;;  %v4113_v16 = vshll.u32 %v4095_v40, 16 }
 0x47f   : > { %v4117_v41 = vshrl.u32 %v4095_v40, 16  ;;  %v4125_v30 = vrot.slane %v4123_v43, 5  ;;  %v4133_v47 = vshll.u32 %v8512_v23, 16  ;;  %v4137_v50 = vshrl.u32 %v8512_v23, 16 }
 0x480   : > { %v4129_v25 = vrot.slane %v4127_v38, 4  ;;  %v4106_v24 = vrot.slane %v4104_v51, 4  ;;  %v4109_v4 = vrot.slane %v4107_v42, 5  ;;  %v4115_v56 = vrot.slane %v4113_v16, 5 }
 0x481   : > { %v4119_v12 = vrot.slane %v4117_v41, 4  ;;  %v4135_v54 = vrot.slane %v4133_v47, 5  ;;  %v4139_v8 = vrot.slane %v4137_v50, 4  ;;  %v4214_v16 = vrot.slane %v4213_v58, 4  ;;  %v7276_v58 = vld [vmem:[%s8903_s8 + $0x58] sm:$0xff]  }
 0x482   : > { %v4130_v52 = vor.u32 %v4129_v25, %v4125_v30  ;;  %v4110_v13 = vor.u32 %v4109_v4, %v4106_v24 }
 0x483   : > { %v4120_v57 = vor.u32 %v4119_v12, %v4115_v56  ;;  %v4140_v11 = vor.u32 %v4139_v8, %v4135_v54 }
 0x484   : > { %v4131_v44 = vrot.slane %v4130_v52, 4  ;;  %v4111_v17 = vrot.slane %v4110_v13, 4  ;;  %v4100_v37 = vld [vmem:[#allocation2 + $0x18] sm:$0xf]  ;;  %v4101_v14 = vld [vmem:[#allocation2 + $0x1c] sm:$0xf] }
 0x485   : > { %v4121_v36 = vrot.slane %v4120_v57, 4  ;;  %v4098_v5 = vld [vmem:[#allocation2 + $0x10] sm:$0xf]  ;;  %v4099_v1 = vld [vmem:[#allocation2 + $0x14] sm:$0xf]  ;;  %v4141_v28 = vrot.slane %v4140_v11, 4 }
 0x486   : > { %v4136_v48 = vsel %vm7518_vm2, %v4131_v44, %v4135_v54  ;;  %v4163_v9 = vshll.u32 %v4100_v37, 16  ;;  %v4116_v61 = vsel %vm7518_vm2, %v4111_v17, %v4115_v56  ;;  %v4143_v55 = vshll.u32 %v4098_v5, 16 }
 0x487   : > { %v4126_v21 = vsel %vm7518_vm2, %v4121_v36, %v4125_v30  ;;  %v4197_v26 = vmax.bf16 %v4136_v48, %v4096_v19  ;;  %v4195_v15 = vmax.bf16 %v4116_v61, %v4094_v33  ;;  %v4147_v32 = vshrl.u32 %v4098_v5, 16  ;;  %v7277_v61 = vld [vmem:[%s8903_s8 + $0x60] sm:$0xff]  }
 0x488   : > { %v4196_v27 = vmax.bf16 %v4126_v21, %v4095_v40  ;;  %v4153_v53 = vshll.u32 %v4099_v1, 16  ;;  %v4145_v3 = vrot.slane %v4143_v55, 5  ;;  %v4157_v2 = vshrl.u32 %v4099_v1, 16  ;;  %v7278_v21 = vld [vmem:[%s8903_s8 + $0x68] sm:$0xff]   ;;  %v7280_v55 = vld [vmem:[%s8903_s8 + $0x78] sm:$0xff]  }
 0x489   : > { %v4165_v39 = vrot.slane %v4163_v9, 5  ;;  %v4167_v62 = vshrl.u32 %v4100_v37, 16  ;;  %v4149_v46 = vrot.slane %v4147_v32, 4  ;;  %v4173_v20 = vshll.u32 %v4101_v14, 16  ;;  %v7275_v9 = vld [vmem:[%s8903_s8 + $0x50] sm:$0xff]  }
 0x48a   : > { %v4224_v49 = vmax.bf16 %v4196_v27, %v4195_v15  ;;  %v4225_v18 = vmax.bf16 %v4197_v26, %v4196_v27  ;;  %v4155_v45 = vrot.slane %v4153_v53, 5  ;;  %v4159_v60 = vrot.slane %v4157_v2, 4  ;;  %v7287_v15 = vld [vmem:[%s8903_s8 + $0x200] sm:$0xff]   ;;  %v7289_v27 = vld [vmem:[%s8903_s8 + $0x208] sm:$0xff]   ;;  %v7291_v32 = vld [vmem:[%s8903_s8 + $0x210] sm:$0xff]  }
 0x48b   : > { %v4169_v59 = vrot.slane %v4167_v62, 4  ;;  %v4146_v19 = vsel %vm7518_vm2, %v4141_v28, %v4145_v3  ;;  %v4150_v33 = vor.u32 %v4149_v46, %v4145_v3  ;;  %v4177_v40 = vshrl.u32 %v4101_v14, 16  ;;  %7046 = vmatpush3.bf16.msra.mxu1 %v7287_v15  ;;  %v7293_v53 = vld [vmem:[%s8903_s8 + $0x218] sm:$0xff]   ;;  %v7297_v3 = vld [vmem:[%s8903_s8 + $0x228] sm:$0xff]   ;;  %v7299_v2 = vld [vmem:[%s8903_s8 + $0x230] sm:$0xff]  }
 0x48c   : > { %v5968_v43 = vcombine.low %v4224_v49, %v4225_v18  ;;  %v4160_v38 = vor.u32 %v4159_v60, %v4155_v45  ;;  %v4175_v42 = vrot.slane %v4173_v20, 5  ;;  %v4198_v25 = vmax.bf16 %v4146_v19, %v8512_v23  ;;  %7047 = vmatprep.subr.bf16.mxu1 %v7364_v31  ;;  %v7303_v49 = vld [vmem:[%s8905_s10 + $0x28] sm:$0xff]  }
 0x48d   : > { %v4170_v51 = vor.u32 %v4169_v59, %v4165_v39  ;;  %v4151_v41 = vrot.slane %v4150_v33, 4  ;;  %v4179_v30 = vrot.slane %v4177_v40, 4  ;;  %v4185_v56 = vrot.slane %v4183_v34, 5 }
 0x48e   : > { %6874 = vmatpush3.bf16.msra.mxu0 %v5968_v43  ;;  %v4161_v47 = vrot.slane %v4160_v38, 4  ;;  %v4219_v54 = vsel %vm7518_vm2, %v4214_v16, %v4218_v7  ;;  %v4226_v35 = vmax.bf16 %v4198_v25, %v4197_v26  ;;  %v7279_v26 = vld [vmem:[%s8903_s8 + $0x70] sm:$0xff]   ;;  %v5401_v59 = vshrl.u32 %v7303_v49, 16 }
 0x48f   : > { %6875 = vmatprep.subr.bf16.mxu0 %v7364_v31  ;;  %v4171_v50 = vrot.slane %v4170_v51, 4  ;;  %v4156_v24 = vsel %vm7518_vm2, %v4151_v41, %v4155_v45  ;;  %v4180_v4 = vor.u32 %v4179_v30, %v4175_v42  ;;  %v4223_v17 = vmax.bf16 %v4219_v54, %v8509_v0  ;;  %v7273_v0 = vld [vmem:[%s8903_s8 + $0x40] sm:$0xff]   ;;  %7048 = vmatpush3.bf16.msra.mxu1 %v7289_v27  ;;  %v7294_v27 = vld [vmem:[%s8903_s8 + $0x38] sm:$0xff]  }
 0x490   : > { %v4199_v12 = vmax.bf16 %v4156_v24, %v4098_v5  ;;  %v4166_v6 = vsel %vm7518_vm2, %v4161_v47, %v4165_v39  ;;  %7049 = vmatprep.subr.bf16.mxu1 %v7364_v31  ;;  %v7301_v39 = vld [vmem:[%s8903_s8 + $0x238] sm:$0xff]   ;;  %v5404_v20 = vshll.u32 %v7303_v49, 16  ;;  %v5403_v43 = vrot.slane %v5401_v59, 1  ;;  %v7283_v51 = vld [vmem:[%s8903_s8] sm:$0xff]  }
 0x491   : > { %v4176_v52 = vsel %vm7518_vm2, %v4171_v50, %v4175_v42  ;;  %v4200_v8 = vmax.bf16 %v4166_v6, %v4099_v1  ;;  %v4181_v23 = vrot.slane %v4180_v4, 4  ;;  %v7281_v50 = vld [vmem:[%s8905_s10] sm:$0xff]  }
 0x492   : > { %v4201_v63 = vmax.bf16 %v4176_v52, %v4100_v37  ;;  %v4227_v13 = vmax.bf16 %v4199_v12, %v4198_v25  ;;  %v5406_v19 = vrot.slane %v5404_v20, 2 }
 0x493   : > { %v4228_v57 = vmax.bf16 %v4200_v8, %v4199_v12  ;;  %v4186_v44 = vsel %vm7518_vm2, %v4181_v23, %v4185_v56  ;;  %v4209_v11 = vsel %vm7518_vm2, %v4181_v23, %v8514_v29  ;;  %v7274_v29 = vld [vmem:[%s8903_s8 + $0x48] sm:$0xff]   ;;  %7050 = vmatpush3.bf16.msra.mxu1 %v7291_v32  ;;  %v4327_v23 = vshll.u32 %v7281_v50, 16 }
 0x494   : > { %v5969_v36 = vcombine.low %v4226_v35, %v4227_v13  ;;  %v4229_v34 = vmax.bf16 %v4201_v63, %v4200_v8  ;;  %v4202_v10 = vmax.bf16 %v4186_v44, %v4101_v14  ;;  %v4222_v48 = vmax.bf16 %v4209_v11, %v4101_v14  ;;  %7051 = vmatprep.subr.bf16.mxu1 %v7364_v31  ;;  %v7295_v14 = vld [vmem:[%s8903_s8 + $0x220] sm:$0xff]   ;;  %v7284_v12 = vld [vmem:[%s8903_s8 + $0x8] sm:$0xff]   ;;  %v7285_v44 = vld [vmem:[%s8903_s8 + $0x10] sm:$0xff]  }
 0x495   : > { %v5407_v33 = vor.u32 %v5406_v19, %v5403_v43 }
 0x496   : > { %6876 = vmatpush3.bf16.msra.mxu0 %v5969_v36  ;;  %v5970_v37 = vcombine.low %v4228_v57, %v4229_v34  ;;  %v4230_v5 = vmax.bf16 %v4222_v48, %v4201_v63  ;;  %v4231_v1 = vmax.bf16 %v4223_v17, %v4202_v10  ;;  %v4324_v63 = vshrl.u32 %v7281_v50, 16  ;;  %v7286_v10 = vld [vmem:[%s8903_s8 + $0x18] sm:$0xff]  }
 0x497   : > { %6877 = vmatprep.subr.bf16.mxu0 %v7364_v31  ;;  %7052 = vmatpush3.bf16.msra.mxu1 %v7293_v53  ;;  %v4329_v36 = vrot.slane %v4327_v23, 7  ;;  %v7310_v23 = vld [vmem:[%s8903_s8 + $0xd0] sm:$0xff]  }
 0x498   : > { %v5971_v28 = vcombine.low %v4230_v5, %v4231_v1  ;;  %7053 = vmatprep.subr.bf16.mxu1 %v7364_v31  ;;  %v4326_v17 = vrot.slane %v4324_v63, 6  ;;  %v7288_v5 = vld [vmem:[%s8903_s8 + $0x20] sm:$0xff]  }
 0x49a   : > { %6878 = vmatpush3.bf16.msra.mxu0 %v5970_v37  ;;  %v4330_v48 = vor.u32 %v4329_v36, %v4326_v17  ;;  %v7312_v36 = vld [vmem:[%s8903_s8 + $0xe0] sm:$0xff]  }
 0x49b   : > { %6879 = vmatprep.subr.bf16.mxu0 %v7364_v31  ;;  %7054 = vmatpush3.bf16.msra.mxu1 %v7295_v14  ;;  %v7296_v14 = vld [vmem:[%s8903_s8 + $0x80] sm:$0xff]  }
 0x49c   : > { %7055 = vmatprep.subr.bf16.mxu1 %v7364_v31 }
 0x49e   : > { %6880 = vmatpush3.bf16.msra.mxu0 %v5971_v28 }
 0x49f   : > { %6885 = vmatprep.subr.bf16.mxu0 %v7364_v31  ;;  %7056 = vmatpush3.bf16.msra.mxu1 %v7297_v3  ;;  %v7282_v3 = vld [vmem:[%s8905_s10 + $0x8] sm:$0xff]  }
 0x4a0   : > { %7057 = vmatprep.subr.bf16.mxu1 %v7364_v31  ;;  %v4585_v49 = vshll.u32 %v7282_v3, 16 }
 0x4a1   : > { %6882 = vmatmul.mubr.msk.bf16.vlgmr.msra.gmra.mrb[32].mxu0 %vm4263_vm8, %v7272_v22  ;;  %v7290_v22 = vld [vmem:[%s8903_s8 + $0x28] sm:$0xff]  }
 0x4a2   : > { %6886 = vmatpush3.bf16.msra.mxu0 %v7273_v0  ;;  %6901 = vmatprep.mubr.msk.bf16.mxu0 %vm7365_vm7, %v7364_v31 }
 0x4a3   : > { %6887 = vmatprep.subr.bf16.mxu0 %v7364_v31  ;;  %7058 = vmatpush3.bf16.msra.mxu1 %v7299_v2 }
 0x4a4   : > { %7059 = vmatprep.subr.bf16.mxu1 %v7364_v31 }
 0x4a6   : > { %6888 = vmatpush3.bf16.msra.mxu0 %v7274_v29 }
 0x4a7   : > { %6889 = vmatprep.subr.bf16.mxu0 %v7364_v31  ;;  %7060 = vmatpush3.bf16.msra.mxu1 %v7301_v39  ;;  %v7298_v39 = vld [vmem:[%s8903_s8 + $0x88] sm:$0xff]  }
 0x4aa   : > { %6890 = vmatpush3.bf16.msra.mxu0 %v7275_v9 }
 0x4ab   : > { %6891 = vmatprep.subr.bf16.mxu0 %v7364_v31 }
 0x4ae   : > { %6892 = vmatpush3.bf16.msra.mxu0 %v7276_v58 }
 0x4af   : > { %6893 = vmatprep.subr.bf16.mxu0 %v7364_v31 }
 0x4b2   : > { %6894 = vmatpush3.bf16.msra.mxu0 %v7277_v61  ;;  %v7292_v61 = vld [vmem:[%s8903_s8 + $0x30] sm:$0xff]  }
 0x4b3   : > { %6895 = vmatprep.subr.bf16.mxu0 %v7364_v31 }
 0x4b6   : > { %6896 = vmatpush3.bf16.msra.mxu0 %v7278_v21 }
 0x4b7   : > { %6897 = vmatprep.subr.bf16.mxu0 %v7364_v31 }
 0x4ba   : > { %6898 = vmatpush3.bf16.msra.mxu0 %v7279_v26 }
 0x4bb   : > { %6899 = vmatprep.subr.bf16.mxu0 %v7364_v31 }
 0x4be   : > { %6900 = vmatpush3.bf16.msra.mxu0 %v7280_v55 }
 0x4bf   : > { %6905 = vmatprep.subr.bf16.mxu0 %v7364_v31 }
 0x574   : > { %v4301_v62 = vpop.f32.mrb[32].mxu0 }
 0x575   : > { %v6883_v18 = vpop.f32.mrb[33].mxu0 }
 0x576   : > { %v4304_v46 = vpop.f32.mrb[34].mxu0  ;;  %v7300_v18 = vld [vmem:[%s8903_s8 + $0x90] sm:$0xff]  }
 0x577   : > { %v4308_v45 = vpack.c.bf16 %v4304_v46, %v4301_v62  ;;  %v6884_v60 = vpop.f32.mrb[35].mxu0  ;;  %v4582_v62 = vshrl.u32 %v7282_v3, 16  ;;  %v7322_v3 = vld [vmem:[%s8903_s8 + $0x128] sm:$0xff]  }
 0x578   : > { %v7302_v60 = vld [vmem:[%s8903_s8 + $0x98] sm:$0xff]  }
 0x579   : > { %v4310_v7 = vrot.slane %v4308_v45, 4  ;;  %v4584_v46 = vrot.slane %v4582_v62, 5  ;;  %v4587_v45 = vrot.slane %v4585_v49, 6  ;;  %v7324_v62 = vld [vmem:[%s8903_s8 + $0x138] sm:$0xff]  }
 0x57b   : > { %4312 = vst [vmem:[#allocation4 + $0x8] ss:$-4 sps:$4 sm:$0xff] %v4310_v7   ;;  %v4588_v59 = vor.u32 %v4587_v45, %v4584_v46  ;;  %v7304_v7 = vld [vmem:[%s8903_s8 + $0xa0] sm:$0xff]  }
 0x57c   : > { %v7326_v46 = vld [vmem:[%s8903_s8 + $0x140] sm:$0xff]  }
 0x582   : > { %v4315_v40 = vld [vmem:[#allocation4 + $0x8] sm:$0x3]  ;;  %v8618_v38 = vld [vmem:[#allocation4] sm:$0xfc] }
 0x583   : > { %v4371_v42 = vrot.slane %v8618_v38, 2  ;;  %v4372_v16 = vrot.slane %v4315_v40, 2  ;;  %v8624_v41 = vld [vmem:[#allocation4] sm:$0xc0]  ;;  %v5391_v30 = vld [vmem:[#allocation4 + $0x8] sm:$0x7f]  ;;  %v4333_v1 = vmul.bf16 %v4330_v48, %v4315_v40  ;;  %v4590_v43 = vmul.bf16 %v4588_v59, %v8618_v38 }
 0x584   : > { %v5409_v25 = vmul.bf16 %v5407_v33, %v8624_v41  ;;  %v5410_v47 = vmul.bf16 %v5407_v33, %v5391_v30  ;;  %v4314_v37 = vld [vmem:[#allocation4] sm:$0xfe]  ;;  %v4572_v20 = vld [vmem:[#allocation4 + $0x8] sm:$0x7]  ;;  %v7305_v33 = vld [vmem:[%s8903_s8 + $0xa8] sm:$0xff]  }
 0x585   : > { %v4373_v24 = vsel %vm4370_vm9, %v4371_v42, %v4372_v16  ;;  %v4332_v28 = vmul.bf16 %v4330_v48, %v4314_v37  ;;  %v4474_v9 = vshrl.u32 %v4333_v1, 16  ;;  %v4477_v58 = vshll.u32 %v4333_v1, 16  ;;  %v7306_v30 = vld [vmem:[%s8903_s8 + $0xb0] sm:$0xff]   ;;  %v4720_v17 = vld [vmem:[#allocation4 + $0x8] sm:$0xf]  ;;  %v7313_v48 = vld [vmem:[%s8903_s8 + $0xe8] sm:$0xff]  }
 0x586   : > { %6902 = vmatmul.mubr.bf16.vlgmr.msra.gmra.mrb[36].mxu0 %v4373_v24  ;;  %v5430_v4 = vshrl.u32 %v5409_v25, 16  ;;  %v5433_v56 = vshll.u32 %v5409_v25, 16  ;;  %v5438_v6 = vshrl.u32 %v5410_v47, 16  ;;  %v5441_v52 = vshll.u32 %v5410_v47, 16  ;;  %v7307_v24 = vld [vmem:[%s8903_s8 + $0xb8] sm:$0xff]  }
 0x587   : > { %6906 = vmatpush3.bf16.msra.mxu0 %v7283_v51  ;;  %6921 = vmatprep.mubr.msk.bf16.mxu0 %vm7365_vm7, %v7364_v31  ;;  %v4466_v0 = vshrl.u32 %v4332_v28, 16  ;;  %v4469_v29 = vshll.u32 %v4332_v28, 16  ;;  %v4476_v55 = vrot.slane %v4474_v9, 1  ;;  %v4479_v15 = vrot.slane %v4477_v58, 2 }
 0x588   : > { %6907 = vmatprep.subr.bf16.mxu0 %v7364_v31  ;;  %v5432_v54 = vrot.slane %v5430_v4, 6  ;;  %v5435_v8 = vrot.slane %v5433_v56, 7  ;;  %v5440_v35 = vrot.slane %v5438_v6, 6  ;;  %v5443_v13 = vrot.slane %v5441_v52, 7  ;;  %v7316_v52 = vld [vmem:[%s8905_s10 + $0x10] sm:$0xff]  }
 0x589   : > { %v4468_v21 = vrot.slane %v4466_v0, 1  ;;  %v4471_v26 = vrot.slane %v4469_v29, 2  ;;  %v4480_v53 = vor.u32 %v4479_v15, %v4476_v55  ;;  %v4591_v19 = vmul.bf16 %v4588_v59, %v4572_v20  ;;  %v7317_v55 = vld [vmem:[%s8903_s8 + $0x100] sm:$0xff]   ;;  %v7327_v59 = vld [vmem:[%s8903_s8 + $0x148] sm:$0xff]  }
 0x58a   : > { %v5436_v57 = vor.u32 %v5435_v8, %v5432_v54  ;;  %v5444_v11 = vor.u32 %v5443_v13, %v5440_v35  ;;  %v4611_v40 = vshrl.u32 %v4590_v43, 16  ;;  %v4614_v51 = vshll.u32 %v4590_v43, 16  ;;  %v7309_v54 = vld [vmem:[%s8903_s8 + $0xc8] sm:$0xff]   ;;  %v7328_v43 = vld [vmem:[%s8903_s8 + $0x150] sm:$0xff]  }
 0x58b   : > { %6908 = vmatpush3.bf16.msra.mxu0 %v7284_v12  ;;  %v4472_v32 = vor.u32 %v4471_v26, %v4468_v21  ;;  %v4619_v42 = vshrl.u32 %v4591_v19, 16  ;;  %v4622_v16 = vshll.u32 %v4591_v19, 16  ;;  %v7308_v12 = vld [vmem:[%s8903_s8 + $0xc0] sm:$0xff]   ;;  %v4730_v8 = vshrl.u32 %v7316_v52, 16 }
 0x58c   : > { %6909 = vmatprep.subr.bf16.mxu0 %v7364_v31  ;;  %v5445_v34 = vsel %vm5428_vm10, %v5436_v57, %v5444_v11  ;;  %v4613_v38 = vrot.slane %v4611_v40, 2  ;;  %v4616_v25 = vrot.slane %v4614_v51, 3  ;;  %v4733_v63 = vshll.u32 %v7316_v52, 16  ;;  %v7311_v57 = vld [vmem:[%s8903_s8 + $0xd8] sm:$0xff]  }
 0x58d   : > { %7062 = vmatmul.mubr.bf16.vlgmr.msra.gmra.mrb[24].mxu1 %v5445_v34  ;;  %v4481_v2 = vsel %vm4464_vm11, %v4472_v32, %v4480_v53  ;;  %v4621_v47 = vrot.slane %v4619_v42, 2  ;;  %v4624_v50 = vrot.slane %v4622_v16, 3  ;;  %v4732_v35 = vrot.slane %v4730_v8, 4  ;;  %v4719_v11 = vld [vmem:[#allocation4] sm:$0xf8]  ;;  %v7319_v32 = vld [vmem:[%s8903_s8 + $0x110] sm:$0xff]  }
 0x58e   : > { %v4617_v4 = vor.u32 %v4616_v25, %v4613_v38  ;;  %v4735_v13 = vrot.slane %v4733_v63, 5  ;;  %v7320_v53 = vld [vmem:[%s8903_s8 + $0x118] sm:$0xff]   ;;  %v4981_v42 = vld [vmem:[#allocation4 + $0x8] sm:$0x1f] }
 0x58f   : > { %6910 = vmatpush3.bf16.msra.mxu0 %v7285_v44  ;;  %v4625_v56 = vor.u32 %v4624_v50, %v4621_v47  ;;  %v7329_v40 = vld [vmem:[%s8903_s8 + $0x158] sm:$0xff]   ;;  %v7330_v16 = vld [vmem:[%s8903_s8 + $0x160] sm:$0xff]   ;;  %v7331_v25 = vld [vmem:[%s8903_s8 + $0x168] sm:$0xff]  }
 0x590   : > { %6911 = vmatprep.subr.bf16.mxu0 %v7364_v31  ;;  %v4736_v44 = vor.u32 %v4735_v13, %v4732_v35  ;;  %v7333_v8 = vld [vmem:[%s8903_s8 + $0x178] sm:$0xff]   ;;  %v7334_v35 = vld [vmem:[%s8903_s8 + $0x180] sm:$0xff]  }
 0x591   : > { %v4626_v6 = vsel %vm4609_vm12, %v4617_v4, %v4625_v56  ;;  %v7332_v56 = vld [vmem:[%s8903_s8 + $0x170] sm:$0xff]  }
 0x592   : > { %v4738_v34 = vmul.bf16 %v4736_v44, %v4719_v11 }
 0x593   : > { %6912 = vmatpush3.bf16.msra.mxu0 %v7286_v10  ;;  %v4739_v10 = vmul.bf16 %v4736_v44, %v4720_v17  ;;  %v7335_v44 = vld [vmem:[%s8903_s8 + $0x188] sm:$0xff]  }
 0x594   : > { %6913 = vmatprep.subr.bf16.mxu0 %v7364_v31  ;;  %v4758_v37 = vshrl.u32 %v4738_v34, 16 }
 0x595   : > { %v4766_v1 = vshrl.u32 %v4739_v10, 16  ;;  %v4769_v28 = vshll.u32 %v4739_v10, 16 }
 0x596   : > { %v4760_v0 = vrot.slane %v4758_v37, 3 }
 0x597   : > { %6914 = vmatpush3.bf16.msra.mxu0 %v7288_v5  ;;  %v4761_v5 = vshll.u32 %v4738_v34, 16  ;;  %v4768_v9 = vrot.slane %v4766_v1, 3  ;;  %v4771_v58 = vrot.slane %v4769_v28, 4  ;;  %v8830_v1 = vld [vmem:[#allocation4 + $0x8] sm:$0x3f] }
 0x598   : > { %6915 = vmatprep.subr.bf16.mxu0 %v7364_v31  ;;  %v7338_v28 = vld [vmem:[%s8903_s8 + $0x1a0] sm:$0xff]  }
 0x599   : > { %v4763_v29 = vrot.slane %v4761_v5, 4  ;;  %v4772_v26 = vor.u32 %v4771_v58, %v4768_v9  ;;  %v5127_v5 = vld [vmem:[#allocation4] sm:$0xe0] }
 0x59b   : > { %6916 = vmatpush3.bf16.msra.mxu0 %v7290_v22  ;;  %v7314_v22 = vld [vmem:[%s8903_s8 + $0xf0] sm:$0xff]   ;;  %v4764_v21 = vor.u32 %v4763_v29, %v4760_v0  ;;  %v7339_v29 = vld [vmem:[%s8903_s8 + $0x1a8] sm:$0xff]  }
 0x59c   : > { %6917 = vmatprep.subr.bf16.mxu0 %v7364_v31 }
 0x59d   : > { %v4773_v15 = vsel %vm2283_vm4, %v4764_v21, %v4772_v26  ;;  %v7340_v26 = vld [vmem:[%s8903_s8 + $0x1b0] sm:$0xff]  }
 0x59f   : > { %6918 = vmatpush3.bf16.msra.mxu0 %v7292_v61  ;;  %v7315_v61 = vld [vmem:[%s8903_s8 + $0xf8] sm:$0xff]  }
 0x5a0   : > { %6919 = vmatprep.subr.bf16.mxu0 %v7364_v31 }
 0x5a3   : > { %6920 = vmatpush3.bf16.msra.mxu0 %v7294_v27  ;;  %v7318_v27 = vld [vmem:[%s8903_s8 + $0x108] sm:$0xff]  }
 0x5a4   : > { %6925 = vmatprep.subr.bf16.mxu0 %v7364_v31 }
 0x5a6   : > { %6922 = vmatmul.mubr.bf16.vlgmr.msra.gmra.mrb[40].mxu0 %v4481_v2  ;;  %v7323_v2 = vld [vmem:[%s8903_s8 + $0x130] sm:$0xff]  }
 0x5a7   : > { %6926 = vmatpush3.bf16.msra.mxu0 %v7296_v14  ;;  %6941 = vmatprep.mubr.msk.bf16.mxu0 %vm7365_vm7, %v7364_v31  ;;  %v7321_v14 = vld [vmem:[%s8903_s8 + $0x120] sm:$0xff]  }
 0x5a8   : > { %6927 = vmatprep.subr.bf16.mxu0 %v7364_v31 }
 0x5ab   : > { %6928 = vmatpush3.bf16.msra.mxu0 %v7298_v39  ;;  %v4866_v39 = vld [vmem:[#allocation4] sm:$0xf0] }
 0x5ac   : > { %6929 = vmatprep.subr.bf16.mxu0 %v7364_v31  ;;  %v4886_v49 = vrot.slane %v4866_v39, 4 }
 0x5af   : > { %6930 = vmatpush3.bf16.msra.mxu0 %v7300_v18  ;;  %v4887_v18 = vrot.slane %v4720_v17, 4 }
 0x5b0   : > { %6931 = vmatprep.subr.bf16.mxu0 %v7364_v31 }
 0x5b1   : > { %v4888_v45 = vsel %vm2156_vm3, %v4886_v49, %v4887_v18  ;;  %v7345_v49 = vld [vmem:[%s8903_s8 + $0x1d0] sm:$0xff]   ;;  %v7346_v18 = vld [vmem:[%s8903_s8 + $0x1d8] sm:$0xff]  }
 0x5b3   : > { %6932 = vmatpush3.bf16.msra.mxu0 %v7302_v60  ;;  %v7325_v60 = vld [vmem:[%s8905_s10 + $0x18] sm:$0xff]  }
 0x5b4   : > { %6933 = vmatprep.subr.bf16.mxu0 %v7364_v31  ;;  %v4991_v20 = vshrl.u32 %v7325_v60, 16 }
 0x5b6   : > { %v4993_v19 = vrot.slane %v4991_v20, 3  ;;  %v7349_v20 = vld [vmem:[%s8903_s8 + $0x1f0] sm:$0xff]  }
 0x5b7   : > { %6934 = vmatpush3.bf16.msra.mxu0 %v7304_v7  ;;  %v4994_v7 = vshll.u32 %v7325_v60, 16 }
 0x5b8   : > { %6935 = vmatprep.subr.bf16.mxu0 %v7364_v31 }
 0x5bb   : > { %6936 = vmatpush3.bf16.msra.mxu0 %v7305_v33  ;;  %v4996_v33 = vrot.slane %v4994_v7, 4 }
 0x5bc   : > { %6937 = vmatprep.subr.bf16.mxu0 %v7364_v31 }
 0x5bd   : > { %v4997_v51 = vor.u32 %v4996_v33, %v4993_v19  ;;  %v7350_v19 = vld [vmem:[%s8903_s8 + $0x1f8] sm:$0xff]   ;;  %v5296_v33 = vrot.slane %v8624_v41, 6 }
 0x5bf   : > { %6938 = vmatpush3.bf16.msra.mxu0 %v7306_v30  ;;  %v4999_v30 = vmul.bf16 %v4997_v51, %v4866_v39  ;;  %v5000_v38 = vmul.bf16 %v4997_v51, %v4981_v42 }
 0x5c0   : > { %6939 = vmatprep.subr.bf16.mxu0 %v7364_v31 }
 0x5c1   : > { %v5019_v47 = vshrl.u32 %v4999_v30, 16  ;;  %v5022_v50 = vshll.u32 %v4999_v30, 16  ;;  %v5030_v4 = vshll.u32 %v5000_v38, 16 }
 0x5c3   : > { %6940 = vmatpush3.bf16.msra.mxu0 %v7307_v24  ;;  %v5027_v24 = vshrl.u32 %v5000_v38, 16 }
 0x5c4   : > { %6945 = vmatprep.subr.bf16.mxu0 %v7364_v31 }
 0x5c5   : > { %v5029_v52 = vrot.slane %v5027_v24, 4 }
 0x5c6   : > { %6942 = vmatmul.mubr.bf16.vlgmr.msra.gmra.mrb[44].mxu0 %v4626_v6  ;;  %v5024_v6 = vrot.slane %v5022_v50, 5 }
 0x5c7   : > { %6946 = vmatpush3.bf16.msra.mxu0 %v7308_v12  ;;  %6961 = vmatprep.mubr.msk.bf16.mxu0 %vm7365_vm7, %v7364_v31  ;;  %v5021_v12 = vrot.slane %v5019_v47, 4 }
 0x5c8   : > { %6947 = vmatprep.subr.bf16.mxu0 %v7364_v31 }
 0x5c9   : > { %v5025_v63 = vor.u32 %v5024_v6, %v5021_v12 }
 0x5cb   : > { %6948 = vmatpush3.bf16.msra.mxu0 %v7309_v54  ;;  %v5032_v54 = vrot.slane %v5030_v4, 5 }
 0x5cc   : > { %6949 = vmatprep.subr.bf16.mxu0 %v7364_v31 }
 0x5cf   : > { %6950 = vmatpush3.bf16.msra.mxu0 %v7310_v23  ;;  %v5033_v23 = vor.u32 %v5032_v54, %v5029_v52 }
 0x5d0   : > { %6951 = vmatprep.subr.bf16.mxu0 %v7364_v31 }
 0x5d1   : > { %v5034_v13 = vsel %vm976_vm0, %v5025_v63, %v5033_v23 }
 0x5d3   : > { %6952 = vmatpush3.bf16.msra.mxu0 %v7311_v57  ;;  %v7342_v57 = vld [vmem:[%s8905_s10 + $0x20] sm:$0xff]  }
 0x5d4   : > { %6953 = vmatprep.subr.bf16.mxu0 %v7364_v31  ;;  %v5138_v11 = vshrl.u32 %v7342_v57, 16  ;;  %v5141_v17 = vshll.u32 %v7342_v57, 16 }
 0x5d6   : > { %v5140_v34 = vrot.slane %v5138_v11, 2  ;;  %v5143_v10 = vrot.slane %v5141_v17, 3 }
 0x5d7   : > { %6954 = vmatpush3.bf16.msra.mxu0 %v7312_v36  ;;  %v7336_v36 = vld [vmem:[%s8903_s8 + $0x190] sm:$0xff]  }
 0x5d8   : > { %6955 = vmatprep.subr.bf16.mxu0 %v7364_v31  ;;  %v5144_v37 = vor.u32 %v5143_v10, %v5140_v34 }
 0x5da   : > { %v5147_v0 = vmul.bf16 %v5144_v37, %v8830_v1 }
 0x5db   : > { %6956 = vmatpush3.bf16.msra.mxu0 %v7313_v48  ;;  %v7337_v48 = vld [vmem:[%s8903_s8 + $0x198] sm:$0xff]  }
 0x5dc   : > { %6957 = vmatprep.subr.bf16.mxu0 %v7364_v31  ;;  %v5178_v21 = vshll.u32 %v5147_v0, 16 }
 0x5df   : > { %6958 = vmatpush3.bf16.msra.mxu0 %v7314_v22  ;;  %v5146_v22 = vmul.bf16 %v5144_v37, %v5127_v5 }
 0x5e0   : > { %6959 = vmatprep.subr.bf16.mxu0 %v7364_v31 }
 0x5e1   : > { %v5167_v9 = vshrl.u32 %v5146_v22, 16  ;;  %v5170_v58 = vshll.u32 %v5146_v22, 16 }
 0x5e3   : > { %6960 = vmatpush3.bf16.msra.mxu0 %v7315_v61  ;;  %v5175_v61 = vshrl.u32 %v5147_v0, 16 }
 0x5e4   : > { %6965 = vmatprep.subr.bf16.mxu0 %v7364_v31 }
 0x5e6   : > { %6962 = vmatmul.mubr.bf16.vlgmr.msra.gmra.mrb[48].mxu0 %v4773_v15  ;;  %v5172_v15 = vrot.slane %v5170_v58, 6 }
 0x5e7   : > { %6966 = vmatpush3.bf16.msra.mxu0 %v7317_v55  ;;  %6981 = vmatprep.mubr.msk.bf16.mxu0 %vm7365_vm7, %v7364_v31  ;;  %v5169_v55 = vrot.slane %v5167_v9, 5 }
 0x5e8   : > { %6967 = vmatprep.subr.bf16.mxu0 %v7364_v31 }
 0x5eb   : > { %6968 = vmatpush3.bf16.msra.mxu0 %v7318_v27  ;;  %v5177_v27 = vrot.slane %v5175_v61, 5 }
 0x5ec   : > { %6969 = vmatprep.subr.bf16.mxu0 %v7364_v31 }
 0x5ef   : > { %6970 = vmatpush3.bf16.msra.mxu0 %v7319_v32  ;;  %v5180_v32 = vrot.slane %v5178_v21, 6 }
 0x5f0   : > { %6971 = vmatprep.subr.bf16.mxu0 %v7364_v31 }
 0x5f3   : > { %6972 = vmatpush3.bf16.msra.mxu0 %v7320_v53  ;;  %v7341_v53 = vld [vmem:[%s8903_s8 + $0x1b8] sm:$0xff]  }
 0x5f4   : > { %6973 = vmatprep.subr.bf16.mxu0 %v7364_v31 }
 0x5f7   : > { %6974 = vmatpush3.bf16.msra.mxu0 %v7321_v14  ;;  %v5173_v14 = vor.u32 %v5172_v15, %v5169_v55 }
 0x5f8   : > { %6975 = vmatprep.subr.bf16.mxu0 %v7364_v31 }
 0x5fb   : > { %6976 = vmatpush3.bf16.msra.mxu0 %v7322_v3  ;;  %v5181_v3 = vor.u32 %v5180_v32, %v5177_v27  ;;  %v6189_v27 = vld [vmem:[%s8904_s9] ss:$0 sm:$0xff] }
 0x5fc   : > { %6977 = vmatprep.subr.bf16.mxu0 %v7364_v31 }
 0x5fd   : > { %v5182_v39 = vsel %vm5165_vm13, %v5173_v14, %v5181_v3 }
 0x5ff   : > { %6978 = vmatpush3.bf16.msra.mxu0 %v7323_v2  ;;  %v7343_v2 = vld [vmem:[%s8903_s8 + $0x1c0] sm:$0xff]  }
 0x600   : > { %6979 = vmatprep.subr.bf16.mxu0 %v7364_v31 }
 0x603   : > { %6980 = vmatpush3.bf16.msra.mxu0 %v7324_v62  ;;  %v7344_v62 = vld [vmem:[%s8903_s8 + $0x1c8] sm:$0xff]  }
 0x604   : > { %6985 = vmatprep.subr.bf16.mxu0 %v7364_v31 }
 0x606   : > { %6982 = vmatmul.mubr.bf16.vlgmr.msra.gmra.mrb[52].mxu0 %v4888_v45  ;;  %v7348_v45 = vld [vmem:[%s8903_s8 + $0x1e8] sm:$0xff]  }
 0x607   : > { %6986 = vmatpush3.bf16.msra.mxu0 %v7326_v46  ;;  %7001 = vmatprep.mubr.msk.bf16.mxu0 %vm7365_vm7, %v7364_v31  ;;  %v7347_v46 = vld [vmem:[%s8903_s8 + $0x1e0] sm:$0xff]  }
 0x608   : > { %6987 = vmatprep.subr.bf16.mxu0 %v7364_v31 }
 0x60b   : > { %6988 = vmatpush3.bf16.msra.mxu0 %v7327_v59 }
 0x60c   : > { %6989 = vmatprep.subr.bf16.mxu0 %v7364_v31 }
 0x60f   : > { %6990 = vmatpush3.bf16.msra.mxu0 %v7328_v43 }
 0x610   : > { %6991 = vmatprep.subr.bf16.mxu0 %v7364_v31 }
 0x613   : > { %6992 = vmatpush3.bf16.msra.mxu0 %v7329_v40  ;;  %v5297_v40 = vrot.slane %v8830_v1, 6 }
 0x614   : > { %6993 = vmatprep.subr.bf16.mxu0 %v7364_v31 }
 0x615   : > { %v5298_v38 = vsel %vm5295_vm14, %v5296_v33, %v5297_v40 }
 0x617   : > { %6994 = vmatpush3.bf16.msra.mxu0 %v7330_v16 }
 0x618   : > { %6995 = vmatprep.subr.bf16.mxu0 %v7364_v31 }
 0x61b   : > { %6996 = vmatpush3.bf16.msra.mxu0 %v7331_v25 }
 0x61c   : > { %6997 = vmatprep.subr.bf16.mxu0 %v7364_v31 }
 0x61f   : > { %6998 = vmatpush3.bf16.msra.mxu0 %v7332_v56 }
 0x620   : > { %6999 = vmatprep.subr.bf16.mxu0 %v7364_v31 }
 0x623   : > { %7000 = vmatpush3.bf16.msra.mxu0 %v7333_v8 }
 0x624   : > { %7005 = vmatprep.subr.bf16.mxu0 %v7364_v31 }
 0x626   : > { %7002 = vmatmul.mubr.bf16.vlgmr.msra.gmra.mrb[56].mxu0 %v5034_v13 }
 0x627   : > { %7006 = vmatpush3.bf16.msra.mxu0 %v7334_v35  ;;  %7021 = vmatprep.mubr.msk.bf16.mxu0 %vm7365_vm7, %v7364_v31 }
 0x628   : > { %7007 = vmatprep.subr.bf16.mxu0 %v7364_v31 }
 0x62b   : > { %7008 = vmatpush3.bf16.msra.mxu0 %v7335_v44 }
 0x62c   : > { %7009 = vmatprep.subr.bf16.mxu0 %v7364_v31 }
 0x62f   : > { %7010 = vmatpush3.bf16.msra.mxu0 %v7336_v36 }
 0x630   : > { %7011 = vmatprep.subr.bf16.mxu0 %v7364_v31 }
 0x633   : > { %7012 = vmatpush3.bf16.msra.mxu0 %v7337_v48 }
 0x634   : > { %7013 = vmatprep.subr.bf16.mxu0 %v7364_v31 }
 0x637   : > { %7014 = vmatpush3.bf16.msra.mxu0 %v7338_v28 }
 0x638   : > { %7015 = vmatprep.subr.bf16.mxu0 %v7364_v31 }
 0x63b   : > { %7016 = vmatpush3.bf16.msra.mxu0 %v7339_v29 }
 0x63c   : > { %7017 = vmatprep.subr.bf16.mxu0 %v7364_v31 }
 0x63f   : > { %7018 = vmatpush3.bf16.msra.mxu0 %v7340_v26 }
 0x640   : > { %7019 = vmatprep.subr.bf16.mxu0 %v7364_v31 }
 0x643   : > { %7020 = vmatpush3.bf16.msra.mxu0 %v7341_v53 }
 0x644   : > { %7025 = vmatprep.subr.bf16.mxu0 %v7364_v31 }
 0x646   : > { %7022 = vmatmul.mubr.bf16.vlgmr.msra.gmra.mrb[60].mxu0 %v5182_v39 }
 0x647   : > { %7026 = vmatpush3.bf16.msra.mxu0 %v7343_v2  ;;  %7041 = vmatprep.mubr.msk.bf16.mxu0 %vm7365_vm7, %v7364_v31 }
 0x648   : > { %7027 = vmatprep.subr.bf16.mxu0 %v7364_v31 }
 0x64b   : > { %7028 = vmatpush3.bf16.msra.mxu0 %v7344_v62 }
 0x64c   : > { %7029 = vmatprep.subr.bf16.mxu0 %v7364_v31 }
 0x64f   : > { %7030 = vmatpush3.bf16.msra.mxu0 %v7345_v49 }
 0x650   : > { %7031 = vmatprep.subr.bf16.mxu0 %v7364_v31 }
 0x653   : > { %7032 = vmatpush3.bf16.msra.mxu0 %v7346_v18 }
 0x654   : > { %7033 = vmatprep.subr.bf16.mxu0 %v7364_v31 }
 0x657   : > { %7034 = vmatpush3.bf16.msra.mxu0 %v7347_v46 }
 0x658   : > { %7035 = vmatprep.subr.bf16.mxu0 %v7364_v31 }
 0x659   : > { %v4457_v60 = vpop.f32.mrb[36].mxu0 }
 0x65a   : > { %v6903_v59 = vpop.f32.mrb[37].mxu0 }
 0x65b   : > { %7036 = vmatpush3.bf16.msra.mxu0 %v7348_v45  ;;  %v4460_v7 = vpop.f32.mrb[38].mxu0 }
 0x65c   : > { %7037 = vmatprep.subr.bf16.mxu0 %v7364_v31  ;;  %v6904_v43 = vpop.f32.mrb[39].mxu0 }
 0x65f   : > { %7038 = vmatpush3.bf16.msra.mxu0 %v7349_v20 }
 0x660   : > { %7039 = vmatprep.subr.bf16.mxu0 %v7364_v31  ;;  %v5529_v51 = vpop.f32.mrb[24].mxu1 }
 0x661   : > { %v7063_v42 = vpop.f32.mrb[25].mxu1 }
 0x662   : > { %v5532_v16 = vpop.f32.mrb[26].mxu1 }
 0x663   : > { %7040 = vmatpush3.bf16.msra.mxu0 %v7350_v19  ;;  %v7064_v30 = vpop.f32.mrb[27].mxu1 }
 0x666   : > { %7042 = vmatmul.mubr.bf16.vlgmr.msra.gmra.mrb[64].mxu0 %v5298_v38 }
 0x679   : > { %v4565_v25 = vpop.f32.mrb[40].mxu0 }
 0x67a   : > { %v4566_v47 = vadd.f32 %v4565_v25, %v4457_v60  ;;  %v6923_v50 = vpop.f32.mrb[41].mxu0 }
 0x67b   : > { %v4568_v24 = vpop.f32.mrb[42].mxu0 }
 0x67c   : > { %v4569_v4 = vadd.f32 %v4568_v24, %v4460_v7  ;;  %v6924_v56 = vpop.f32.mrb[43].mxu0 }
 0x699   : > { %v4710_v12 = vpop.f32.mrb[44].mxu0 }
 0x69a   : > { %v4717_v31 = vadd.f32 %v4710_v12, %v4566_v47  ;;  %v6943_v6 = vpop.f32.mrb[45].mxu0 }
 0x69b   : > { %v4713_v41 = vpop.f32.mrb[46].mxu0 }
 0x69c   : > { %v4718_v52 = vadd.f32 %v4713_v41, %v4569_v4  ;;  %v6944_v54 = vpop.f32.mrb[47].mxu0 }
 0x6b9   : > { %v4857_v8 = vpop.f32.mrb[48].mxu0 }
 0x6ba   : > { %v4864_v63 = vadd.f32 %v4857_v8, %v4717_v31  ;;  %v6963_v23 = vpop.f32.mrb[49].mxu0 }
 0x6bb   : > { %v4860_v35 = vpop.f32.mrb[50].mxu0 }
 0x6bc   : > { %v4865_v13 = vadd.f32 %v4860_v35, %v4718_v52  ;;  %v6964_v57 = vpop.f32.mrb[51].mxu0 }
 0x6d9   : > { %v4972_v44 = vpop.f32.mrb[52].mxu0 }
 0x6da   : > { %v4979_v11 = vadd.f32 %v4972_v44, %v4864_v63  ;;  %v6983_v17 = vpop.f32.mrb[53].mxu0 }
 0x6db   : > { %v4975_v36 = vpop.f32.mrb[54].mxu0 }
 0x6dc   : > { %v4980_v34 = vadd.f32 %v4975_v36, %v4865_v13  ;;  %v6984_v10 = vpop.f32.mrb[55].mxu0 }
 0x6f9   : > { %v5118_v48 = vpop.f32.mrb[56].mxu0 }
 0x6fa   : > { %v5125_v37 = vadd.f32 %v5118_v48, %v4979_v11  ;;  %v7003_v5 = vpop.f32.mrb[57].mxu0 }
 0x6fb   : > { %v5121_v1 = vpop.f32.mrb[58].mxu0 }
 0x6fc   : > { %v5126_v28 = vadd.f32 %v5121_v1, %v4980_v34  ;;  %v7004_v22 = vpop.f32.mrb[59].mxu0 }
 0x719   : > { %v5266_v0 = vpop.f32.mrb[60].mxu0 }
 0x71a   : > { %v5273_v29 = vadd.f32 %v5266_v0, %v5125_v37  ;;  %v7023_v9 = vpop.f32.mrb[61].mxu0 }
 0x71b   : > { %v5269_v58 = vpop.f32.mrb[62].mxu0 }
 0x71c   : > { %v5274_v61 = vadd.f32 %v5269_v58, %v5126_v28  ;;  %v7024_v21 = vpop.f32.mrb[63].mxu0 }
 0x739   : > { %v5382_v26 = vpop.f32.mrb[64].mxu0 }
 0x73a   : > { %v5389_v55 = vadd.f32 %v5382_v26, %v5273_v29  ;;  %v7043_v15 = vpop.f32.mrb[65].mxu0 }
 0x73b   : > { %v5385_v32 = vpop.f32.mrb[66].mxu0 }
 0x73c   : > { %v5536_v53 = vadd.f32 %v5529_v51, %v5389_v55  ;;  %v5390_v14 = vadd.f32 %v5385_v32, %v5274_v61  ;;  %v7044_v3 = vpop.f32.mrb[67].mxu0 }
 0x73e   : > { %v5545_v2 = vadd.f32 %v6189_v27, %v5536_v53  ;;  %v5537_v39 = vadd.f32 %v5532_v16, %v5390_v14 }
 0x740   : > { %v5546_v62 = vadd.f32 %v6189_v27, %v5537_v39  ;;  %v5547_v49 = vmax.f32 %v5545_v2, 0.0 }
 0x742   : > { %v5548_v18 = vmax.f32 %v5546_v62, 0.0 }
 0x744   : > { %v5549_v46 = vadd.f32 %v5548_v18, %v5547_v49 }
 0x746   : > { %v5550_v45 = vrot.slane %v5549_v46, 4 }
 0x748   : > { %v5551_v60 = vadd.f32 %v5550_v45, %v5549_v46 }
 0x74a   : > { %v5552_v59 = vrot.slane %v5551_v60, 2 }
 0x74c   : > { %v5553_v20 = vadd.f32 %v5552_v59, %v5551_v60 }
 0x74e   : > { %v5554_v7 = vrot.slane %v5553_v20, 1 }
 0x750   : > { %v5555_v43 = vadd.f32 %v5554_v7, %v5553_v20 }
 0x752   : > { %v5557_v19 = vmul.f32 0.0625, %v5555_v43 }
 0x754   : > { %5558 = vst [vmem:[%s382_s22] sm:$0x1] %v5557_v19 }
 0x755 PF: > { %s21_s17 = sadd.s32 1, %s7361_s17  }
 0x756   : > { %p18_p4 = scmp.ge.s32.totalorder %s21_s17, 4  }
 0x758   :  { %20 = sbr.rel (!%p18_p4) target bundleno = 1 (0x1), region = 120 }

</bundles_post_ra>
